<compile_context>
chip_gen: v7x
topology: tpu7x:2x2x1
jax: 0.10.0
libtpu: 0.0.40
codegen_flags: <defaults>
</compile_context>

<pallas_src>
import functools

import jax
import jax.numpy as jnp
from jax.experimental import pallas as pl
from jax.experimental.pallas import tpu as pltpu

_VMEM_LIMIT = 32 * 1024 * 1024  # comfortably under v7x's 64 MiB physical VMEM


def _pick_hw_block(hw, target=512):
    """Largest multiple-of-128 divisor of hw that is <= target (else hw)."""
    if hw % 128 != 0 or hw <= target:
        return hw
    blk = (min(target, hw) // 128) * 128
    while hw % blk != 0:
        blk -= 128
    return blk


# -----------------------------------------------------------------------------
# Fused image kernel: stand-in backbone (1x1 conv + ReLU + global avg pool)
# + projection head (res_l1 -> ReLU -> res_l2).
# -----------------------------------------------------------------------------
def _image_encoder_kernel(x_ref, wc_ref, bc_ref, w1_ref, b1_ref, w2_ref, b2_ref,
                          h_ref, zis_ref, *, inv_hw):
    # TODO(synk): pretrained ResNet trunk (res_features) is not reproduced;
    # this is a 1x1-conv + ReLU + global-average-pool stand-in.
    t = pl.program_id(1)

    @pl.when(t == 0)
    def _init():
        h_ref[...] = jnp.zeros_like(h_ref)

    # 1x1 conv in transposed (lane-dense) orientation: [F,C] @ [C,hw_blk]
    x = x_ref[...]                                                  # [C, hw_blk] f32
    feat_t = jnp.dot(wc_ref[...], x,
                     preferred_element_type=jnp.float32)            # [F, hw_blk]
    feat_t = jnp.maximum(feat_t + bc_ref[...], 0.0)                 # bias + ReLU

    # Spatial mean pool as an MXU matmul: (ones/HW)[1,blk] contracted with
    # feat_t[F,blk] on the lane axis (A @ B^T dimension numbers).
    pool_row = jnp.full((1, feat_t.shape[1]), inv_hw, dtype=jnp.float32)
    contrib = jax.lax.dot_general(
        pool_row, feat_t, (((1,), (1,)), ((), ())),
        preferred_element_type=jnp.float32)                         # [1, F]
    h_ref[...] += contrib                                           # resident accumulator

    # Projection head on the final spatial tile (h stays in VMEM).
    @pl.when(t == pl.num_programs(1) - 1)
    def _head():
        h = h_ref[...].astype(jnp.bfloat16)                         # [1, F]
        x1 = jnp.dot(h, w1_ref[...],
                     preferred_element_type=jnp.float32) + b1_ref[...]
        x1 = jnp.maximum(x1, 0.0).astype(jnp.bfloat16)
        zis_ref[...] = jnp.dot(x1, w2_ref[...],
                               preferred_element_type=jnp.float32) + b2_ref[...]


def _image_encoder_call(params, x3, hw_block):
    B, C, HW = x3.shape
    wc, bc = params["res_conv_wt"], params["res_conv_b"]
    w1, b1 = params["res_l1_w"], params["res_l1_b"]
    w2, b2 = params["res_l2_w"], params["res_l2_b"]
    F, O = wc.shape[0], w2.shape[1]
    n_hw = HW // hw_block
    kernel = functools.partial(_image_encoder_kernel, inv_hw=1.0 / HW)
    h3, z3 = pl.pallas_call(
        kernel,
        grid=(B, n_hw),
        in_specs=[
            pl.BlockSpec((None, C, hw_block), lambda b, t: (b, 0, t)),
            pl.BlockSpec(wc.shape, lambda b, t: (0, 0)),
            pl.BlockSpec(bc.shape, lambda b, t: (0, 0)),
            pl.BlockSpec(w1.shape, lambda b, t: (0, 0)),
            pl.BlockSpec(b1.shape, lambda b, t: (0, 0)),
            pl.BlockSpec(w2.shape, lambda b, t: (0, 0)),
            pl.BlockSpec(b2.shape, lambda b, t: (0, 0)),
        ],
        out_specs=(
            pl.BlockSpec((None, 1, F), lambda b, t: (b, 0, 0)),
            pl.BlockSpec((None, 1, O), lambda b, t: (b, 0, 0)),
        ),
        out_shape=(
            jax.ShapeDtypeStruct((B, 1, F), jnp.float32),
            jax.ShapeDtypeStruct((B, 1, O), jnp.float32),
        ),
        compiler_params=pltpu.CompilerParams(
            dimension_semantics=("parallel", "arbitrary"),
            vmem_limit_bytes=_VMEM_LIMIT),
    )(x3, wc, bc, w1, b1, w2, b2)
    return h3.reshape(B, F), z3.reshape(B, O)


# -----------------------------------------------------------------------------
# Fused text kernel: masked mean pooling + projection head (bert_l1/ReLU/bert_l2).
# -----------------------------------------------------------------------------
def _text_encoder_kernel(tok_ref, mask_ref, w1_ref, b1_ref, w2_ref, b2_ref,
                         zls_ref):
    tok = tok_ref[...]                                              # [S, H] f32
    m = mask_ref[...]                                               # [1, S] f32
    # SBERT masked mean pooling; the masked sum is a mask-row @ tokens matmul.
    summed = jnp.dot(m, tok, preferred_element_type=jnp.float32)    # [1, H]
    denom = jnp.maximum(jnp.sum(m, axis=1, keepdims=True), 1e-9)    # clamp(min=1e-9)
    pooled = summed * pl.reciprocal(denom, approx=True)             # [1, H]
    # TODO(synk): PyTorch applies `.half()` and runs the head in fp16; here the
    # half-precision path is approximated with bf16 (native MXU dtype) and the
    # final cast to fp16 happens in the wrapper.
    sent = pooled.astype(jnp.bfloat16)
    x1 = jnp.dot(sent, w1_ref[...],
                 preferred_element_type=jnp.float32) + b1_ref[...]
    x1 = jnp.maximum(x1, 0.0).astype(jnp.bfloat16)
    z = jnp.dot(x1, w2_ref[...],
                preferred_element_type=jnp.float32) + b2_ref[...]
    zls_ref[...] = z.astype(zls_ref.dtype)                          # bf16 HBM write


def _text_encoder_call(params, tok, mask_row):
    B, S, Hd = tok.shape
    w1, b1 = params["bert_l1_w"], params["bert_l1_b"]
    w2, b2 = params["bert_l2_w"], params["bert_l2_b"]
    O = w2.shape[1]
    z3 = pl.pallas_call(
        _text_encoder_kernel,
        grid=(B,),
        in_specs=[
            pl.BlockSpec((None, S, Hd), lambda b: (b, 0, 0)),
            pl.BlockSpec((None, 1, S), lambda b: (b, 0, 0)),
            pl.BlockSpec(w1.shape, lambda b: (0, 0)),
            pl.BlockSpec(b1.shape, lambda b: (0, 0)),
            pl.BlockSpec(w2.shape, lambda b: (0, 0)),
            pl.BlockSpec(b2.shape, lambda b: (0, 0)),
        ],
        out_specs=pl.BlockSpec((None, 1, O), lambda b: (b, 0, 0)),
        out_shape=jax.ShapeDtypeStruct((B, 1, O), jnp.bfloat16),
        compiler_params=pltpu.CompilerParams(
            dimension_semantics=("parallel",),
            vmem_limit_bytes=_VMEM_LIMIT),
    )(tok, mask_row, w1, b1, w2, b2)
    return z3.reshape(B, O)


# -----------------------------------------------------------------------------
# Params + ModelCLR forward (glue in plain JAX)
# -----------------------------------------------------------------------------
def init_params(key, in_ch, num_ftrs, bert_hidden, out_dim):
    ks = jax.random.split(key, 5)

    def lin(k, fan_in, fan_out):
        kw, kb = jax.random.split(k)
        bound = 1.0 / jnp.sqrt(jnp.float32(fan_in))
        w = jax.random.uniform(kw, (fan_in, fan_out), jnp.float32, -bound, bound)
        b = jax.random.uniform(kb, (1, fan_out), jnp.float32, -bound, bound)
        return w, b

    p = {}
    wc, bc = lin(ks[0], in_ch, num_ftrs)            # backbone stand-in (1x1 conv)
    p["res_conv_wt"] = wc.T                          # [F, C]   (W^T for transposed conv)
    p["res_conv_b"] = bc.reshape(num_ftrs, 1)        # [F, 1]
    w, b = lin(ks[1], num_ftrs, num_ftrs)            # res_l1
    p["res_l1_w"], p["res_l1_b"] = w.astype(jnp.bfloat16), b
    w, b = lin(ks[2], num_ftrs, out_dim)             # res_l2
    p["res_l2_w"], p["res_l2_b"] = w.astype(jnp.bfloat16), b
    w, b = lin(ks[3], bert_hidden, bert_hidden)      # bert_l1
    p["bert_l1_w"], p["bert_l1_b"] = w.astype(jnp.bfloat16), b
    w, b = lin(ks[4], bert_hidden, out_dim)          # bert_l2
    p["bert_l2_w"], p["bert_l2_b"] = w.astype(jnp.bfloat16), b
    # TODO(synk): on v7x the frozen head weights could additionally be fp8-quantized.
    return p


def image_encoder(params, xis, *, hw_block_target=512):
    B, C, H, W = xis.shape
    x3 = xis.reshape(B, C, H * W)                    # free NCHW -> [B, C, HW]
    hw_block = _pick_hw_block(H * W, target=hw_block_target)
    h, zis = _image_encoder_call(params, x3, hw_block)
    return h, zis


def text_encoder(params, token_embeddings, attention_mask):
    # TODO(synk): the pretrained HuggingFace BERT encoder is not reproduced; its
    # last hidden states are taken as the input to the fused pooling+head kernel.
    B, S = attention_mask.shape
    mask_row = attention_mask.astype(jnp.float32).reshape(B, 1, S)
    z = _text_encoder_call(params, token_embeddings.astype(jnp.float32), mask_row)
    return z.astype(jnp.float16)                     # matches `.half()` output dtype


def model_clr_forward(params, xis, encoded_inputs):
    h, zis = image_encoder(params, xis)
    if encoded_inputs is not None:
        zls = text_encoder(params, encoded_inputs["token_embeddings"],
                           encoded_inputs["attention_mask"])
        return zis, zls
    return zis


# -----------------------------------------------------------------------------
# Pure-JAX reference (mirrors the kernels' dtype handling) for a tolerance check
# -----------------------------------------------------------------------------
def _forward_reference(params, xis, token_embeddings, attention_mask):
    f32 = lambda a: a.astype(jnp.float32)
    B, C, H, W = xis.shape
    x = xis.reshape(B, C, H * W)
    feat = jnp.einsum("fc,bcs->bfs", params["res_conv_wt"], x) + params["res_conv_b"][None]
    feat = jnp.maximum(feat, 0.0)
    h = jnp.mean(feat, axis=2)
    x1 = jnp.maximum(f32(h.astype(jnp.bfloat16)) @ f32(params["res_l1_w"]) + params["res_l1_b"], 0.0)
    zis = f32(x1.astype(jnp.bfloat16)) @ f32(params["res_l2_w"]) + params["res_l2_b"]

    m = attention_mask.astype(jnp.float32)
    summed = jnp.einsum("bs,bsh->bh", m, token_embeddings.astype(jnp.float32))
    denom = jnp.maximum(jnp.sum(m, axis=1, keepdims=True), 1e-9)
    sent = (summed / denom).astype(jnp.bfloat16)
    t1 = jnp.maximum(f32(sent) @ f32(params["bert_l1_w"]) + params["bert_l1_b"], 0.0)
    zls = f32(t1.astype(jnp.bfloat16)) @ f32(params["bert_l2_w"]) + params["bert_l2_b"]
    return zis, zls.astype(jnp.float16)


# -----------------------------------------------------------------------------
if __name__ == "__main__":
    B, C, H, W = 8, 4, 32, 32                 # HW = 1024 -> two 512-lane spatial tiles
    S, HID, NUM_FTRS, OUT_DIM = 16, 768, 512, 128

    key = jax.random.PRNGKey(0)
    kp, kx, kt = jax.random.split(key, 3)

    params = init_params(kp, in_ch=C, num_ftrs=NUM_FTRS, bert_hidden=HID, out_dim=OUT_DIM)
    xis = jax.random.normal(kx, (B, C, H, W), jnp.float32)
    token_embeddings = jax.random.normal(kt, (B, S, HID), jnp.float32)
    lengths = (jnp.arange(B) % S) + 3
    attention_mask = (jnp.arange(S)[None, :] < lengths[:, None]).astype(jnp.int32)

    encoded_inputs = {"token_embeddings": token_embeddings,
                      "attention_mask": attention_mask}

    fwd = jax.jit(model_clr_forward)
    zis, zls = fwd(params, xis, encoded_inputs)
    jax.block_until_ready((zis, zls))

    assert zis.shape == (B, OUT_DIM) and zis.dtype == jnp.float32
    assert zls.shape == (B, OUT_DIM) and zls.dtype == jnp.float16
    assert bool(jnp.all(jnp.isfinite(zis)))
    assert bool(jnp.all(jnp.isfinite(zls.astype(jnp.float32))))

    zis_ref, zls_ref = _forward_reference(params, xis, token_embeddings, attention_mask)
    assert float(jnp.max(jnp.abs(zis - zis_ref))) < 2e-2
    assert float(jnp.max(jnp.abs(zls.astype(jnp.float32) - zls_ref.astype(jnp.float32)))) < 2e-2

    print("KERNEL_OK")
</pallas_src>

<mosaic_0001>
module attributes {stable_mosaic.version = 11 : i64} {
  func.func @_image_encoder_kernel(%arg0: i32, %arg1: i32, %arg2: memref<1x4x512xf32, #tpu.memory_space<vmem>>, %arg3: memref<512x4xf32, #tpu.memory_space<vmem>>, %arg4: memref<512x1xf32, #tpu.memory_space<vmem>>, %arg5: memref<512x512xbf16, #tpu.memory_space<vmem>>, %arg6: memref<1x512xf32, #tpu.memory_space<vmem>>, %arg7: memref<512x128xbf16, #tpu.memory_space<vmem>>, %arg8: memref<1x128xf32, #tpu.memory_space<vmem>>, %arg9: memref<1x1x512xf32, #tpu.memory_space<vmem>>, %arg10: memref<1x1x128xf32, #tpu.memory_space<vmem>>) attributes {dimension_semantics = [#tpu.dimension_semantics<parallel>, #tpu.dimension_semantics<arbitrary>], iteration_bounds = array<i64: 8, 2>, scalar_prefetch = 0 : i64, scratch_operands = 0 : i64, tpu.core_type = #tpu.core_type<tc>, window_params = [{transform_indices = @transform_0, window_bounds = array<i64: 1, 4, 512>}, {pipeline_mode = #tpu.pipeline_mode<synchronous>, transform_indices = @transform_1, window_bounds = array<i64: 512, 4>}, {pipeline_mode = #tpu.pipeline_mode<synchronous>, transform_indices = @transform_2, window_bounds = array<i64: 512, 1>}, {pipeline_mode = #tpu.pipeline_mode<synchronous>, transform_indices = @transform_3, window_bounds = array<i64: 512, 512>}, {pipeline_mode = #tpu.pipeline_mode<synchronous>, transform_indices = @transform_4, window_bounds = array<i64: 1, 512>}, {pipeline_mode = #tpu.pipeline_mode<synchronous>, transform_indices = @transform_5, window_bounds = array<i64: 512, 128>}, {pipeline_mode = #tpu.pipeline_mode<synchronous>, transform_indices = @transform_6, window_bounds = array<i64: 1, 128>}, {transform_indices = @transform_7, window_bounds = array<i64: 1, 1, 512>}, {transform_indices = @transform_8, window_bounds = array<i64: 1, 1, 128>}]} {
    %c0_i32 = arith.constant 0 : i32
    %0 = arith.cmpi eq, %arg1, %c0_i32 : i32
    %1 = arith.extui %0 : i1 to i32
    %c0_i32_0 = arith.constant 0 : i32
    %2 = arith.cmpi ne, %1, %c0_i32_0 : i32
    scf.if %2 {
      %cst_17 = arith.constant 0.000000e+00 : f32
      %23 = vector.broadcast %cst_17 : f32 to vector<1x512xf32>
      %c0_18 = arith.constant 0 : index
      %c0_19 = arith.constant 0 : index
      %c0_20 = arith.constant 0 : index
      %24 = vector.load %arg9[%c0_18, %c0_19, %c0_20] : memref<1x1x512xf32, #tpu.memory_space<vmem>>, vector<1x1x512xf32>
      %25 = vector.shape_cast %24 : vector<1x1x512xf32> to vector<1x512xf32>
      %26 = vector.shape_cast %23 : vector<1x512xf32> to vector<1x1x512xf32>
      tpu.vector_store %arg9[%c0_18, %c0_19, %c0_20], %26 {strides = array<i32>} : memref<1x1x512xf32, #tpu.memory_space<vmem>>, vector<1x1x512xf32>,
    } else {
    }
    %c0 = arith.constant 0 : index
    %c0_1 = arith.constant 0 : index
    %c0_2 = arith.constant 0 : index
    %3 = vector.load %arg2[%c0, %c0_1, %c0_2] : memref<1x4x512xf32, #tpu.memory_space<vmem>>, vector<1x4x512xf32>
    %4 = vector.shape_cast %3 : vector<1x4x512xf32> to vector<4x512xf32>
    %c0_3 = arith.constant 0 : index
    %c0_4 = arith.constant 0 : index
    %5 = vector.load %arg3[%c0_3, %c0_4] : memref<512x4xf32, #tpu.memory_space<vmem>>, vector<512x4xf32>
    %cst = arith.constant dense<0.000000e+00> : vector<512x512xf32>
    %6 = tpu.matmul %5, %4, %cst {dimension_numbers = #tpu.dot_dimension_numbers<[1], [0], [0], [1], [0, 0, 1, 1], [], []>} : vector<512x4xf32>, vector<4x512xf32>, vector<512x512xf32> -> vector<512x512xf32>
    %c0_5 = arith.constant 0 : index
    %c0_6 = arith.constant 0 : index
    %7 = vector.load %arg4[%c0_5, %c0_6] : memref<512x1xf32, #tpu.memory_space<vmem>>, vector<512x1xf32>
    %8 = vector.broadcast %7 : vector<512x1xf32> to vector<512x512xf32>
    %9 = arith.addf %6, %8 : vector<512x512xf32>
    %cst_7 = arith.constant 0.000000e+00 : f32
    %10 = vector.broadcast %cst_7 : f32 to vector<512x512xf32>
    %11 = arith.maximumf %9, %10 : vector<512x512xf32>
    %cst_8 = arith.constant 9.765625E-4 : f32
    %12 = vector.broadcast %cst_8 : f32 to vector<1x512xf32>
    %cst_9 = arith.constant dense<0.000000e+00> : vector<1x512xf32>
    %13 = tpu.matmul %12, %11, %cst_9 {dimension_numbers = #tpu.dot_dimension_numbers<[1], [1], [0], [0], [0, 0, 1, 0], [], []>} : vector<1x512xf32>, vector<512x512xf32>, vector<1x512xf32> -> vector<1x512xf32>
    %c0_10 = arith.constant 0 : index
    %c0_11 = arith.constant 0 : index
    %c0_12 = arith.constant 0 : index
    %14 = vector.load %arg9[%c0_10, %c0_11, %c0_12] : memref<1x1x512xf32, #tpu.memory_space<vmem>>, vector<1x1x512xf32>
    %15 = vector.shape_cast %14 : vector<1x1x512xf32> to vector<1x512xf32>
    %16 = arith.addf %15, %13 : vector<1x512xf32>
    %c0_13 = arith.constant 0 : index
    %c0_14 = arith.constant 0 : index
    %c0_15 = arith.constant 0 : index
    %17 = vector.load %arg9[%c0_13, %c0_14, %c0_15] : memref<1x1x512xf32, #tpu.memory_space<vmem>>, vector<1x1x512xf32>
    %18 = vector.shape_cast %17 : vector<1x1x512xf32> to vector<1x512xf32>
    %19 = vector.shape_cast %16 : vector<1x512xf32> to vector<1x1x512xf32>
    tpu.vector_store %arg9[%c0_13, %c0_14, %c0_15], %19 {strides = array<i32>} : memref<1x1x512xf32, #tpu.memory_space<vmem>>, vector<1x1x512xf32>,
    %c1_i32 = arith.constant 1 : i32
    %20 = arith.cmpi eq, %arg1, %c1_i32 : i32
    %21 = arith.extui %20 : i1 to i32
    %c0_i32_16 = arith.constant 0 : i32
    %22 = arith.cmpi ne, %21, %c0_i32_16 : i32
    scf.if %22 {
      %c0_17 = arith.constant 0 : index
      %c0_18 = arith.constant 0 : index
      %c0_19 = arith.constant 0 : index
      %23 = vector.load %arg9[%c0_17, %c0_18, %c0_19] : memref<1x1x512xf32, #tpu.memory_space<vmem>>, vector<1x1x512xf32>
      %24 = vector.shape_cast %23 : vector<1x1x512xf32> to vector<1x512xf32>
      %25 = arith.truncf %24 : vector<1x512xf32> to vector<1x512xbf16>
      %c0_20 = arith.constant 0 : index
      %c0_21 = arith.constant 0 : index
      %26 = vector.load %arg5[%c0_20, %c0_21] : memref<512x512xbf16, #tpu.memory_space<vmem>>, vector<512x512xbf16>
      %cst_22 = arith.constant dense<0.000000e+00> : vector<1x512xf32>
      %27 = tpu.matmul %25, %26, %cst_22 {dimension_numbers = #tpu.dot_dimension_numbers<[1], [0], [0], [1], [0, 0, 1, 1], [], []>} : vector<1x512xbf16>, vector<512x512xbf16>, vector<1x512xf32> -> vector<1x512xf32>
      %c0_23 = arith.constant 0 : index
      %c0_24 = arith.constant 0 : index
      %28 = vector.load %arg6[%c0_23, %c0_24] : memref<1x512xf32, #tpu.memory_space<vmem>>, vector<1x512xf32>
      %29 = arith.addf %27, %28 : vector<1x512xf32>
      %cst_25 = arith.constant 0.000000e+00 : f32
      %30 = vector.broadcast %cst_25 : f32 to vector<1x512xf32>
      %31 = arith.maximumf %29, %30 : vector<1x512xf32>
      %32 = arith.truncf %31 : vector<1x512xf32> to vector<1x512xbf16>
      %c0_26 = arith.constant 0 : index
      %c0_27 = arith.constant 0 : index
      %33 = vector.load %arg7[%c0_26, %c0_27] : memref<512x128xbf16, #tpu.memory_space<vmem>>, vector<512x128xbf16>
      %cst_28 = arith.constant dense<0.000000e+00> : vector<1x128xf32>
      %34 = tpu.matmul %32, %33, %cst_28 {dimension_numbers = #tpu.dot_dimension_numbers<[1], [0], [0], [1], [0, 0, 1, 1], [], []>} : vector<1x512xbf16>, vector<512x128xbf16>, vector<1x128xf32> -> vector<1x128xf32>
      %c0_29 = arith.constant 0 : index
      %c0_30 = arith.constant 0 : index
      %35 = vector.load %arg8[%c0_29, %c0_30] : memref<1x128xf32, #tpu.memory_space<vmem>>, vector<1x128xf32>
      %36 = arith.addf %34, %35 : vector<1x128xf32>
      %c0_31 = arith.constant 0 : index
      %c0_32 = arith.constant 0 : index
      %c0_33 = arith.constant 0 : index
      %37 = vector.load %arg10[%c0_31, %c0_32, %c0_33] : memref<1x1x128xf32, #tpu.memory_space<vmem>>, vector<1x1x128xf32>
      %38 = vector.shape_cast %37 : vector<1x1x128xf32> to vector<1x128xf32>
      %39 = vector.shape_cast %36 : vector<1x128xf32> to vector<1x1x128xf32>
      tpu.vector_store %arg10[%c0_31, %c0_32, %c0_33], %39 {strides = array<i32>} : memref<1x1x128xf32, #tpu.memory_space<vmem>>, vector<1x1x128xf32>,
    } else {
    }
    return
  }
  func.func @transform_0(%arg0: i32, %arg1: i32) -> (i32, i32, i32) {
    %c0_i32 = arith.constant 0 : i32
    %c0_i32_0 = arith.constant 0 : i32
    return %arg0, %c0_i32, %arg1 : i32, i32, i32
  }
  func.func @transform_1(%arg0: i32, %arg1: i32) -> (i32, i32) {
    %c0_i32 = arith.constant 0 : i32
    %c0_i32_0 = arith.constant 0 : i32
    %c0_i32_1 = arith.constant 0 : i32
    return %c0_i32, %c0_i32_0 : i32, i32
  }
  func.func @transform_2(%arg0: i32, %arg1: i32) -> (i32, i32) {
    %c0_i32 = arith.constant 0 : i32
    %c0_i32_0 = arith.constant 0 : i32
    %c0_i32_1 = arith.constant 0 : i32
    return %c0_i32, %c0_i32_0 : i32, i32
  }
  func.func @transform_3(%arg0: i32, %arg1: i32) -> (i32, i32) {
    %c0_i32 = arith.constant 0 : i32
    %c0_i32_0 = arith.constant 0 : i32
    %c0_i32_1 = arith.constant 0 : i32
    return %c0_i32, %c0_i32_0 : i32, i32
  }
  func.func @transform_4(%arg0: i32, %arg1: i32) -> (i32, i32) {
    %c0_i32 = arith.constant 0 : i32
    %c0_i32_0 = arith.constant 0 : i32
    %c0_i32_1 = arith.constant 0 : i32
    return %c0_i32, %c0_i32_0 : i32, i32
  }
  func.func @transform_5(%arg0: i32, %arg1: i32) -> (i32, i32) {
    %c0_i32 = arith.constant 0 : i32
    %c0_i32_0 = arith.constant 0 : i32
    %c0_i32_1 = arith.constant 0 : i32
    return %c0_i32, %c0_i32_0 : i32, i32
  }
  func.func @transform_6(%arg0: i32, %arg1: i32) -> (i32, i32) {
    %c0_i32 = arith.constant 0 : i32
    %c0_i32_0 = arith.constant 0 : i32
    %c0_i32_1 = arith.constant 0 : i32
    return %c0_i32, %c0_i32_0 : i32, i32
  }
  func.func @transform_7(%arg0: i32, %arg1: i32) -> (i32, i32, i32) {
    %c0_i32 = arith.constant 0 : i32
    %c0_i32_0 = arith.constant 0 : i32
    %c0_i32_1 = arith.constant 0 : i32
    return %arg0, %c0_i32, %c0_i32_0 : i32, i32, i32
  }
  func.func @transform_8(%arg0: i32, %arg1: i32) -> (i32, i32, i32) {
    %c0_i32 = arith.constant 0 : i32
    %c0_i32_0 = arith.constant 0 : i32
    %c0_i32_1 = arith.constant 0 : i32
    return %arg0, %c0_i32, %c0_i32_0 : i32, i32, i32
  }
}

module attributes {stable_mosaic.version = 11 : i64} {
  func.func @_text_encoder_kernel(%arg0: i32, %arg1: memref<1x16x768xf32, #tpu.memory_space<vmem>>, %arg2: memref<1x1x16xf32, #tpu.memory_space<vmem>>, %arg3: memref<768x768xbf16, #tpu.memory_space<vmem>>, %arg4: memref<1x768xf32, #tpu.memory_space<vmem>>, %arg5: memref<768x128xbf16, #tpu.memory_space<vmem>>, %arg6: memref<1x128xf32, #tpu.memory_space<vmem>>, %arg7: memref<1x1x128xbf16, #tpu.memory_space<vmem>>) attributes {dimension_semantics = [#tpu.dimension_semantics<parallel>], iteration_bounds = array<i64: 8>, scalar_prefetch = 0 : i64, scratch_operands = 0 : i64, tpu.core_type = #tpu.core_type<tc>, window_params = [{transform_indices = @transform_0, window_bounds = array<i64: 1, 16, 768>}, {transform_indices = @transform_1, window_bounds = array<i64: 1, 1, 16>}, {pipeline_mode = #tpu.pipeline_mode<synchronous>, transform_indices = @transform_2, window_bounds = array<i64: 768, 768>}, {pipeline_mode = #tpu.pipeline_mode<synchronous>, transform_indices = @transform_3, window_bounds = array<i64: 1, 768>}, {pipeline_mode = #tpu.pipeline_mode<synchronous>, transform_indices = @transform_4, window_bounds = array<i64: 768, 128>}, {pipeline_mode = #tpu.pipeline_mode<synchronous>, transform_indices = @transform_5, window_bounds = array<i64: 1, 128>}, {transform_indices = @transform_6, window_bounds = array<i64: 1, 1, 128>}]} {
    %c0 = arith.constant 0 : index
    %c0_0 = arith.constant 0 : index
    %c0_1 = arith.constant 0 : index
    %0 = vector.load %arg1[%c0, %c0_0, %c0_1] : memref<1x16x768xf32, #tpu.memory_space<vmem>>, vector<1x16x768xf32>
    %1 = vector.shape_cast %0 : vector<1x16x768xf32> to vector<16x768xf32>
    %c0_2 = arith.constant 0 : index
    %c0_3 = arith.constant 0 : index
    %c0_4 = arith.constant 0 : index
    %2 = vector.load %arg2[%c0_2, %c0_3, %c0_4] : memref<1x1x16xf32, #tpu.memory_space<vmem>>, vector<1x1x16xf32>
    %3 = vector.shape_cast %2 : vector<1x1x16xf32> to vector<1x16xf32>
    %cst = arith.constant dense<0.000000e+00> : vector<1x768xf32>
    %4 = tpu.matmul %3, %1, %cst {dimension_numbers = #tpu.dot_dimension_numbers<[1], [0], [0], [1], [0, 0, 1, 1], [], []>} : vector<1x16xf32>, vector<16x768xf32>, vector<1x768xf32> -> vector<1x768xf32>
    %cst_5 = arith.constant dense<0.000000e+00> : vector<1xf32>
    %5 = vector.multi_reduction <add>, %3, %cst_5 [1] : vector<1x16xf32> to vector<1xf32>
    %6 = vector.shape_cast %5 : vector<1xf32> to vector<1x1xf32>
    %cst_6 = arith.constant 9.99999971E-10 : f32
    %7 = vector.broadcast %cst_6 : f32 to vector<1x1xf32>
    %8 = arith.maximumf %6, %7 : vector<1x1xf32>
    %9 = tpu.reciprocal %8 {approx = true} : vector<1x1xf32> -> vector<1x1xf32>
    %10 = vector.broadcast %9 : vector<1x1xf32> to vector<1x768xf32>
    %11 = arith.mulf %4, %10 : vector<1x768xf32>
    %12 = arith.truncf %11 : vector<1x768xf32> to vector<1x768xbf16>
    %c0_7 = arith.constant 0 : index
    %c0_8 = arith.constant 0 : index
    %13 = vector.load %arg3[%c0_7, %c0_8] : memref<768x768xbf16, #tpu.memory_space<vmem>>, vector<768x768xbf16>
    %cst_9 = arith.constant dense<0.000000e+00> : vector<1x768xf32>
    %14 = tpu.matmul %12, %13, %cst_9 {dimension_numbers = #tpu.dot_dimension_numbers<[1], [0], [0], [1], [0, 0, 1, 1], [], []>} : vector<1x768xbf16>, vector<768x768xbf16>, vector<1x768xf32> -> vector<1x768xf32>
    %c0_10 = arith.constant 0 : index
    %c0_11 = arith.constant 0 : index
    %15 = vector.load %arg4[%c0_10, %c0_11] : memref<1x768xf32, #tpu.memory_space<vmem>>, vector<1x768xf32>
    %16 = arith.addf %14, %15 : vector<1x768xf32>
    %cst_12 = arith.constant 0.000000e+00 : f32
    %17 = vector.broadcast %cst_12 : f32 to vector<1x768xf32>
    %18 = arith.maximumf %16, %17 : vector<1x768xf32>
    %19 = arith.truncf %18 : vector<1x768xf32> to vector<1x768xbf16>
    %c0_13 = arith.constant 0 : index
    %c0_14 = arith.constant 0 : index
    %20 = vector.load %arg5[%c0_13, %c0_14] : memref<768x128xbf16, #tpu.memory_space<vmem>>, vector<768x128xbf16>
    %cst_15 = arith.constant dense<0.000000e+00> : vector<1x128xf32>
    %21 = tpu.matmul %19, %20, %cst_15 {dimension_numbers = #tpu.dot_dimension_numbers<[1], [0], [0], [1], [0, 0, 1, 1], [], []>} : vector<1x768xbf16>, vector<768x128xbf16>, vector<1x128xf32> -> vector<1x128xf32>
    %c0_16 = arith.constant 0 : index
    %c0_17 = arith.constant 0 : index
    %22 = vector.load %arg6[%c0_16, %c0_17] : memref<1x128xf32, #tpu.memory_space<vmem>>, vector<1x128xf32>
    %23 = arith.addf %21, %22 : vector<1x128xf32>
    %24 = arith.truncf %23 : vector<1x128xf32> to vector<1x128xbf16>
    %c0_18 = arith.constant 0 : index
    %c0_19 = arith.constant 0 : index
    %c0_20 = arith.constant 0 : index
    %25 = vector.load %arg7[%c0_18, %c0_19, %c0_20] : memref<1x1x128xbf16, #tpu.memory_space<vmem>>, vector<1x1x128xbf16>
    %26 = vector.shape_cast %25 : vector<1x1x128xbf16> to vector<1x128xbf16>
    %27 = vector.shape_cast %24 : vector<1x128xbf16> to vector<1x1x128xbf16>
    tpu.vector_store %arg7[%c0_18, %c0_19, %c0_20], %27 {strides = array<i32>} : memref<1x1x128xbf16, #tpu.memory_space<vmem>>, vector<1x1x128xbf16>,
    return
  }
  func.func @transform_0(%arg0: i32) -> (i32, i32, i32) {
    %c0_i32 = arith.constant 0 : i32
    %c0_i32_0 = arith.constant 0 : i32
    %c0_i32_1 = arith.constant 0 : i32
    return %arg0, %c0_i32, %c0_i32_0 : i32, i32, i32
  }
  func.func @transform_1(%arg0: i32) -> (i32, i32, i32) {
    %c0_i32 = arith.constant 0 : i32
    %c0_i32_0 = arith.constant 0 : i32
    %c0_i32_1 = arith.constant 0 : i32
    return %arg0, %c0_i32, %c0_i32_0 : i32, i32, i32
  }
  func.func @transform_2(%arg0: i32) -> (i32, i32) {
    %c0_i32 = arith.constant 0 : i32
    %c0_i32_0 = arith.constant 0 : i32
    %c0_i32_1 = arith.constant 0 : i32
    return %c0_i32, %c0_i32_0 : i32, i32
  }
  func.func @transform_3(%arg0: i32) -> (i32, i32) {
    %c0_i32 = arith.constant 0 : i32
    %c0_i32_0 = arith.constant 0 : i32
    %c0_i32_1 = arith.constant 0 : i32
    return %c0_i32, %c0_i32_0 : i32, i32
  }
  func.func @transform_4(%arg0: i32) -> (i32, i32) {
    %c0_i32 = arith.constant 0 : i32
    %c0_i32_0 = arith.constant 0 : i32
    %c0_i32_1 = arith.constant 0 : i32
    return %c0_i32, %c0_i32_0 : i32, i32
  }
  func.func @transform_5(%arg0: i32) -> (i32, i32) {
    %c0_i32 = arith.constant 0 : i32
    %c0_i32_0 = arith.constant 0 : i32
    %c0_i32_1 = arith.constant 0 : i32
    return %c0_i32, %c0_i32_0 : i32, i32
  }
  func.func @transform_6(%arg0: i32) -> (i32, i32, i32) {
    %c0_i32 = arith.constant 0 : i32
    %c0_i32_0 = arith.constant 0 : i32
    %c0_i32_1 = arith.constant 0 : i32
    return %arg0, %c0_i32, %c0_i32_0 : i32, i32, i32
  }
}

</mosaic_0001>

<bundles_post_ra>
// kernel: model_clr_forward.2
= control target key start
LH: loop header
LB: loop body
LE: loop exit
PB: predicated region body
PF: predicated region fallthrough
CT: control target
= control target key end

     0   :  { %s6926_s0 = inlined_call_operand.vmem [shape: f32[8,4,1024], index: 0, kind: input, shape index: {}]   ;;  %s6927_s1 = inlined_call_operand.vmem [shape: f32[512,4], index: 1, kind: input, shape index: {}]   ;;  %s6928_s2 = inlined_call_operand.vmem [shape: f32[512,1], index: 2, kind: input, shape index: {}]   ;;  %s6929_s3 = inlined_call_operand.vmem [shape: bf16[512,512], index: 3, kind: input, shape index: {}]   ;;  %s6930_s4 = inlined_call_operand.vmem [shape: f32[1,512], index: 4, kind: input, shape index: {}]   ;;  %s6931_s5 = inlined_call_operand.vmem [shape: bf16[512,128], index: 5, kind: input, shape index: {}]   ;;  %s6932_s6 = inlined_call_operand.vmem [shape: f32[1,128], index: 6, kind: input, shape index: {}]   ;;  %s6933_s7 = inlined_call_operand.hbm [shape: f32[8,1,512], index: 7, kind: output, shape index: {0}]   ;;  %s6934_s8 = inlined_call_operand.hbm [shape: f32[8,1,128], index: 8, kind: output, shape index: {1}]  }
   0x1   :  { %6953 = sst [smem:[#allocation34_spill]] %s6926_s0 }
   0x2   :  { %6954 = sst [smem:[#allocation35_spill]] %s6927_s1 }
   0x3   :  { %14 = vsyncpa [#allocation3], 0 }
   0x4   :  { %16 = vsyncpa [#allocation3 + $0x1], 0 }
   0x5   :  { %17 = vsyncpa [#allocation5], 0 }
   0x6   :  { %19 = vsyncpa [#allocation5 + $0x1], 0  ;;  %s5063_s27 = smov 0   ;;  %s5065_s28 = smov 0  }
   0x7   :  { %s5067_s29 = smov 0   ;;  %s5069_s30 = smov 0  }
   0x8   :  { %s5071_s9 = smov 0   ;;  %s5073_s10 = smov 0  }
   0x9   :  { %s5075_s11 = smov 0   ;;  %s5077_s12 = smov 0  }
   0xa LB: > { %6955 = sst [smem:[#allocation8_spill]] %s5005_s11  ;;  %s3948_s13 = sadd.s32 4294967295, %s5009_s12   ;;  %s5009_s12 = sphi %s5077_s12, %s25_s12   ;;  %s5005_s11 = sphi %s5075_s11, %s7013_s11   ;;  %s5001_s10 = sphi %s5073_s10, %s7018_s10   ;;  %s4997_s9 = sphi %s5071_s9, %s7011_s9   ;;  %s4993_s30 = sphi %s5069_s30, %s7017_s30   ;;  %s4989_s29 = sphi %s5067_s29, %s7016_s29   ;;  %s4985_s28 = sphi %s5065_s28, %s7015_s28   ;;  %s4981_s27 = sphi %s5063_s27, %s7014_s27  }
   0xb   : > { %s3949_s14 = sadd.s32 4294967294, %s5009_s12   ;;  %s34_s15 = sadd.s32 1, %s5001_s10 }
   0xc   : > { %p35_p0 = scmp.ge.s32.totalorder %s34_s15, 2  ;;  %s37_s16 = sadd.s32 1, %s5005_s11 }
   0xd   : > { %p208_p1 = scmp.ne.s32.totalorder %s4989_s29, %s4985_s28  ;;  %p209_p2 = scmp.eq.s32.totalorder %s3948_s13, 15 }
   0xe   : > { %s7020_s15 = smov (%p35_p0, %s34_s15), 0  ;;  %s7022_s16 = smov (!%p35_p0, %s37_s16), %s5005_s11 }
   0xf   : > { %6956 = sst [smem:[#allocation9_spill]] %s7020_s15  ;;  %p5112_p3 = por %p209_p2, %p208_p1 }
  0x10   : > { %p214_p4 = scmp.ne.s32.totalorder %s4985_s28, %s4981_s27  ;;  %p39_p5 = scmp.ge.s32.totalorder %s7022_s16, 8 }
  0x11   : > { %p215_p6 = scmp.eq.s32.totalorder %s3949_s14, 15  ;;  %p3952_p7 = scmp.ge.s32.totalorder %s5009_s12, 1 }
  0x12   : > { %p290_p8 = scmp.lt.s32.totalorder %s5009_s12, 17  ;;  %s7024_s16 = smov (%p39_p5, %s7022_s16), 0 }
  0x13   : > { %6958 = sst [smem:[#allocation10_spill]] %s7024_s16  ;;  %p5122_p9 = por %p215_p6, %p214_p4 }
  0x14   : > { %p291_p10 = pnand %p3952_p7, %p290_p8  ;;  %s195_s19 = ssub.s32 %s5005_s11, %s7024_s16 }
  0x15   : > { %s198_s20 = sadd.s32 1, %s4989_s29  ;;  %p196_p11 = scmp.eq.s32.totalorder %s195_s19, 0 }
  0x16   : > { %294 = sbr.rel (%p291_p10) target bundleno = 1446 (0x5a6), region = 48 }
  0x17   : > { %s5130_s21 = scalar_select %p196_p11, %s4989_s29, %s198_s20  }
  0x1d   : > { %s5133_s22 = sand.u32 1, %s4985_s28   ;;  %s3954_s23 = sshll.u32 %s4993_s30, 2 }
  0x1e   : > { %s3953_s24 = sshll.u32 %s5133_s22, 2  ;;  %p333_p12 = scmp.lt.s32.totalorder %s4997_s9, 7 }
  0x1f   : > { %p335_p13 = scmp.lt.s32.totalorder %s3954_s23, 7  ;;  %s6960_s0 = sld [smem:[#allocation34_spill]] }
  0x20   : > { %s334_s25 = scalar_select %p333_p12, %s4997_s9, 7 }
  0x21   : > { %s7026_s23 = smov (!%p335_p13, %s3954_s23), 7  ;;  %s5142_s15 = scalar_lea.vmem [#allocation2], %s3953_s24 }
  0x22   : > { %s3955_s26 = sshll.u32 %s334_s25, 3  ;;  %p3957_p0 = scmp.ne.s32.totalorder %s4993_s30, 0 }
  0x23   : > { %s338_s13 = sadd.s32 %s3955_s26, %s7026_s23  ;;  %v347_v0 = vlaneseq (!%p3957_p0)  ;;  %v5011_v1 = vmov (!%p3957_p0), 0.0  }
  0x24   : > { %s3956_s14 = sshll.u32 %s338_s13, 2  ;;  %346 = sbr.rel (%p3957_p0) target bundleno = 43 (0x2b), region = 52 }
  0x25   : > { %s340_s16 = scalar_lea.vmem %s6960_s0, %s3956_s14  ;;  %vm349_vm0 = vcmp.lt.s32.totalorder (!%p3957_p0), %v347_v0, 512 }
  0x26   : > { %351 = vst.msk [vmem:[%s5142_s15] sm:$0xf] (!%p3957_p0), %vm349_vm0, %v5011_v1 }
  0x2b PF: > { %v352_v2 = vld [vmem:[%s340_s16] sm:$0xff]  ;;  %vm999_vm1 = vcmask 1043456   ;;  %v353_v3 = vld [vmem:[%s340_s16 + $0x8] sm:$0xff]  ;;  %v5012_v6 = vmov 0.0   ;;  %s6961_s1 = sld [smem:[#allocation35_spill]]  ;;  %vm806_vm2 = vcmask 31744  }
  0x2c   : > { %v804_v4 = vcombine.high %v352_v2, %v352_v2  ;;  %v805_v5 = vcombine.high %v353_v3, %v353_v3  ;;  %1072 = vmatprep.mubr.f32.mxu0 %v5012_v6  ;;  %1521 = vmatprep.mubr.f32.mxu1 %v5012_v6  ;;  %v5013_v8 = vmov 0   ;;  %v418_v10 = vld [vmem:[%s6928_s2] sm:$0xff]  ;;  %v419_v12 = vld [vmem:[%s6928_s2 + $0x8] sm:$0xff]  ;;  %v420_v15 = vld [vmem:[%s6928_s2 + $0x10] sm:$0xff]  ;;  %p4090_p1 = scmp.ne.s32.totalorder %s4993_s30, 1 }
  0x2d   : > { %4655 = vset.pattern.permute.xlu0 %v5013_v8  ;;  %4656 = vset.pattern.permute.xlu1 %v5013_v8  ;;  %v450_v11 = vld [vmem:[%s6928_s2 + $0x100] sm:$0xff]  ;;  %v451_v14 = vld [vmem:[%s6928_s2 + $0x108] sm:$0xff]  ;;  %v421_v17 = vld [vmem:[%s6928_s2 + $0x18] sm:$0xff]  ;;  %s7009_s30 = scalar_lea.vmem (!%p4090_p1), [#allocation4], %s5133_s22 }
  0x2e   : > { %3958 = vmatprep.subr.msk.mxu0 %vm999_vm1, %v804_v4  ;;  %4024 = vmatprep.subr.msk.mxu1 %vm999_vm1, %v805_v5  ;;  %v452_v18 = vld [vmem:[%s6928_s2 + $0x110] sm:$0xff]  ;;  %v453_v20 = vld [vmem:[%s6928_s2 + $0x118] sm:$0xff]  ;;  %v422_v21 = vld [vmem:[%s6928_s2 + $0x20] sm:$0xff] }
  0x2f   : > { %3959 = vmatpush1.msk.msra.mxu0 %vm999_vm1, %v352_v2  ;;  %4025 = vmatpush1.msk.msra.mxu1 %vm999_vm1, %v353_v3  ;;  %v423_v23 = vld [vmem:[%s6928_s2 + $0x28] sm:$0xff]  ;;  %v454_v24 = vld [vmem:[%s6928_s2 + $0x120] sm:$0xff]  ;;  %v424_v27 = vld [vmem:[%s6928_s2 + $0x30] sm:$0xff] }
  0x30   : > { %484 = vperm.xlu0 %4655, %v418_v10   ;;  %644 = vperm.xlu1 %4656, %v450_v11   ;;  %v455_v26 = vld [vmem:[%s6928_s2 + $0x128] sm:$0xff]  ;;  %v425_v29 = vld [vmem:[%s6928_s2 + $0x38] sm:$0xff]  ;;  %v456_v30 = vld [vmem:[%s6928_s2 + $0x130] sm:$0xff] }
  0x31   : > { %v354_v7 = vld [vmem:[%s6961_s1] sm:$0xff]  ;;  %v355_v9 = vld [vmem:[%s6961_s1 + $0x8] sm:$0xff]  ;;  %v356_v13 = vld [vmem:[%s6961_s1 + $0x10] sm:$0xff] }
  0x32   : > { %3960 = vmatmul.mubr.msk.f32.vlgmr.msra.gmra.mrb[0].mxu0 %vm806_vm2, %v354_v7  ;;  %4026 = vmatmul.mubr.msk.f32.vlgmr.msra.gmra.mrb[0].mxu1 %vm806_vm2, %v354_v7  ;;  %v357_v16 = vld [vmem:[%s6961_s1 + $0x18] sm:$0xff]  ;;  %v358_v19 = vld [vmem:[%s6961_s1 + $0x20] sm:$0xff]  ;;  %v359_v22 = vld [vmem:[%s6961_s1 + $0x28] sm:$0xff] }
  0x33   : > { %1078 = vmatprep.mubr.f32.mxu0 %v5012_v6  ;;  %1527 = vmatprep.mubr.f32.mxu1 %v5012_v6  ;;  %v360_v25 = vld [vmem:[%s6961_s1 + $0x30] sm:$0xff]  ;;  %v361_v28 = vld [vmem:[%s6961_s1 + $0x38] sm:$0xff]  ;;  %v362_v31 = vld [vmem:[%s6961_s1 + $0x40] sm:$0xff] }
  0x34   : > { %489 = vperm.xlu0 %4655, %v419_v12   ;;  %649 = vperm.xlu1 %4656, %v451_v14   ;;  %v457_v32 = vld [vmem:[%s6928_s2 + $0x138] sm:$0xff]  ;;  %v426_v33 = vld [vmem:[%s6928_s2 + $0x40] sm:$0xff]  ;;  %v363_v34 = vld [vmem:[%s6961_s1 + $0x48] sm:$0xff] }
  0x35   : > { %v427_v35 = vld [vmem:[%s6928_s2 + $0x48] sm:$0xff]  ;;  %v458_v36 = vld [vmem:[%s6928_s2 + $0x140] sm:$0xff]  ;;  %v364_v37 = vld [vmem:[%s6961_s1 + $0x50] sm:$0xff] }
  0x36   : > { %3961 = vmatmul.mubr.msk.f32.gmra.mrb[2].mxu0 %vm806_vm2, %v355_v9  ;;  %4027 = vmatmul.mubr.msk.f32.gmra.mrb[2].mxu1 %vm806_vm2, %v355_v9  ;;  %v459_v38 = vld [vmem:[%s6928_s2 + $0x148] sm:$0xff]  ;;  %v428_v39 = vld [vmem:[%s6928_s2 + $0x50] sm:$0xff]  ;;  %v365_v40 = vld [vmem:[%s6961_s1 + $0x58] sm:$0xff] }
  0x37   : > { %1084 = vmatprep.mubr.f32.mxu0 %v5012_v6  ;;  %1533 = vmatprep.mubr.f32.mxu1 %v5012_v6  ;;  %v429_v41 = vld [vmem:[%s6928_s2 + $0x58] sm:$0xff]  ;;  %v460_v42 = vld [vmem:[%s6928_s2 + $0x150] sm:$0xff]  ;;  %v366_v43 = vld [vmem:[%s6961_s1 + $0x60] sm:$0xff] }
  0x38   : > { %494 = vperm.xlu0 %4655, %v420_v15   ;;  %499 = vperm.xlu1 %4656, %v421_v17   ;;  %v461_v44 = vld [vmem:[%s6928_s2 + $0x158] sm:$0xff]  ;;  %v430_v45 = vld [vmem:[%s6928_s2 + $0x60] sm:$0xff]  ;;  %v367_v46 = vld [vmem:[%s6961_s1 + $0x68] sm:$0xff] }
  0x39   : > { %v431_v47 = vld [vmem:[%s6928_s2 + $0x68] sm:$0xff]  ;;  %v462_v48 = vld [vmem:[%s6928_s2 + $0x160] sm:$0xff]  ;;  %v368_v49 = vld [vmem:[%s6961_s1 + $0x70] sm:$0xff] }
  0x3a   : > { %3962 = vmatmul.mubr.msk.f32.gmra.mrb[4].mxu0 %vm806_vm2, %v356_v13  ;;  %4028 = vmatmul.mubr.msk.f32.gmra.mrb[4].mxu1 %vm806_vm2, %v356_v13  ;;  %v463_v50 = vld [vmem:[%s6928_s2 + $0x168] sm:$0xff]  ;;  %v432_v51 = vld [vmem:[%s6928_s2 + $0x70] sm:$0xff]  ;;  %v369_v52 = vld [vmem:[%s6961_s1 + $0x78] sm:$0xff] }
  0x3b   : > { %1090 = vmatprep.mubr.f32.mxu0 %v5012_v6  ;;  %1539 = vmatprep.mubr.f32.mxu1 %v5012_v6  ;;  %v433_v53 = vld [vmem:[%s6928_s2 + $0x78] sm:$0xff]  ;;  %v464_v54 = vld [vmem:[%s6928_s2 + $0x170] sm:$0xff]  ;;  %v370_v55 = vld [vmem:[%s6961_s1 + $0x80] sm:$0xff] }
  0x3c   : > { %654 = vperm.xlu0 %4655, %v452_v18   ;;  %659 = vperm.xlu1 %4656, %v453_v20   ;;  %v465_v56 = vld [vmem:[%s6928_s2 + $0x178] sm:$0xff]  ;;  %v434_v57 = vld [vmem:[%s6928_s2 + $0x80] sm:$0xff]  ;;  %v371_v58 = vld [vmem:[%s6961_s1 + $0x88] sm:$0xff] }
  0x3d   : > { %v435_v59 = vld [vmem:[%s6928_s2 + $0x88] sm:$0xff]  ;;  %v466_v60 = vld [vmem:[%s6928_s2 + $0x180] sm:$0xff]  ;;  %v372_v61 = vld [vmem:[%s6961_s1 + $0x90] sm:$0xff] }
  0x3e   : > { %3963 = vmatmul.mubr.msk.f32.gmra.mrb[6].mxu0 %vm806_vm2, %v357_v16  ;;  %4029 = vmatmul.mubr.msk.f32.gmra.mrb[6].mxu1 %vm806_vm2, %v357_v16  ;;  %v467_v62 = vld [vmem:[%s6928_s2 + $0x188] sm:$0xff]  ;;  %v436_v63 = vld [vmem:[%s6928_s2 + $0x90] sm:$0xff]  ;;  %v373_v0 = vld [vmem:[%s6961_s1 + $0x98] sm:$0xff] }
  0x3f   : > { %1096 = vmatprep.mubr.f32.mxu0 %v5012_v6  ;;  %1545 = vmatprep.mubr.f32.mxu1 %v5012_v6  ;;  %v437_v1 = vld [vmem:[%s6928_s2 + $0x98] sm:$0xff]  ;;  %v468_v2 = vld [vmem:[%s6928_s2 + $0x190] sm:$0xff]  ;;  %v374_v3 = vld [vmem:[%s6961_s1 + $0xa0] sm:$0xff] }
  0x40   : > { %504 = vperm.xlu0 %4655, %v422_v21   ;;  %509 = vperm.xlu1 %4656, %v423_v23   ;;  %v469_v4 = vld [vmem:[%s6928_s2 + $0x198] sm:$0xff]  ;;  %v438_v5 = vld [vmem:[%s6928_s2 + $0xa0] sm:$0xff]  ;;  %v375_v7 = vld [vmem:[%s6961_s1 + $0xa8] sm:$0xff] }
  0x41   : > { %v439_v8 = vld [vmem:[%s6928_s2 + $0xa8] sm:$0xff]  ;;  %v470_v9 = vld [vmem:[%s6928_s2 + $0x1a0] sm:$0xff]  ;;  %v376_v10 = vld [vmem:[%s6961_s1 + $0xb0] sm:$0xff] }
  0x42   : > { %3964 = vmatmul.mubr.msk.f32.gmra.mrb[8].mxu0 %vm806_vm2, %v358_v19  ;;  %4030 = vmatmul.mubr.msk.f32.gmra.mrb[8].mxu1 %vm806_vm2, %v358_v19  ;;  %v471_v11 = vld [vmem:[%s6928_s2 + $0x1a8] sm:$0xff]  ;;  %v440_v12 = vld [vmem:[%s6928_s2 + $0xb0] sm:$0xff]  ;;  %v377_v13 = vld [vmem:[%s6961_s1 + $0xb8] sm:$0xff] }
  0x43   : > { %1102 = vmatprep.mubr.f32.mxu0 %v5012_v6  ;;  %1551 = vmatprep.mubr.f32.mxu1 %v5012_v6  ;;  %v441_v14 = vld [vmem:[%s6928_s2 + $0xb8] sm:$0xff]  ;;  %v472_v15 = vld [vmem:[%s6928_s2 + $0x1b0] sm:$0xff]  ;;  %v378_v16 = vld [vmem:[%s6961_s1 + $0xc0] sm:$0xff] }
  0x44   : > { %664 = vperm.xlu0 %4655, %v454_v24   ;;  %669 = vperm.xlu1 %4656, %v455_v26   ;;  %v473_v17 = vld [vmem:[%s6928_s2 + $0x1b8] sm:$0xff]  ;;  %v442_v18 = vld [vmem:[%s6928_s2 + $0xc0] sm:$0xff]  ;;  %v379_v19 = vld [vmem:[%s6961_s1 + $0xc8] sm:$0xff] }
  0x45   : > { %v443_v20 = vld [vmem:[%s6928_s2 + $0xc8] sm:$0xff]  ;;  %v474_v21 = vld [vmem:[%s6928_s2 + $0x1c0] sm:$0xff]  ;;  %v444_v24 = vld [vmem:[%s6928_s2 + $0xd0] sm:$0xff] }
  0x46   : > { %3965 = vmatmul.mubr.msk.f32.gmra.mrb[10].mxu0 %vm806_vm2, %v359_v22  ;;  %4031 = vmatmul.mubr.msk.f32.gmra.mrb[10].mxu1 %vm806_vm2, %v359_v22  ;;  %v380_v22 = vld [vmem:[%s6961_s1 + $0xd0] sm:$0xff]  ;;  %v475_v23 = vld [vmem:[%s6928_s2 + $0x1c8] sm:$0xff]  ;;  %v445_v26 = vld [vmem:[%s6928_s2 + $0xd8] sm:$0xff] }
  0x47   : > { %1108 = vmatprep.mubr.f32.mxu0 %v5012_v6  ;;  %1557 = vmatprep.mubr.f32.mxu1 %v5012_v6 }
  0x48   : > { %514 = vperm.xlu0 %4655, %v424_v27   ;;  %519 = vperm.xlu1 %4656, %v425_v29   ;;  %v476_v27 = vld [vmem:[%s6928_s2 + $0x1d0] sm:$0xff]  ;;  %v477_v29 = vld [vmem:[%s6928_s2 + $0x1d8] sm:$0xff] }
  0x4a   : > { %3966 = vmatmul.mubr.msk.f32.gmra.mrb[12].mxu0 %vm806_vm2, %v360_v25  ;;  %4032 = vmatmul.mubr.msk.f32.gmra.mrb[12].mxu1 %vm806_vm2, %v360_v25  ;;  %v381_v25 = vld [vmem:[%s6961_s1 + $0xd8] sm:$0xff] }
  0x4b   : > { %1114 = vmatprep.mubr.f32.mxu0 %v5012_v6  ;;  %1563 = vmatprep.mubr.f32.mxu1 %v5012_v6 }
  0x4c   : > { %674 = vperm.xlu0 %4655, %v456_v30   ;;  %679 = vperm.xlu1 %4656, %v457_v32   ;;  %v446_v30 = vld [vmem:[%s6928_s2 + $0xe0] sm:$0xff]  ;;  %v447_v32 = vld [vmem:[%s6928_s2 + $0xe8] sm:$0xff] }
  0x4e   : > { %3967 = vmatmul.mubr.msk.f32.gmra.mrb[14].mxu0 %vm806_vm2, %v361_v28  ;;  %4033 = vmatmul.mubr.msk.f32.gmra.mrb[14].mxu1 %vm806_vm2, %v361_v28  ;;  %v382_v28 = vld [vmem:[%s6961_s1 + $0xe0] sm:$0xff] }
  0x4f   : > { %1120 = vmatprep.mubr.f32.mxu0 %v5012_v6  ;;  %1569 = vmatprep.mubr.f32.mxu1 %v5012_v6 }
  0x50   : > { %524 = vperm.xlu0 %4655, %v426_v33   ;;  %529 = vperm.xlu1 %4656, %v427_v35   ;;  %v478_v33 = vld [vmem:[%s6928_s2 + $0x1e0] sm:$0xff]  ;;  %v479_v35 = vld [vmem:[%s6928_s2 + $0x1e8] sm:$0xff] }
  0x52   : > { %3968 = vmatmul.mubr.msk.f32.gmra.mrb[16].mxu0 %vm806_vm2, %v362_v31  ;;  %4034 = vmatmul.mubr.msk.f32.gmra.mrb[16].mxu1 %vm806_vm2, %v362_v31  ;;  %v383_v31 = vld [vmem:[%s6961_s1 + $0xe8] sm:$0xff] }
  0x53   : > { %1126 = vmatprep.mubr.f32.mxu0 %v5012_v6  ;;  %1575 = vmatprep.mubr.f32.mxu1 %v5012_v6 }
  0x54   : > { %684 = vperm.xlu0 %4655, %v458_v36   ;;  %689 = vperm.xlu1 %4656, %v459_v38   ;;  %v448_v36 = vld [vmem:[%s6928_s2 + $0xf0] sm:$0xff]  ;;  %v449_v38 = vld [vmem:[%s6928_s2 + $0xf8] sm:$0xff] }
  0x56   : > { %3969 = vmatmul.mubr.msk.f32.gmra.mrb[18].mxu0 %vm806_vm2, %v363_v34  ;;  %4035 = vmatmul.mubr.msk.f32.gmra.mrb[18].mxu1 %vm806_vm2, %v363_v34  ;;  %v384_v34 = vld [vmem:[%s6961_s1 + $0xf0] sm:$0xff] }
  0x57   : > { %1132 = vmatprep.mubr.f32.mxu0 %v5012_v6  ;;  %1581 = vmatprep.mubr.f32.mxu1 %v5012_v6 }
  0x58   : > { %534 = vperm.xlu0 %4655, %v428_v39   ;;  %539 = vperm.xlu1 %4656, %v429_v41   ;;  %v480_v39 = vld [vmem:[%s6928_s2 + $0x1f0] sm:$0xff]  ;;  %v481_v41 = vld [vmem:[%s6928_s2 + $0x1f8] sm:$0xff] }
  0x5a   : > { %3970 = vmatmul.mubr.msk.f32.gmra.mrb[20].mxu0 %vm806_vm2, %v364_v37  ;;  %4036 = vmatmul.mubr.msk.f32.gmra.mrb[20].mxu1 %vm806_vm2, %v364_v37  ;;  %v385_v37 = vld [vmem:[%s6961_s1 + $0xf8] sm:$0xff] }
  0x5b   : > { %1138 = vmatprep.mubr.f32.mxu0 %v5012_v6  ;;  %1587 = vmatprep.mubr.f32.mxu1 %v5012_v6 }
  0x5c   : > { %694 = vperm.xlu0 %4655, %v460_v42   ;;  %699 = vperm.xlu1 %4656, %v461_v44   ;;  %v387_v42 = vld [vmem:[%s6961_s1 + $0x108] sm:$0xff]  ;;  %v388_v44 = vld [vmem:[%s6961_s1 + $0x110] sm:$0xff] }
  0x5e   : > { %3971 = vmatmul.mubr.msk.f32.gmra.mrb[22].mxu0 %vm806_vm2, %v365_v40  ;;  %4037 = vmatmul.mubr.msk.f32.gmra.mrb[22].mxu1 %vm806_vm2, %v365_v40  ;;  %v386_v40 = vld [vmem:[%s6961_s1 + $0x100] sm:$0xff] }
  0x5f   : > { %1144 = vmatprep.mubr.f32.mxu0 %v5012_v6  ;;  %1593 = vmatprep.mubr.f32.mxu1 %v5012_v6 }
  0x60   : > { %544 = vperm.xlu0 %4655, %v430_v45   ;;  %549 = vperm.xlu1 %4656, %v431_v47   ;;  %v389_v47 = vld [vmem:[%s6961_s1 + $0x118] sm:$0xff] }
  0x62   : > { %3972 = vmatmul.mubr.msk.f32.gmra.mrb[24].mxu0 %vm806_vm2, %v366_v43  ;;  %4038 = vmatmul.mubr.msk.f32.gmra.mrb[24].mxu1 %vm806_vm2, %v366_v43 }
  0x63   : > { %1150 = vmatprep.mubr.f32.mxu0 %v5012_v6  ;;  %1599 = vmatprep.mubr.f32.mxu1 %v5012_v6 }
  0x64   : > { %704 = vperm.xlu0 %4655, %v462_v48   ;;  %709 = vperm.xlu1 %4656, %v463_v50   ;;  %v390_v50 = vld [vmem:[%s6961_s1 + $0x120] sm:$0xff] }
  0x66   : > { %3973 = vmatmul.mubr.msk.f32.gmra.mrb[26].mxu0 %vm806_vm2, %v367_v46  ;;  %4039 = vmatmul.mubr.msk.f32.gmra.mrb[26].mxu1 %vm806_vm2, %v367_v46 }
  0x67   : > { %1156 = vmatprep.mubr.f32.mxu0 %v5012_v6  ;;  %1605 = vmatprep.mubr.f32.mxu1 %v5012_v6 }
  0x68   : > { %554 = vperm.xlu0 %4655, %v432_v51   ;;  %559 = vperm.xlu1 %4656, %v433_v53   ;;  %v391_v53 = vld [vmem:[%s6961_s1 + $0x128] sm:$0xff] }
  0x6a   : > { %3974 = vmatmul.mubr.msk.f32.gmra.mrb[28].mxu0 %vm806_vm2, %v368_v49  ;;  %4040 = vmatmul.mubr.msk.f32.gmra.mrb[28].mxu1 %vm806_vm2, %v368_v49 }
  0x6b   : > { %1162 = vmatprep.mubr.f32.mxu0 %v5012_v6  ;;  %1611 = vmatprep.mubr.f32.mxu1 %v5012_v6 }
  0x6c   : > { %714 = vperm.xlu0 %4655, %v464_v54   ;;  %719 = vperm.xlu1 %4656, %v465_v56   ;;  %v392_v56 = vld [vmem:[%s6961_s1 + $0x130] sm:$0xff] }
  0x6e   : > { %3975 = vmatmul.mubr.msk.f32.gmra.mrb[30].mxu0 %vm806_vm2, %v369_v52  ;;  %4041 = vmatmul.mubr.msk.f32.gmra.mrb[30].mxu1 %vm806_vm2, %v369_v52 }
  0x6f   : > { %1168 = vmatprep.mubr.f32.mxu0 %v5012_v6  ;;  %1617 = vmatprep.mubr.f32.mxu1 %v5012_v6 }
  0x70   : > { %564 = vperm.xlu0 %4655, %v434_v57   ;;  %569 = vperm.xlu1 %4656, %v435_v59   ;;  %v393_v59 = vld [vmem:[%s6961_s1 + $0x138] sm:$0xff] }
  0x72   : > { %3976 = vmatmul.mubr.msk.f32.gmra.mrb[32].mxu0 %vm806_vm2, %v370_v55  ;;  %4042 = vmatmul.mubr.msk.f32.gmra.mrb[32].mxu1 %vm806_vm2, %v370_v55 }
  0x73   : > { %1174 = vmatprep.mubr.f32.mxu0 %v5012_v6  ;;  %1623 = vmatprep.mubr.f32.mxu1 %v5012_v6 }
  0x74   : > { %724 = vperm.xlu0 %4655, %v466_v60   ;;  %729 = vperm.xlu1 %4656, %v467_v62   ;;  %v394_v62 = vld [vmem:[%s6961_s1 + $0x140] sm:$0xff] }
  0x76   : > { %3977 = vmatmul.mubr.msk.f32.gmra.mrb[34].mxu0 %vm806_vm2, %v371_v58  ;;  %4043 = vmatmul.mubr.msk.f32.gmra.mrb[34].mxu1 %vm806_vm2, %v371_v58 }
  0x77   : > { %1180 = vmatprep.mubr.f32.mxu0 %v5012_v6  ;;  %1629 = vmatprep.mubr.f32.mxu1 %v5012_v6 }
  0x78   : > { %574 = vperm.xlu0 %4655, %v436_v63   ;;  %579 = vperm.xlu1 %4656, %v437_v1  }
  0x7a   : > { %3978 = vmatmul.mubr.msk.f32.gmra.mrb[36].mxu0 %vm806_vm2, %v372_v61  ;;  %4044 = vmatmul.mubr.msk.f32.gmra.mrb[36].mxu1 %vm806_vm2, %v372_v61 }
  0x7b   : > { %1186 = vmatprep.mubr.f32.mxu0 %v5012_v6  ;;  %1635 = vmatprep.mubr.f32.mxu1 %v5012_v6 }
  0x7c   : > { %734 = vperm.xlu0 %4655, %v468_v2   ;;  %739 = vperm.xlu1 %4656, %v469_v4   ;;  %v396_v2 = vld [vmem:[%s6961_s1 + $0x150] sm:$0xff] }
  0x7e   : > { %3979 = vmatmul.mubr.msk.f32.gmra.mrb[38].mxu0 %vm806_vm2, %v373_v0  ;;  %4045 = vmatmul.mubr.msk.f32.gmra.mrb[38].mxu1 %vm806_vm2, %v373_v0  ;;  %v395_v0 = vld [vmem:[%s6961_s1 + $0x148] sm:$0xff] }
  0x7f   : > { %1192 = vmatprep.mubr.f32.mxu0 %v5012_v6  ;;  %1641 = vmatprep.mubr.f32.mxu1 %v5012_v6 }
  0x80   : > { %584 = vperm.xlu0 %4655, %v438_v5   ;;  %589 = vperm.xlu1 %4656, %v439_v8   ;;  %v397_v5 = vld [vmem:[%s6961_s1 + $0x158] sm:$0xff]  ;;  %v398_v8 = vld [vmem:[%s6961_s1 + $0x160] sm:$0xff] }
  0x82   : > { %3980 = vmatmul.mubr.msk.f32.gmra.mrb[40].mxu0 %vm806_vm2, %v374_v3  ;;  %4046 = vmatmul.mubr.msk.f32.gmra.mrb[40].mxu1 %vm806_vm2, %v374_v3 }
  0x83   : > { %1198 = vmatprep.mubr.f32.mxu0 %v5012_v6  ;;  %1647 = vmatprep.mubr.f32.mxu1 %v5012_v6 }
  0x84   : > { %744 = vperm.xlu0 %4655, %v470_v9   ;;  %749 = vperm.xlu1 %4656, %v471_v11  }
  0x86   : > { %3981 = vmatmul.mubr.msk.f32.gmra.mrb[42].mxu0 %vm806_vm2, %v375_v7  ;;  %4047 = vmatmul.mubr.msk.f32.gmra.mrb[42].mxu1 %vm806_vm2, %v375_v7 }
  0x87   : > { %1204 = vmatprep.mubr.f32.mxu0 %v5012_v6  ;;  %1653 = vmatprep.mubr.f32.mxu1 %v5012_v6 }
  0x88   : > { %594 = vperm.xlu0 %4655, %v440_v12   ;;  %599 = vperm.xlu1 %4656, %v441_v14  }
  0x8a   : > { %3982 = vmatmul.mubr.msk.f32.gmra.mrb[44].mxu0 %vm806_vm2, %v376_v10  ;;  %4048 = vmatmul.mubr.msk.f32.gmra.mrb[44].mxu1 %vm806_vm2, %v376_v10  ;;  %v399_v10 = vld [vmem:[%s6961_s1 + $0x168] sm:$0xff] }
  0x8b   : > { %1210 = vmatprep.mubr.f32.mxu0 %v5012_v6  ;;  %1659 = vmatprep.mubr.f32.mxu1 %v5012_v6 }
  0x8c   : > { %754 = vperm.xlu0 %4655, %v472_v15   ;;  %759 = vperm.xlu1 %4656, %v473_v17   ;;  %v401_v15 = vld [vmem:[%s6961_s1 + $0x178] sm:$0xff]  ;;  %v402_v17 = vld [vmem:[%s6961_s1 + $0x180] sm:$0xff] }
  0x8e   : > { %3983 = vmatmul.mubr.msk.f32.gmra.mrb[46].mxu0 %vm806_vm2, %v377_v13  ;;  %4049 = vmatmul.mubr.msk.f32.gmra.mrb[46].mxu1 %vm806_vm2, %v377_v13  ;;  %v400_v13 = vld [vmem:[%s6961_s1 + $0x170] sm:$0xff] }
  0x8f   : > { %1216 = vmatprep.mubr.f32.mxu0 %v5012_v6  ;;  %1665 = vmatprep.mubr.f32.mxu1 %v5012_v6 }
  0x90   : > { %604 = vperm.xlu0 %4655, %v442_v18   ;;  %609 = vperm.xlu1 %4656, %v443_v20   ;;  %v403_v20 = vld [vmem:[%s6961_s1 + $0x188] sm:$0xff] }
  0x92   : > { %3984 = vmatmul.mubr.msk.f32.gmra.mrb[48].mxu0 %vm806_vm2, %v378_v16  ;;  %4050 = vmatmul.mubr.msk.f32.gmra.mrb[48].mxu1 %vm806_vm2, %v378_v16 }
  0x93   : > { %1222 = vmatprep.mubr.f32.mxu0 %v5012_v6  ;;  %1671 = vmatprep.mubr.f32.mxu1 %v5012_v6 }
  0x94   : > { %764 = vperm.xlu0 %4655, %v474_v21   ;;  %769 = vperm.xlu1 %4656, %v475_v23  }
  0x96   : > { %3985 = vmatmul.mubr.msk.f32.gmra.mrb[50].mxu0 %vm806_vm2, %v379_v19  ;;  %4051 = vmatmul.mubr.msk.f32.gmra.mrb[50].mxu1 %vm806_vm2, %v379_v19 }
  0x97   : > { %1228 = vmatprep.mubr.f32.mxu0 %v5012_v6  ;;  %1677 = vmatprep.mubr.f32.mxu1 %v5012_v6 }
  0x98   : > { %614 = vperm.xlu0 %4655, %v444_v24   ;;  %619 = vperm.xlu1 %4656, %v445_v26   ;;  %v405_v24 = vld [vmem:[%s6961_s1 + $0x198] sm:$0xff] }
  0x9a   : > { %3986 = vmatmul.mubr.msk.f32.gmra.mrb[52].mxu0 %vm806_vm2, %v380_v22  ;;  %4052 = vmatmul.mubr.msk.f32.gmra.mrb[52].mxu1 %vm806_vm2, %v380_v22  ;;  %v404_v22 = vld [vmem:[%s6961_s1 + $0x190] sm:$0xff] }
  0x9b   : > { %1234 = vmatprep.mubr.f32.mxu0 %v5012_v6  ;;  %1683 = vmatprep.mubr.f32.mxu1 %v5012_v6 }
  0x9c   : > { %774 = vperm.xlu0 %4655, %v476_v27   ;;  %779 = vperm.xlu1 %4656, %v477_v29   ;;  %v406_v27 = vld [vmem:[%s6961_s1 + $0x1a0] sm:$0xff]  ;;  %v407_v29 = vld [vmem:[%s6961_s1 + $0x1a8] sm:$0xff] }
  0x9e   : > { %3987 = vmatmul.mubr.msk.f32.gmra.mrb[54].mxu0 %vm806_vm2, %v381_v25  ;;  %4053 = vmatmul.mubr.msk.f32.gmra.mrb[54].mxu1 %vm806_vm2, %v381_v25 }
  0x9f   : > { %1240 = vmatprep.mubr.f32.mxu0 %v5012_v6  ;;  %1689 = vmatprep.mubr.f32.mxu1 %v5012_v6 }
  0xa0   : > { %624 = vperm.xlu0 %4655, %v446_v30   ;;  %629 = vperm.xlu1 %4656, %v447_v32  }
  0xa2   : > { %3988 = vmatmul.mubr.msk.f32.gmra.mrb[56].mxu0 %vm806_vm2, %v382_v28  ;;  %4054 = vmatmul.mubr.msk.f32.gmra.mrb[56].mxu1 %vm806_vm2, %v382_v28 }
  0xa3   : > { %1246 = vmatprep.mubr.f32.mxu0 %v5012_v6  ;;  %1695 = vmatprep.mubr.f32.mxu1 %v5012_v6 }
  0xa4   : > { %784 = vperm.xlu0 %4655, %v478_v33   ;;  %789 = vperm.xlu1 %4656, %v479_v35  }
  0xa6   : > { %3989 = vmatmul.mubr.msk.f32.gmra.mrb[58].mxu0 %vm806_vm2, %v383_v31  ;;  %4055 = vmatmul.mubr.msk.f32.gmra.mrb[58].mxu1 %vm806_vm2, %v383_v31 }
  0xa7   : > { %1252 = vmatprep.mubr.f32.mxu0 %v5012_v6  ;;  %1701 = vmatprep.mubr.f32.mxu1 %v5012_v6 }
  0xa8   : > { %634 = vperm.xlu0 %4655, %v448_v36   ;;  %639 = vperm.xlu1 %4656, %v449_v38   ;;  %v408_v36 = vld [vmem:[%s6961_s1 + $0x1b0] sm:$0xff] }
  0xaa   : > { %3990 = vmatmul.mubr.msk.f32.gmra.mrb[60].mxu0 %vm806_vm2, %v384_v34  ;;  %4056 = vmatmul.mubr.msk.f32.gmra.mrb[60].mxu1 %vm806_vm2, %v384_v34 }
  0xab   : > { %1258 = vmatprep.mubr.f32.mxu0 %v5012_v6  ;;  %1707 = vmatprep.mubr.f32.mxu1 %v5012_v6 }
  0xac   : > { %794 = vperm.xlu0 %4655, %v480_v39   ;;  %799 = vperm.xlu1 %4656, %v481_v41  }
  0xae   : > { %3991 = vmatmul.mubr.msk.f32.gmra.mrb[62].mxu0 %vm806_vm2, %v385_v37  ;;  %4057 = vmatmul.mubr.msk.f32.gmra.mrb[62].mxu1 %vm806_vm2, %v385_v37 }
  0xaf   : > { %1264 = vmatprep.mubr.f32.mxu0 %v5012_v6  ;;  %1713 = vmatprep.mubr.f32.mxu1 %v5012_v6  ;;  %v5575_v43 = vpop.permute.xlu0 %484  ;;  %v5584_v45 = vpop.permute.xlu1 %644 }
  0xb2   : > { %3992 = vmatmul.mubr.msk.f32.gmra.mrb[64].mxu0 %vm806_vm2, %v386_v40  ;;  %4058 = vmatmul.mubr.msk.f32.gmra.mrb[64].mxu1 %vm806_vm2, %v386_v40 }
  0xb3   : > { %1270 = vmatprep.mubr.f32.mxu0 %v5012_v6  ;;  %1719 = vmatprep.mubr.f32.mxu1 %v5012_v6  ;;  %v5586_v46 = vpop.permute.xlu0 %489  ;;  %v5595_v48 = vpop.permute.xlu1 %649 }
  0xb6   : > { %3993 = vmatmul.mubr.msk.f32.gmra.mrb[66].mxu0 %vm806_vm2, %v387_v42  ;;  %4059 = vmatmul.mubr.msk.f32.gmra.mrb[66].mxu1 %vm806_vm2, %v387_v42 }
  0xb7   : > { %1276 = vmatprep.mubr.f32.mxu0 %v5012_v6  ;;  %1725 = vmatprep.mubr.f32.mxu1 %v5012_v6  ;;  %v5597_v49 = vpop.permute.xlu0 %494  ;;  %v5606_v51 = vpop.permute.xlu1 %499 }
  0xba   : > { %3994 = vmatmul.mubr.msk.f32.gmra.mrb[68].mxu0 %vm806_vm2, %v388_v44  ;;  %4060 = vmatmul.mubr.msk.f32.gmra.mrb[68].mxu1 %vm806_vm2, %v388_v44 }
  0xbb   : > { %1282 = vmatprep.mubr.f32.mxu0 %v5012_v6  ;;  %1731 = vmatprep.mubr.f32.mxu1 %v5012_v6  ;;  %v5608_v52 = vpop.permute.xlu0 %654  ;;  %v5617_v54 = vpop.permute.xlu1 %659 }
  0xbe   : > { %3995 = vmatmul.mubr.msk.f32.gmra.mrb[70].mxu0 %vm806_vm2, %v389_v47  ;;  %4061 = vmatmul.mubr.msk.f32.gmra.mrb[70].mxu1 %vm806_vm2, %v389_v47 }
  0xbf   : > { %1288 = vmatprep.mubr.f32.mxu0 %v5012_v6  ;;  %1737 = vmatprep.mubr.f32.mxu1 %v5012_v6  ;;  %v5619_v55 = vpop.permute.xlu0 %504  ;;  %v5628_v57 = vpop.permute.xlu1 %509 }
  0xc2   : > { %3996 = vmatmul.mubr.msk.f32.gmra.mrb[72].mxu0 %vm806_vm2, %v390_v50  ;;  %4062 = vmatmul.mubr.msk.f32.gmra.mrb[72].mxu1 %vm806_vm2, %v390_v50 }
  0xc3   : > { %1294 = vmatprep.mubr.f32.mxu0 %v5012_v6  ;;  %1743 = vmatprep.mubr.f32.mxu1 %v5012_v6  ;;  %v5630_v58 = vpop.permute.xlu0 %664  ;;  %v5639_v60 = vpop.permute.xlu1 %669 }
  0xc6   : > { %3997 = vmatmul.mubr.msk.f32.gmra.mrb[74].mxu0 %vm806_vm2, %v391_v53  ;;  %4063 = vmatmul.mubr.msk.f32.gmra.mrb[74].mxu1 %vm806_vm2, %v391_v53 }
  0xc7   : > { %1300 = vmatprep.mubr.f32.mxu0 %v5012_v6  ;;  %1749 = vmatprep.mubr.f32.mxu1 %v5012_v6  ;;  %v5643_v61 = vpop.permute.xlu0 %514  ;;  %v5652_v63 = vpop.permute.xlu1 %519 }
  0xca   : > { %3998 = vmatmul.mubr.msk.f32.gmra.mrb[76].mxu0 %vm806_vm2, %v392_v56  ;;  %4064 = vmatmul.mubr.msk.f32.gmra.mrb[76].mxu1 %vm806_vm2, %v392_v56 }
  0xcb   : > { %1306 = vmatprep.mubr.f32.mxu0 %v5012_v6  ;;  %1755 = vmatprep.mubr.f32.mxu1 %v5012_v6  ;;  %v5659_v1 = vpop.permute.xlu0 %674  ;;  %v5668_v3 = vpop.permute.xlu1 %679 }
  0xce   : > { %3999 = vmatmul.mubr.msk.f32.gmra.mrb[78].mxu0 %vm806_vm2, %v393_v59  ;;  %4065 = vmatmul.mubr.msk.f32.gmra.mrb[78].mxu1 %vm806_vm2, %v393_v59 }
  0xcf   : > { %1312 = vmatprep.mubr.f32.mxu0 %v5012_v6  ;;  %1761 = vmatprep.mubr.f32.mxu1 %v5012_v6  ;;  %v5672_v4 = vpop.permute.xlu0 %524  ;;  %v5681_v7 = vpop.permute.xlu1 %529 }
  0xd2   : > { %4000 = vmatmul.mubr.msk.f32.gmra.mrb[80].mxu0 %vm806_vm2, %v394_v62  ;;  %4066 = vmatmul.mubr.msk.f32.gmra.mrb[80].mxu1 %vm806_vm2, %v394_v62 }
  0xd3   : > { %1318 = vmatprep.mubr.f32.mxu0 %v5012_v6  ;;  %1767 = vmatprep.mubr.f32.mxu1 %v5012_v6  ;;  %v5688_v9 = vpop.permute.xlu0 %684  ;;  %v5697_v11 = vpop.permute.xlu1 %689 }
  0xd6   : > { %4001 = vmatmul.mubr.msk.f32.gmra.mrb[82].mxu0 %vm806_vm2, %v395_v0  ;;  %4067 = vmatmul.mubr.msk.f32.gmra.mrb[82].mxu1 %vm806_vm2, %v395_v0 }
  0xd7   : > { %1324 = vmatprep.mubr.f32.mxu0 %v5012_v6  ;;  %1773 = vmatprep.mubr.f32.mxu1 %v5012_v6  ;;  %v5701_v12 = vpop.permute.xlu0 %534  ;;  %v5710_v14 = vpop.permute.xlu1 %539 }
  0xda   : > { %4002 = vmatmul.mubr.msk.f32.gmra.mrb[84].mxu0 %vm806_vm2, %v396_v2  ;;  %4068 = vmatmul.mubr.msk.f32.gmra.mrb[84].mxu1 %vm806_vm2, %v396_v2 }
  0xdb   : > { %1330 = vmatprep.mubr.f32.mxu0 %v5012_v6  ;;  %1779 = vmatprep.mubr.f32.mxu1 %v5012_v6  ;;  %v5717_v16 = vpop.permute.xlu0 %694  ;;  %v5726_v18 = vpop.permute.xlu1 %699 }
  0xde   : > { %4003 = vmatmul.mubr.msk.f32.gmra.mrb[86].mxu0 %vm806_vm2, %v397_v5  ;;  %4069 = vmatmul.mubr.msk.f32.gmra.mrb[86].mxu1 %vm806_vm2, %v397_v5 }
  0xdf   : > { %1336 = vmatprep.mubr.f32.mxu0 %v5012_v6  ;;  %1785 = vmatprep.mubr.f32.mxu1 %v5012_v6  ;;  %v5730_v19 = vpop.permute.xlu0 %544  ;;  %v5739_v21 = vpop.permute.xlu1 %549 }
  0xe2   : > { %4004 = vmatmul.mubr.msk.f32.gmra.mrb[88].mxu0 %vm806_vm2, %v398_v8  ;;  %4070 = vmatmul.mubr.msk.f32.gmra.mrb[88].mxu1 %vm806_vm2, %v398_v8 }
  0xe3   : > { %1342 = vmatprep.mubr.f32.mxu0 %v5012_v6  ;;  %1791 = vmatprep.mubr.f32.mxu1 %v5012_v6  ;;  %v5746_v23 = vpop.permute.xlu0 %704  ;;  %v5755_v25 = vpop.permute.xlu1 %709 }
  0xe6   : > { %4005 = vmatmul.mubr.msk.f32.gmra.mrb[90].mxu0 %vm806_vm2, %v399_v10  ;;  %4071 = vmatmul.mubr.msk.f32.gmra.mrb[90].mxu1 %vm806_vm2, %v399_v10 }
  0xe7   : > { %1348 = vmatprep.mubr.f32.mxu0 %v5012_v6  ;;  %1797 = vmatprep.mubr.f32.mxu1 %v5012_v6  ;;  %v5759_v26 = vpop.permute.xlu0 %554  ;;  %v5768_v28 = vpop.permute.xlu1 %559 }
  0xea   : > { %4006 = vmatmul.mubr.msk.f32.gmra.mrb[92].mxu0 %vm806_vm2, %v400_v13  ;;  %4072 = vmatmul.mubr.msk.f32.gmra.mrb[92].mxu1 %vm806_vm2, %v400_v13 }
  0xeb   : > { %1354 = vmatprep.mubr.f32.mxu0 %v5012_v6  ;;  %1803 = vmatprep.mubr.f32.mxu1 %v5012_v6  ;;  %v5775_v30 = vpop.permute.xlu0 %714  ;;  %v5787_v39 = vpop.permute.xlu1 %719 }
  0xee   : > { %4007 = vmatmul.mubr.msk.f32.gmra.mrb[94].mxu0 %vm806_vm2, %v401_v15  ;;  %4073 = vmatmul.mubr.msk.f32.gmra.mrb[94].mxu1 %vm806_vm2, %v401_v15 }
  0xef   : > { %1360 = vmatprep.mubr.f32.mxu0 %v5012_v6  ;;  %1809 = vmatprep.mubr.f32.mxu1 %v5012_v6  ;;  %v5801_v8 = vpop.permute.xlu0 %564 }
  0xf2   : > { %4008 = vmatmul.mubr.msk.f32.gmra.mrb[96].mxu0 %vm806_vm2, %v402_v17  ;;  %4074 = vmatmul.mubr.msk.f32.gmra.mrb[96].mxu1 %vm806_vm2, %v402_v17 }
  0xf3   : > { %1366 = vmatprep.mubr.f32.mxu0 %v5012_v6  ;;  %1815 = vmatprep.mubr.f32.mxu1 %v5012_v6 }
  0xf6   : > { %4009 = vmatmul.mubr.msk.f32.gmra.mrb[98].mxu0 %vm806_vm2, %v403_v20  ;;  %4075 = vmatmul.mubr.msk.f32.gmra.mrb[98].mxu1 %vm806_vm2, %v403_v20 }
  0xf7   : > { %1372 = vmatprep.mubr.f32.mxu0 %v5012_v6  ;;  %1821 = vmatprep.mubr.f32.mxu1 %v5012_v6 }
  0xfa   : > { %4010 = vmatmul.mubr.msk.f32.gmra.mrb[100].mxu0 %vm806_vm2, %v404_v22  ;;  %4076 = vmatmul.mubr.msk.f32.gmra.mrb[100].mxu1 %vm806_vm2, %v404_v22 }
  0xfb   : > { %1378 = vmatprep.mubr.f32.mxu0 %v5012_v6  ;;  %1827 = vmatprep.mubr.f32.mxu1 %v5012_v6 }
  0xfe   : > { %4011 = vmatmul.mubr.msk.f32.gmra.mrb[102].mxu0 %vm806_vm2, %v405_v24  ;;  %4077 = vmatmul.mubr.msk.f32.gmra.mrb[102].mxu1 %vm806_vm2, %v405_v24 }
  0xff   : > { %1384 = vmatprep.mubr.f32.mxu0 %v5012_v6  ;;  %1833 = vmatprep.mubr.f32.mxu1 %v5012_v6 }
 0x102   : > { %4012 = vmatmul.mubr.msk.f32.gmra.mrb[104].mxu0 %vm806_vm2, %v406_v27  ;;  %4078 = vmatmul.mubr.msk.f32.gmra.mrb[104].mxu1 %vm806_vm2, %v406_v27 }
 0x103   : > { %1390 = vmatprep.mubr.f32.mxu0 %v5012_v6  ;;  %1839 = vmatprep.mubr.f32.mxu1 %v5012_v6 }
 0x105   : > { %v1074_v31 = vpop.f32.mrb[0].mxu0  ;;  %v1523_v32 = vpop.f32.mrb[0].mxu1 }
 0x106   : > { %v1076_v33 = vpop.f32.mrb[1].mxu0  ;;  %4013 = vmatmul.mubr.msk.f32.gmra.mrb[106].mxu0 %vm806_vm2, %v407_v29  ;;  %4079 = vmatmul.mubr.msk.f32.gmra.mrb[106].mxu1 %vm806_vm2, %v407_v29  ;;  %v1524_v34 = vadd.f32 %v1523_v32, %v5575_v43  ;;  %v1525_v35 = vpop.f32.mrb[1].mxu1  ;;  %v1075_v38 = vadd.f32 %v1074_v31, %v5575_v43  ;;  %v410_v32 = vld [vmem:[%s6961_s1 + $0x1c0] sm:$0xff] }
 0x107   : > { %1396 = vmatprep.mubr.f32.mxu0 %v5012_v6  ;;  %1845 = vmatprep.mubr.f32.mxu1 %v5012_v6  ;;  %v1526_v37 = vadd.f32 %v1525_v35, %v5575_v43  ;;  %v1077_v40 = vadd.f32 %v1076_v33, %v5575_v43  ;;  %v409_v43 = vld [vmem:[%s6961_s1 + $0x1b8] sm:$0xff]  ;;  %v5815_v35 = vpop.permute.xlu1 %569 }
 0x108   : > { %v1908_v50 = vmax.f32 %v1524_v34, 0.0  ;;  %v1906_v2 = vmax.f32 %v1075_v38, 0.0 }
 0x109   : > { %v1080_v41 = vpop.f32.mrb[2].mxu0  ;;  %v1529_v42 = vpop.f32.mrb[2].mxu1  ;;  %v1909_v62 = vmax.f32 %v1526_v37, 0.0  ;;  %v1907_v13 = vmax.f32 %v1077_v40, 0.0 }
 0x10a   : > { %v1081_v44 = vadd.f32 %v1080_v41, %v5586_v46  ;;  %v1082_v47 = vpop.f32.mrb[3].mxu0  ;;  %4014 = vmatmul.mubr.msk.f32.gmra.mrb[108].mxu0 %vm806_vm2, %v408_v36  ;;  %4080 = vmatmul.mubr.msk.f32.gmra.mrb[108].mxu1 %vm806_vm2, %v408_v36  ;;  %v1530_v53 = vadd.f32 %v1529_v42, %v5586_v46  ;;  %v1531_v56 = vpop.f32.mrb[3].mxu1 }
 0x10b   : > { %v1083_v59 = vadd.f32 %v1082_v47, %v5586_v46  ;;  %1402 = vmatprep.mubr.f32.mxu0 %v5012_v6  ;;  %1851 = vmatprep.mubr.f32.mxu1 %v5012_v6  ;;  %v1532_v0 = vadd.f32 %v1531_v56, %v5586_v46 }
 0x10c   : > { %v1910_v5 = vmax.f32 %v1081_v44, 0.0  ;;  %v1912_v10 = vmax.f32 %v1530_v53, 0.0 }
 0x10d   : > { %v1911_v15 = vmax.f32 %v1083_v59, 0.0  ;;  %v1086_v17 = vpop.f32.mrb[4].mxu0  ;;  %v1913_v20 = vmax.f32 %v1532_v0, 0.0  ;;  %v1535_v22 = vpop.f32.mrb[4].mxu1 }
 0x10e   : > { %v4304_v24 = vpack.c.bf16 %v1910_v5, %v1906_v2  ;;  %v1088_v27 = vpop.f32.mrb[5].mxu0  ;;  %4015 = vmatmul.mubr.msk.f32.gmra.mrb[110].mxu0 %vm806_vm2, %v409_v43  ;;  %4081 = vmatmul.mubr.msk.f32.gmra.mrb[110].mxu1 %vm806_vm2, %v409_v43  ;;  %v5805_v29 = vpack.c.bf16 %v1912_v10, %v1908_v50  ;;  %v1537_v31 = vpop.f32.mrb[5].mxu1  ;;  %v1087_v34 = vadd.f32 %v1086_v17, %v5597_v49 }
 0x10f   : > { %v4302_v46 = vpack.c.bf16 %v1911_v15, %v1907_v13  ;;  %1408 = vmatprep.mubr.f32.mxu0 %v5012_v6  ;;  %1857 = vmatprep.mubr.f32.mxu1 %v5012_v6  ;;  %v5812_v33 = vpack.c.bf16 %v1913_v20, %v1909_v62  ;;  %v1536_v36 = vadd.f32 %v1535_v22, %v5597_v49  ;;  %v5831_v2 = vpop.permute.xlu0 %724 }
 0x110   : > { %v1538_v37 = vadd.f32 %v1537_v31, %v5597_v49  ;;  %v1089_v38 = vadd.f32 %v1088_v27, %v5597_v49  ;;  %v411_v49 = vld [vmem:[%s6961_s1 + $0x1c8] sm:$0xff]  ;;  %v1914_v62 = vmax.f32 %v1087_v34, 0.0  ;;  %6962 = vst [vmem:[#allocation11_spill] sm:$0xff] %v5831_v2 }
 0x111   : > { %v1092_v40 = vpop.f32.mrb[6].mxu0  ;;  %4303 = vmatprep.subr.bf16.mxu0 %v4302_v46  ;;  %v1541_v41 = vpop.f32.mrb[6].mxu1  ;;  %v1916_v47 = vmax.f32 %v1536_v36, 0.0  ;;  %v412_v46 = vld [vmem:[%s6961_s1 + $0x1d0] sm:$0xff] }
 0x112   : > { %v1093_v42 = vadd.f32 %v1092_v40, %v5606_v51  ;;  %v1094_v44 = vpop.f32.mrb[7].mxu0  ;;  %4016 = vmatmul.mubr.msk.f32.gmra.mrb[112].mxu0 %vm806_vm2, %v410_v32  ;;  %4082 = vmatmul.mubr.msk.f32.gmra.mrb[112].mxu1 %vm806_vm2, %v410_v32  ;;  %v1542_v50 = vadd.f32 %v1541_v41, %v5606_v51  ;;  %v1543_v53 = vpop.f32.mrb[7].mxu1  ;;  %v1917_v59 = vmax.f32 %v1538_v37, 0.0  ;;  %v1915_v10 = vmax.f32 %v1089_v38, 0.0 }
 0x113   : > { %v1095_v56 = vadd.f32 %v1094_v44, %v5606_v51  ;;  %4305 = vmatpush1.bf16.xpose.msra.mxu0 %v4304_v24  ;;  %1414 = vmatprep.mubr.f32.mxu0 %v5012_v6  ;;  %v1544_v43 = vadd.f32 %v1543_v53, %v5606_v51  ;;  %v5845_v36 = vpop.permute.xlu1 %729 }
 0x114   : > { %v1918_v0 = vmax.f32 %v1093_v42, 0.0  ;;  %1863 = vmatprep.mubr.f32.mxu1 %v5012_v6  ;;  %v1920_v5 = vmax.f32 %v1542_v50, 0.0  ;;  %6963 = vst [vmem:[#allocation12_spill] sm:$0xff] %v5845_v36 }
 0x115   : > { %v1919_v13 = vmax.f32 %v1095_v56, 0.0  ;;  %v1098_v15 = vpop.f32.mrb[8].mxu0  ;;  %v1921_v17 = vmax.f32 %v1544_v43, 0.0  ;;  %v1547_v20 = vpop.f32.mrb[8].mxu1 }
 0x116   : > { %v4308_v22 = vpack.c.bf16 %v1918_v0, %v1914_v62  ;;  %v1100_v24 = vpop.f32.mrb[9].mxu0  ;;  %4017 = vmatmul.mubr.msk.f32.gmra.mrb[114].mxu0 %vm806_vm2, %v411_v49  ;;  %4083 = vmatmul.mubr.msk.f32.gmra.mrb[114].mxu1 %vm806_vm2, %v411_v49  ;;  %v5835_v27 = vpack.c.bf16 %v1920_v5, %v1916_v47  ;;  %v1549_v51 = vpop.f32.mrb[9].mxu1  ;;  %v1099_v34 = vadd.f32 %v1098_v15, %v5619_v55 }
 0x117   : > { %v4306_v31 = vpack.c.bf16 %v1919_v13, %v1915_v10  ;;  %1420 = vmatprep.mubr.f32.mxu0 %v5012_v6  ;;  %1869 = vmatprep.mubr.f32.mxu1 %v5012_v6  ;;  %v5842_v32 = vpack.c.bf16 %v1921_v17, %v1917_v59  ;;  %v1548_v37 = vadd.f32 %v1547_v20, %v5619_v55  ;;  %v5861_v5 = vpop.permute.xlu0 %574 }
 0x118   : > { %v1550_v38 = vadd.f32 %v1549_v51, %v5619_v55  ;;  %v1101_v40 = vadd.f32 %v1100_v24, %v5619_v55  ;;  %v413_v55 = vld [vmem:[%s6961_s1 + $0x1d8] sm:$0xff]  ;;  %v1922_v62 = vmax.f32 %v1099_v34, 0.0  ;;  %v414_v34 = vld [vmem:[%s6961_s1 + $0x1e0] sm:$0xff] }
 0x119   : > { %v1104_v41 = vpop.f32.mrb[10].mxu0  ;;  %4307 = vmatprep.subr.bf16.mxu0 %v4306_v31  ;;  %v1553_v42 = vpop.f32.mrb[10].mxu1  ;;  %v1924_v50 = vmax.f32 %v1548_v37, 0.0 }
 0x11a   : > { %v1105_v44 = vadd.f32 %v1104_v41, %v5628_v57  ;;  %v1106_v47 = vpop.f32.mrb[11].mxu0  ;;  %4018 = vmatmul.mubr.msk.f32.gmra.mrb[116].mxu0 %vm806_vm2, %v412_v46  ;;  %4084 = vmatmul.mubr.msk.f32.gmra.mrb[116].mxu1 %vm806_vm2, %v412_v46  ;;  %v1554_v53 = vadd.f32 %v1553_v42, %v5628_v57  ;;  %v1555_v56 = vpop.f32.mrb[11].mxu1  ;;  %v1925_v59 = vmax.f32 %v1550_v38, 0.0  ;;  %v1923_v13 = vmax.f32 %v1101_v40, 0.0 }
 0x11b   : > { %v1107_v49 = vadd.f32 %v1106_v47, %v5628_v57  ;;  %4309 = vmatpush1.bf16.xpose.msra.mxu0 %v4308_v22  ;;  %1426 = vmatprep.mubr.f32.mxu0 %v5012_v6  ;;  %v1556_v43 = vadd.f32 %v1555_v56, %v5628_v57  ;;  %v5875_v40 = vpop.permute.xlu1 %579 }
 0x11c   : > { %v1926_v0 = vmax.f32 %v1105_v44, 0.0  ;;  %1875 = vmatprep.mubr.f32.mxu1 %v5012_v6  ;;  %v1928_v10 = vmax.f32 %v1554_v53, 0.0 }
 0x11d   : > { %v1927_v15 = vmax.f32 %v1107_v49, 0.0  ;;  %v1110_v17 = vpop.f32.mrb[12].mxu0  ;;  %v1929_v20 = vmax.f32 %v1556_v43, 0.0  ;;  %v1559_v22 = vpop.f32.mrb[12].mxu1 }
 0x11e   : > { %v4312_v24 = vpack.c.bf16 %v1926_v0, %v1922_v62  ;;  %v1112_v51 = vpop.f32.mrb[13].mxu0  ;;  %4019 = vmatmul.mubr.msk.f32.gmra.mrb[118].mxu0 %vm806_vm2, %v413_v55  ;;  %4085 = vmatmul.mubr.msk.f32.gmra.mrb[118].mxu1 %vm806_vm2, %v413_v55  ;;  %v5865_v31 = vpack.c.bf16 %v1928_v10, %v1924_v50  ;;  %v1561_v57 = vpop.f32.mrb[13].mxu1  ;;  %v1111_v38 = vadd.f32 %v1110_v17, %v5643_v61 }
 0x11f   : > { %v4310_v46 = vpack.c.bf16 %v1927_v15, %v1923_v13  ;;  %1432 = vmatprep.mubr.f32.mxu0 %v5012_v6  ;;  %1881 = vmatprep.mubr.f32.mxu1 %v5012_v6  ;;  %v5872_v37 = vpack.c.bf16 %v1929_v20, %v1925_v59  ;;  %v1560_v41 = vadd.f32 %v1559_v22, %v5643_v61  ;;  %v5891_v15 = vpop.permute.xlu0 %734 }
 0x120   : > { %v1562_v42 = vadd.f32 %v1561_v57, %v5643_v61  ;;  %v1113_v44 = vadd.f32 %v1112_v51, %v5643_v61  ;;  %v415_v61 = vld [vmem:[%s6961_s1 + $0x1e8] sm:$0xff]  ;;  %v1930_v10 = vmax.f32 %v1111_v38, 0.0  ;;  %6964 = vst [vmem:[#allocation13_spill] sm:$0xff] %v5891_v15 }
 0x121   : > { %v1116_v47 = vpop.f32.mrb[14].mxu0  ;;  %4311 = vmatprep.subr.bf16.mxu0 %v4310_v46  ;;  %v1565_v50 = vpop.f32.mrb[14].mxu1  ;;  %v1932_v49 = vmax.f32 %v1560_v41, 0.0 }
 0x122   : > { %v1117_v53 = vadd.f32 %v1116_v47, %v5652_v63  ;;  %v1118_v56 = vpop.f32.mrb[15].mxu0  ;;  %4020 = vmatmul.mubr.msk.f32.gmra.mrb[120].mxu0 %vm806_vm2, %v414_v34  ;;  %4086 = vmatmul.mubr.msk.f32.gmra.mrb[120].mxu1 %vm806_vm2, %v414_v34  ;;  %v1566_v55 = vadd.f32 %v1565_v50, %v5652_v63  ;;  %v1567_v59 = vpop.f32.mrb[15].mxu1  ;;  %v1933_v62 = vmax.f32 %v1562_v42, 0.0  ;;  %v1931_v20 = vmax.f32 %v1113_v44, 0.0  ;;  %v416_v42 = vld [vmem:[%s6961_s1 + $0x1f0] sm:$0xff] }
 0x123   : > { %v1119_v43 = vadd.f32 %v1118_v56, %v5652_v63  ;;  %4313 = vmatpush1.bf16.xpose.msra.mxu0 %v4312_v24  ;;  %1438 = vmatprep.mubr.f32.mxu0 %v5012_v6  ;;  %v1568_v0 = vadd.f32 %v1567_v59, %v5652_v63  ;;  %v5905_v50 = vpop.permute.xlu1 %739 }
 0x124   : > { %v1934_v13 = vmax.f32 %v1117_v53, 0.0  ;;  %1887 = vmatprep.mubr.f32.mxu1 %v5012_v6  ;;  %v1936_v17 = vmax.f32 %v1566_v55, 0.0  ;;  %6965 = vst [vmem:[#allocation14_spill] sm:$0xff] %v5905_v50 }
 0x125   : > { %v1935_v22 = vmax.f32 %v1119_v43, 0.0  ;;  %v1122_v51 = vpop.f32.mrb[16].mxu0  ;;  %v1937_v24 = vmax.f32 %v1568_v0, 0.0  ;;  %v1571_v57 = vpop.f32.mrb[16].mxu1 }
 0x126   : > { %v4316_v46 = vpack.c.bf16 %v1934_v13, %v1930_v10  ;;  %v1124_v34 = vpop.f32.mrb[17].mxu0  ;;  %4021 = vmatmul.mubr.msk.f32.gmra.mrb[122].mxu0 %vm806_vm2, %v415_v61  ;;  %4087 = vmatmul.mubr.msk.f32.gmra.mrb[122].mxu1 %vm806_vm2, %v415_v61  ;;  %v5895_v41 = vpack.c.bf16 %v1936_v17, %v1932_v49  ;;  %v1573_v63 = vpop.f32.mrb[17].mxu1  ;;  %v1123_v47 = vadd.f32 %v1122_v51, %v5672_v4 }
 0x127   : > { %v4314_v38 = vpack.c.bf16 %v1935_v22, %v1931_v20  ;;  %1444 = vmatprep.mubr.f32.mxu0 %v5012_v6  ;;  %1893 = vmatprep.mubr.f32.mxu1 %v5012_v6  ;;  %v5902_v44 = vpack.c.bf16 %v1937_v24, %v1933_v62  ;;  %v1572_v53 = vadd.f32 %v1571_v57, %v5672_v4  ;;  %v5921_v24 = vpop.permute.xlu0 %584 }
 0x128   : > { %v1574_v56 = vadd.f32 %v1573_v63, %v5672_v4  ;;  %v1125_v49 = vadd.f32 %v1124_v34, %v5672_v4  ;;  %v417_v4 = vld [vmem:[%s6961_s1 + $0x1f8] sm:$0xff]  ;;  %v1938_v22 = vmax.f32 %v1123_v47, 0.0 }
 0x129   : > { %v1128_v55 = vpop.f32.mrb[18].mxu0  ;;  %4315 = vmatprep.subr.bf16.mxu0 %v4314_v38  ;;  %v1577_v59 = vpop.f32.mrb[18].mxu1  ;;  %v1940_v62 = vmax.f32 %v1572_v53, 0.0 }
 0x12a   : > { %v1129_v43 = vadd.f32 %v1128_v55, %v5681_v7  ;;  %v1130_v61 = vpop.f32.mrb[19].mxu0  ;;  %4022 = vmatmul.mubr.msk.f32.gmra.mrb[124].mxu0 %vm806_vm2, %v416_v42  ;;  %4088 = vmatmul.mubr.msk.f32.gmra.mrb[124].mxu1 %vm806_vm2, %v416_v42  ;;  %v1578_v0 = vadd.f32 %v1577_v59, %v5681_v7  ;;  %v1579_v10 = vpop.f32.mrb[19].mxu1  ;;  %v1941_v17 = vmax.f32 %v1574_v56, 0.0  ;;  %v1939_v34 = vmax.f32 %v1125_v49, 0.0 }
 0x12b   : > { %v1131_v13 = vadd.f32 %v1130_v61, %v5681_v7  ;;  %4317 = vmatpush1.bf16.xpose.msra.mxu0 %v4316_v46  ;;  %1450 = vmatprep.mubr.f32.mxu0 %v5012_v6  ;;  %v1580_v20 = vadd.f32 %v1579_v10, %v5681_v7  ;;  %v5932_v61 = vpop.permute.xlu1 %589 }
 0x12c   : > { %v1942_v51 = vmax.f32 %v1129_v43, 0.0  ;;  %1899 = vmatprep.mubr.f32.mxu1 %v5012_v6  ;;  %v1944_v57 = vmax.f32 %v1578_v0, 0.0  ;;  %v6937_v43 = vmov 0.0009765625  }
 0x12d   : > { %v1943_v63 = vmax.f32 %v1131_v13, 0.0  ;;  %v1134_v38 = vpop.f32.mrb[20].mxu0  ;;  %v1945_v46 = vmax.f32 %v1580_v20, 0.0  ;;  %v1583_v42 = vpop.f32.mrb[20].mxu1 }
 0x12e   : > { %v4320_v53 = vpack.c.bf16 %v1942_v51, %v1938_v22  ;;  %v1136_v55 = vpop.f32.mrb[21].mxu0  ;;  %4023 = vmatmul.mubr.msk.f32.gmra.mrb[126].mxu0 %vm806_vm2, %v417_v4  ;;  %4089 = vmatmul.mubr.msk.f32.gmra.mrb[126].mxu1 %vm806_vm2, %v417_v4  ;;  %v5925_v56 = vpack.c.bf16 %v1944_v57, %v1940_v62  ;;  %v1585_v7 = vpop.f32.mrb[21].mxu1  ;;  %v1584_v6 = vadd.f32 %v1583_v42, %v5701_v12 }
 0x12f   : > { %v4318_v47 = vpack.c.bf16 %v1943_v63, %v1939_v34  ;;  %v5927_v59 = vpack.c.bf16 %v1945_v46, %v1941_v17  ;;  %2226 = vmatprep.mubr.f32.mxu0 %v6937_v43  ;;  %v1135_v49 = vadd.f32 %v1134_v38, %v5701_v12  ;;  %v1586_v0 = vadd.f32 %v1585_v7, %v5701_v12  ;;  %v5941_v42 = vpop.permute.xlu0 %744 }
 0x130   : > { %2368 = vmatprep.mubr.f32.mxu1 %v6937_v43  ;;  %v1137_v62 = vadd.f32 %v1136_v55, %v5701_v12  ;;  %v1948_v20 = vmax.f32 %v1584_v6, 0.0  ;;  %6966 = vst [vmem:[#allocation15_spill] sm:$0xff] %v5941_v42 }
 0x131   : > { %v1140_v10 = vpop.f32.mrb[22].mxu0  ;;  %4319 = vmatprep.subr.bf16.mxu0 %v4318_v47  ;;  %v1589_v13 = vpop.f32.mrb[22].mxu1  ;;  %v1949_v34 = vmax.f32 %v1586_v0, 0.0  ;;  %v1946_v38 = vmax.f32 %v1135_v49, 0.0 }
 0x132   : > { %v1141_v4 = vadd.f32 %v1140_v10, %v5710_v14  ;;  %v1142_v17 = vpop.f32.mrb[23].mxu0  ;;  %v1590_v22 = vadd.f32 %v1589_v13, %v5710_v14  ;;  %v1591_v51 = vpop.f32.mrb[23].mxu1  ;;  %v1947_v55 = vmax.f32 %v1137_v62, 0.0 }
 0x133   : > { %v1143_v57 = vadd.f32 %v1142_v17, %v5710_v14  ;;  %4321 = vmatpush1.bf16.xpose.msra.mxu0 %v4320_v53  ;;  %v1592_v63 = vadd.f32 %v1591_v51, %v5710_v14 }
 0x134   : > { %v1950_v46 = vmax.f32 %v1141_v4, 0.0  ;;  %v1952_v12 = vmax.f32 %v1590_v22, 0.0  ;;  %v5950_v4 = vpop.permute.xlu1 %749 }
 0x135   : > { %v1951_v7 = vmax.f32 %v1143_v57, 0.0  ;;  %v1146_v47 = vpop.f32.mrb[24].mxu0  ;;  %v1953_v10 = vmax.f32 %v1592_v63, 0.0  ;;  %v1595_v43 = vpop.f32.mrb[24].mxu1  ;;  %6967 = vst [vmem:[#allocation16_spill] sm:$0xff] %v5950_v4 }
 0x136   : > { %v4324_v6 = vpack.c.bf16 %v1950_v46, %v1946_v38  ;;  %v1148_v50 = vpop.f32.mrb[25].mxu0  ;;  %v5943_v13 = vpack.c.bf16 %v1952_v12, %v1948_v20  ;;  %v1596_v17 = vadd.f32 %v1595_v43, %v5730_v19  ;;  %v1597_v53 = vpop.f32.mrb[25].mxu1  ;;  %v1147_v49 = vadd.f32 %v1146_v47, %v5730_v19 }
 0x137   : > { %v4322_v0 = vpack.c.bf16 %v1951_v7, %v1947_v55  ;;  %v5946_v15 = vpack.c.bf16 %v1953_v10, %v1949_v34  ;;  %v1598_v14 = vadd.f32 %v1597_v53, %v5730_v19  ;;  %v1149_v62 = vadd.f32 %v1148_v50, %v5730_v19  ;;  %v5957_v47 = vpop.permute.xlu0 %594 }
 0x138   : > { %v1956_v63 = vmax.f32 %v1596_v17, 0.0  ;;  %v1954_v55 = vmax.f32 %v1147_v49, 0.0 }
 0x139   : > { %v1152_v22 = vpop.f32.mrb[26].mxu0  ;;  %4323 = vmatprep.subr.bf16.mxu0 %v4322_v0  ;;  %v1601_v51 = vpop.f32.mrb[26].mxu1  ;;  %v1957_v46 = vmax.f32 %v1598_v14, 0.0  ;;  %v1955_v50 = vmax.f32 %v1149_v62, 0.0 }
 0x13a   : > { %v1153_v20 = vadd.f32 %v1152_v22, %v5739_v21  ;;  %v1154_v57 = vpop.f32.mrb[27].mxu0  ;;  %v1602_v43 = vadd.f32 %v1601_v51, %v5739_v21  ;;  %v1603_v38 = vpop.f32.mrb[27].mxu1 }
 0x13b   : > { %v1155_v34 = vadd.f32 %v1154_v57, %v5739_v21  ;;  %4325 = vmatpush1.bf16.xpose.msra.mxu0 %v4324_v6  ;;  %v1604_v12 = vadd.f32 %v1603_v38, %v5739_v21 }
 0x13c   : > { %v1958_v7 = vmax.f32 %v1153_v20, 0.0  ;;  %v1960_v19 = vmax.f32 %v1602_v43, 0.0  ;;  %v5966_v20 = vpop.permute.xlu1 %599 }
 0x13d   : > { %v1959_v10 = vmax.f32 %v1155_v34, 0.0  ;;  %v1158_v53 = vpop.f32.mrb[28].mxu0  ;;  %v1961_v0 = vmax.f32 %v1604_v12, 0.0  ;;  %v1607_v22 = vpop.f32.mrb[28].mxu1 }
 0x13e   : > { %v4328_v17 = vpack.c.bf16 %v1958_v7, %v1954_v55  ;;  %v1160_v4 = vpop.f32.mrb[29].mxu0  ;;  %v5959_v51 = vpack.c.bf16 %v1960_v19, %v1956_v63  ;;  %v1608_v57 = vadd.f32 %v1607_v22, %v5759_v26  ;;  %v1609_v6 = vpop.f32.mrb[29].mxu1  ;;  %v1159_v49 = vadd.f32 %v1158_v53, %v5759_v26 }
 0x13f   : > { %v4326_v14 = vpack.c.bf16 %v1959_v10, %v1955_v50  ;;  %v5962_v42 = vpack.c.bf16 %v1961_v0, %v1957_v46  ;;  %v1610_v21 = vadd.f32 %v1609_v6, %v5759_v26  ;;  %v1161_v62 = vadd.f32 %v1160_v4, %v5759_v26  ;;  %v5973_v0 = vpop.permute.xlu0 %754 }
 0x140   : > { %v1964_v12 = vmax.f32 %v1608_v57, 0.0  ;;  %v1962_v10 = vmax.f32 %v1159_v49, 0.0  ;;  %6968 = vst [vmem:[#allocation17_spill] sm:$0xff] %v5973_v0 }
 0x141   : > { %v1164_v43 = vpop.f32.mrb[30].mxu0  ;;  %4327 = vmatprep.subr.bf16.mxu0 %v4326_v14  ;;  %v1613_v38 = vpop.f32.mrb[30].mxu1  ;;  %v1965_v19 = vmax.f32 %v1610_v21, 0.0  ;;  %v1963_v4 = vmax.f32 %v1161_v62, 0.0 }
 0x142   : > { %v1165_v63 = vadd.f32 %v1164_v43, %v5768_v28  ;;  %v1166_v34 = vpop.f32.mrb[31].mxu0  ;;  %v1614_v55 = vadd.f32 %v1613_v38, %v5768_v28  ;;  %v1615_v7 = vpop.f32.mrb[31].mxu1 }
 0x143   : > { %v1167_v46 = vadd.f32 %v1166_v34, %v5768_v28  ;;  %4329 = vmatpush1.bf16.xpose.msra.mxu0 %v4328_v17  ;;  %v1616_v50 = vadd.f32 %v1615_v7, %v5768_v28 }
 0x144   : > { %v1966_v53 = vmax.f32 %v1165_v63, 0.0  ;;  %v1968_v26 = vmax.f32 %v1614_v55, 0.0  ;;  %v5982_v63 = vpop.permute.xlu1 %759 }
 0x145   : > { %v1967_v22 = vmax.f32 %v1167_v46, 0.0  ;;  %v1170_v6 = vpop.f32.mrb[32].mxu0  ;;  %v1969_v14 = vmax.f32 %v1616_v50, 0.0  ;;  %v1619_v43 = vpop.f32.mrb[32].mxu1  ;;  %6969 = vst [vmem:[#allocation18_spill] sm:$0xff] %v5982_v63 }
 0x146   : > { %v4332_v57 = vpack.c.bf16 %v1966_v53, %v1962_v10  ;;  %v1172_v36 = vpop.f32.mrb[33].mxu0  ;;  %v5975_v38 = vpack.c.bf16 %v1968_v26, %v1964_v12  ;;  %v1620_v34 = vadd.f32 %v1619_v43, %v5801_v8  ;;  %v1621_v17 = vpop.f32.mrb[33].mxu1  ;;  %v1171_v49 = vadd.f32 %v1170_v6, %v5801_v8 }
 0x147   : > { %v4330_v21 = vpack.c.bf16 %v1967_v22, %v1963_v4  ;;  %v5978_v2 = vpack.c.bf16 %v1969_v14, %v1965_v19  ;;  %v1622_v28 = vadd.f32 %v1621_v17, %v5801_v8  ;;  %v1173_v62 = vadd.f32 %v1172_v36, %v5801_v8  ;;  %v5989_v14 = vpop.permute.xlu0 %604 }
 0x148   : > { %v1972_v50 = vmax.f32 %v1620_v34, 0.0  ;;  %v1970_v22 = vmax.f32 %v1171_v49, 0.0 }
 0x149   : > { %v1176_v55 = vpop.f32.mrb[34].mxu0  ;;  %4331 = vmatprep.subr.bf16.mxu0 %v4330_v21  ;;  %v1625_v7 = vpop.f32.mrb[34].mxu1  ;;  %v1973_v26 = vmax.f32 %v1622_v28, 0.0  ;;  %v1971_v36 = vmax.f32 %v1173_v62, 0.0 }
 0x14a   : > { %v1177_v12 = vadd.f32 %v1176_v55, %v5815_v35  ;;  %v1178_v46 = vpop.f32.mrb[35].mxu0  ;;  %v1626_v10 = vadd.f32 %v1625_v7, %v5815_v35  ;;  %v1627_v53 = vpop.f32.mrb[35].mxu1 }
 0x14b   : > { %v1179_v19 = vadd.f32 %v1178_v46, %v5815_v35  ;;  %4333 = vmatpush1.bf16.xpose.msra.mxu0 %v4332_v57  ;;  %v1628_v4 = vadd.f32 %v1627_v53, %v5815_v35 }
 0x14c   : > { %v1974_v6 = vmax.f32 %v1177_v12, 0.0  ;;  %v1976_v8 = vmax.f32 %v1626_v10, 0.0  ;;  %v5998_v12 = vpop.permute.xlu1 %609 }
 0x14d   : > { %v1975_v43 = vmax.f32 %v1179_v19, 0.0  ;;  %v1182_v17 = vpop.f32.mrb[36].mxu0  ;;  %v1977_v21 = vmax.f32 %v1628_v4, 0.0  ;;  %v1631_v55 = vpop.f32.mrb[36].mxu1 }
 0x14e   : > { %v4336_v34 = vpack.c.bf16 %v1974_v6, %v1970_v22  ;;  %v1184_v63 = vpop.f32.mrb[37].mxu0  ;;  %v5991_v7 = vpack.c.bf16 %v1976_v8, %v1972_v50  ;;  %v1632_v46 = vadd.f32 %v1631_v55, %v5861_v5  ;;  %v1633_v57 = vpop.f32.mrb[37].mxu1  ;;  %v1183_v49 = vadd.f32 %v1182_v17, %v5861_v5 }
 0x14f   : > { %v4334_v28 = vpack.c.bf16 %v1975_v43, %v1971_v36  ;;  %v5994_v0 = vpack.c.bf16 %v1977_v21, %v1973_v26  ;;  %v1634_v35 = vadd.f32 %v1633_v57, %v5861_v5  ;;  %v1185_v62 = vadd.f32 %v1184_v63, %v5861_v5  ;;  %v6005_v21 = vpop.permute.xlu0 %764 }
 0x150   : > { %6970 = vst [vmem:[#allocation19_spill] sm:$0xff] %v5991_v7  ;;  %v1980_v4 = vmax.f32 %v1632_v46, 0.0  ;;  %v1978_v43 = vmax.f32 %v1183_v49, 0.0  ;;  %6972 = vst [vmem:[#allocation21_spill] sm:$0xff] %v6005_v21 }
 0x151   : > { %6971 = vst [vmem:[#allocation20_spill] sm:$0xff] %v5994_v0  ;;  %v1188_v10 = vpop.f32.mrb[38].mxu0  ;;  %4335 = vmatprep.subr.bf16.mxu0 %v4334_v28  ;;  %v1637_v53 = vpop.f32.mrb[38].mxu1  ;;  %v1981_v8 = vmax.f32 %v1634_v35, 0.0  ;;  %v1979_v63 = vmax.f32 %v1185_v62, 0.0 }
 0x152   : > { %v1189_v50 = vadd.f32 %v1188_v10, %v5875_v40  ;;  %v1190_v19 = vpop.f32.mrb[39].mxu0  ;;  %v1638_v22 = vadd.f32 %v1637_v53, %v5875_v40  ;;  %v1639_v6 = vpop.f32.mrb[39].mxu1 }
 0x153   : > { %v1191_v26 = vadd.f32 %v1190_v19, %v5875_v40  ;;  %4337 = vmatpush1.bf16.xpose.msra.mxu0 %v4336_v34  ;;  %v1640_v36 = vadd.f32 %v1639_v6, %v5875_v40 }
 0x154   : > { %v1982_v17 = vmax.f32 %v1189_v50, 0.0  ;;  %v1984_v5 = vmax.f32 %v1638_v22, 0.0  ;;  %v6014_v50 = vpop.permute.xlu1 %769 }
 0x155   : > { %v1983_v55 = vmax.f32 %v1191_v26, 0.0  ;;  %v1194_v57 = vpop.f32.mrb[40].mxu0  ;;  %v1985_v28 = vmax.f32 %v1640_v36, 0.0  ;;  %v1643_v10 = vpop.f32.mrb[40].mxu1  ;;  %6973 = vst [vmem:[#allocation22_spill] sm:$0xff] %v6014_v50 }
 0x156   : > { %v4340_v46 = vpack.c.bf16 %v1982_v17, %v1978_v43  ;;  %v1196_v7 = vpop.f32.mrb[41].mxu0  ;;  %v6007_v53 = vpack.c.bf16 %v1984_v5, %v1980_v4  ;;  %v1644_v19 = vadd.f32 %v1643_v10, %v5921_v24  ;;  %v1645_v34 = vpop.f32.mrb[41].mxu1  ;;  %v1195_v49 = vadd.f32 %v1194_v57, %v5921_v24 }
 0x157   : > { %v4338_v35 = vpack.c.bf16 %v1983_v55, %v1979_v63  ;;  %v6010_v0 = vpack.c.bf16 %v1985_v28, %v1981_v8  ;;  %v1646_v40 = vadd.f32 %v1645_v34, %v5921_v24  ;;  %v1197_v62 = vadd.f32 %v1196_v7, %v5921_v24  ;;  %v6021_v28 = vpop.permute.xlu0 %614 }
 0x158   : > { %v1988_v36 = vmax.f32 %v1644_v19, 0.0  ;;  %v1986_v55 = vmax.f32 %v1195_v49, 0.0 }
 0x159   : > { %v1200_v22 = vpop.f32.mrb[42].mxu0  ;;  %4339 = vmatprep.subr.bf16.mxu0 %v4338_v35  ;;  %v1649_v6 = vpop.f32.mrb[42].mxu1  ;;  %v1989_v5 = vmax.f32 %v1646_v40, 0.0  ;;  %v1987_v7 = vmax.f32 %v1197_v62, 0.0 }
 0x15a   : > { %v1201_v4 = vadd.f32 %v1200_v22, %v5932_v61  ;;  %v1202_v26 = vpop.f32.mrb[43].mxu0  ;;  %v1650_v43 = vadd.f32 %v1649_v6, %v5932_v61  ;;  %v1651_v17 = vpop.f32.mrb[43].mxu1 }
 0x15b   : > { %v1203_v8 = vadd.f32 %v1202_v26, %v5932_v61  ;;  %4341 = vmatpush1.bf16.xpose.msra.mxu0 %v4340_v46  ;;  %v1652_v63 = vadd.f32 %v1651_v17, %v5932_v61 }
 0x15c   : > { %v1990_v57 = vmax.f32 %v1201_v4, 0.0  ;;  %v1992_v24 = vmax.f32 %v1650_v43, 0.0  ;;  %v6030_v4 = vpop.permute.xlu1 %619 }
 0x15d   : > { %v1991_v10 = vmax.f32 %v1203_v8, 0.0  ;;  %v1206_v34 = vpop.f32.mrb[44].mxu0  ;;  %v1993_v35 = vmax.f32 %v1652_v63, 0.0  ;;  %v1655_v22 = vpop.f32.mrb[44].mxu1 }
 0x15e   : > { %v4344_v19 = vpack.c.bf16 %v1990_v57, %v1986_v55  ;;  %v1208_v50 = vpop.f32.mrb[45].mxu0  ;;  %v6023_v6 = vpack.c.bf16 %v1992_v24, %v1988_v36  ;;  %v1656_v26 = vadd.f32 %v1655_v22, %v5957_v47  ;;  %v1657_v46 = vpop.f32.mrb[45].mxu1  ;;  %v1207_v49 = vadd.f32 %v1206_v34, %v5957_v47 }
 0x15f   : > { %v4342_v40 = vpack.c.bf16 %v1991_v10, %v1987_v7  ;;  %v6026_v21 = vpack.c.bf16 %v1993_v35, %v1989_v5  ;;  %v1658_v61 = vadd.f32 %v1657_v46, %v5957_v47  ;;  %v1209_v62 = vadd.f32 %v1208_v50, %v5957_v47  ;;  %v6037_v35 = vpop.permute.xlu0 %774 }
 0x160   : > { %6974 = vst [vmem:[#allocation23_spill] sm:$0xff] %v6023_v6  ;;  %v1996_v63 = vmax.f32 %v1656_v26, 0.0  ;;  %v1994_v10 = vmax.f32 %v1207_v49, 0.0  ;;  %6976 = vst [vmem:[#allocation25_spill] sm:$0xff] %v6037_v35 }
 0x161   : > { %6975 = vst [vmem:[#allocation24_spill] sm:$0xff] %v6026_v21  ;;  %v1212_v43 = vpop.f32.mrb[46].mxu0  ;;  %4343 = vmatprep.subr.bf16.mxu0 %v4342_v40  ;;  %v1661_v17 = vpop.f32.mrb[46].mxu1  ;;  %v1997_v24 = vmax.f32 %v1658_v61, 0.0  ;;  %v1995_v50 = vmax.f32 %v1209_v62, 0.0 }
 0x162   : > { %v1213_v36 = vadd.f32 %v1212_v43, %v5966_v20  ;;  %v1214_v8 = vpop.f32.mrb[47].mxu0  ;;  %v1662_v55 = vadd.f32 %v1661_v17, %v5966_v20  ;;  %v1663_v57 = vpop.f32.mrb[47].mxu1 }
 0x163   : > { %v1215_v5 = vadd.f32 %v1214_v8, %v5966_v20  ;;  %4345 = vmatpush1.bf16.xpose.msra.mxu0 %v4344_v19  ;;  %v1664_v7 = vadd.f32 %v1663_v57, %v5966_v20 }
 0x164   : > { %v1998_v34 = vmax.f32 %v1213_v36, 0.0  ;;  %v2000_v47 = vmax.f32 %v1662_v55, 0.0  ;;  %v6046_v36 = vpop.permute.xlu1 %779 }
 0x165   : > { %v1999_v22 = vmax.f32 %v1215_v5, 0.0  ;;  %v1218_v46 = vpop.f32.mrb[48].mxu0  ;;  %v2001_v40 = vmax.f32 %v1664_v7, 0.0  ;;  %v1667_v43 = vpop.f32.mrb[48].mxu1  ;;  %6977 = vst [vmem:[#allocation26_spill] sm:$0xff] %v6046_v36 }
 0x166   : > { %v4348_v26 = vpack.c.bf16 %v1998_v34, %v1994_v10  ;;  %v1220_v6 = vpop.f32.mrb[49].mxu0  ;;  %v6039_v17 = vpack.c.bf16 %v2000_v47, %v1996_v63  ;;  %v1668_v8 = vadd.f32 %v1667_v43, %v5989_v14  ;;  %v1669_v19 = vpop.f32.mrb[49].mxu1  ;;  %v1219_v49 = vadd.f32 %v1218_v46, %v5989_v14 }
 0x167   : > { %v4346_v61 = vpack.c.bf16 %v1999_v22, %v1995_v50  ;;  %v6042_v21 = vpack.c.bf16 %v2001_v40, %v1997_v24  ;;  %v1670_v20 = vadd.f32 %v1669_v19, %v5989_v14  ;;  %v1221_v62 = vadd.f32 %v1220_v6, %v5989_v14  ;;  %v625_v40 = vpop.permute.xlu0 %624 }
 0x168   : > { %v2004_v7 = vmax.f32 %v1668_v8, 0.0  ;;  %v2002_v22 = vmax.f32 %v1219_v49, 0.0 }
 0x169   : > { %v1224_v55 = vpop.f32.mrb[50].mxu0  ;;  %4347 = vmatprep.subr.bf16.mxu0 %v4346_v61  ;;  %v1673_v57 = vpop.f32.mrb[50].mxu1  ;;  %v2005_v47 = vmax.f32 %v1670_v20, 0.0  ;;  %v2003_v6 = vmax.f32 %v1221_v62, 0.0 }
 0x16a   : > { %v1225_v63 = vadd.f32 %v1224_v55, %v5998_v12  ;;  %v1226_v5 = vpop.f32.mrb[51].mxu0  ;;  %v1674_v10 = vadd.f32 %v1673_v57, %v5998_v12  ;;  %v1675_v34 = vpop.f32.mrb[51].mxu1 }
 0x16b   : > { %v1227_v24 = vadd.f32 %v1226_v5, %v5998_v12  ;;  %4349 = vmatpush1.bf16.xpose.msra.mxu0 %v4348_v26  ;;  %v1676_v50 = vadd.f32 %v1675_v34, %v5998_v12 }
 0x16c   : > { %v2006_v46 = vmax.f32 %v1225_v63, 0.0  ;;  %v2008_v14 = vmax.f32 %v1674_v10, 0.0  ;;  %v630_v63 = vpop.permute.xlu1 %629 }
 0x16d   : > { %v2007_v43 = vmax.f32 %v1227_v24, 0.0  ;;  %v1230_v19 = vpop.f32.mrb[52].mxu0  ;;  %v2009_v61 = vmax.f32 %v1676_v50, 0.0  ;;  %v1679_v55 = vpop.f32.mrb[52].mxu1 }
 0x16e   : > { %v4352_v36 = vpack.c.bf16 %v2006_v46, %v2002_v22  ;;  %v1232_v8 = vpop.f32.mrb[53].mxu0  ;;  %v6053_v35 = vpack.c.bf16 %v2008_v14, %v2004_v7  ;;  %v1680_v57 = vadd.f32 %v1679_v55, %v6021_v28  ;;  %v1681_v5 = vpop.f32.mrb[53].mxu1  ;;  %v1231_v49 = vadd.f32 %v1230_v19, %v6021_v28 }
 0x16f   : > { %v4350_v26 = vpack.c.bf16 %v2007_v43, %v2003_v6  ;;  %v6056_v20 = vpack.c.bf16 %v2009_v61, %v2005_v47  ;;  %v1682_v12 = vadd.f32 %v1681_v5, %v6021_v28  ;;  %v1233_v62 = vadd.f32 %v1232_v8, %v6021_v28  ;;  %v6065_v61 = vpop.permute.xlu0 %784 }
 0x170   : > { %6978 = vst [vmem:[#allocation27_spill] sm:$0xff] %v6053_v35  ;;  %v2012_v50 = vmax.f32 %v1680_v57, 0.0  ;;  %v2010_v43 = vmax.f32 %v1231_v49, 0.0  ;;  %6980 = vst [vmem:[#allocation29_spill] sm:$0xff] %v6065_v61 }
 0x171   : > { %6979 = vst [vmem:[#allocation28_spill] sm:$0xff] %v6056_v20  ;;  %v1236_v10 = vpop.f32.mrb[54].mxu0  ;;  %4351 = vmatprep.subr.bf16.mxu0 %v4350_v26  ;;  %v1685_v34 = vpop.f32.mrb[54].mxu1  ;;  %v2013_v14 = vmax.f32 %v1682_v12, 0.0  ;;  %v2011_v55 = vmax.f32 %v1233_v62, 0.0 }
 0x172   : > { %v1237_v24 = vadd.f32 %v1236_v10, %v6030_v4  ;;  %v1238_v7 = vpop.f32.mrb[55].mxu0  ;;  %v1686_v22 = vadd.f32 %v1685_v34, %v6030_v4  ;;  %v1687_v46 = vpop.f32.mrb[55].mxu1 }
 0x173   : > { %v1239_v47 = vadd.f32 %v1238_v7, %v6030_v4  ;;  %4353 = vmatpush1.bf16.xpose.msra.mxu0 %v4352_v36  ;;  %v1688_v6 = vadd.f32 %v1687_v46, %v6030_v4 }
 0x174   : > { %v2014_v19 = vmax.f32 %v1237_v24, 0.0  ;;  %v2016_v28 = vmax.f32 %v1686_v22, 0.0  ;;  %v6071_v24 = vpop.permute.xlu1 %789 }
 0x175   : > { %v2015_v8 = vmax.f32 %v1239_v47, 0.0  ;;  %v1242_v5 = vpop.f32.mrb[56].mxu0  ;;  %v2017_v26 = vmax.f32 %v1688_v6, 0.0  ;;  %v1691_v10 = vpop.f32.mrb[56].mxu1  ;;  %6983 = vst [vmem:[#allocation32_spill] sm:$0xff] %v6071_v24 }
 0x176   : > { %v4356_v57 = vpack.c.bf16 %v2014_v19, %v2010_v43  ;;  %v1244_v35 = vpop.f32.mrb[57].mxu0  ;;  %v6067_v34 = vpack.c.bf16 %v2016_v28, %v2012_v50  ;;  %v1692_v20 = vadd.f32 %v1691_v10, %v625_v40  ;;  %v1693_v7 = vpop.f32.mrb[57].mxu1  ;;  %v1243_v49 = vadd.f32 %v1242_v5, %v625_v40 }
 0x177   : > { %v4354_v36 = vpack.c.bf16 %v2015_v8, %v2011_v55  ;;  %v6069_v12 = vpack.c.bf16 %v2017_v26, %v2013_v14  ;;  %v1694_v4 = vadd.f32 %v1693_v7, %v625_v40  ;;  %v1245_v46 = vadd.f32 %v1244_v35, %v625_v40  ;;  %v635_v8 = vpop.permute.xlu0 %634 }
 0x178   : > { %6981 = vst [vmem:[#allocation30_spill] sm:$0xff] %v6067_v34  ;;  %v2020_v61 = vmax.f32 %v1692_v20, 0.0  ;;  %v2018_v55 = vmax.f32 %v1243_v49, 0.0 }
 0x179   : > { %6982 = vst [vmem:[#allocation31_spill] sm:$0xff] %v6069_v12  ;;  %v1248_v22 = vpop.f32.mrb[58].mxu0  ;;  %4355 = vmatprep.subr.bf16.mxu0 %v4354_v36  ;;  %v1697_v62 = vpop.f32.mrb[58].mxu1  ;;  %v2021_v28 = vmax.f32 %v1694_v4, 0.0  ;;  %v2019_v5 = vmax.f32 %v1245_v46, 0.0 }
 0x17a   : > { %v1249_v47 = vadd.f32 %v1248_v22, %v630_v63  ;;  %v1250_v6 = vpop.f32.mrb[59].mxu0  ;;  %v1698_v43 = vadd.f32 %v1697_v62, %v630_v63  ;;  %v1699_v19 = vpop.f32.mrb[59].mxu1 }
 0x17b   : > { %v1251_v50 = vadd.f32 %v1250_v6, %v630_v63  ;;  %4357 = vmatpush1.bf16.xpose.msra.mxu0 %v4356_v57  ;;  %v1700_v10 = vadd.f32 %v1699_v19, %v630_v63  ;;  %v640_v57 = vpop.permute.xlu1 %639 }
 0x17c   : > { %v2022_v14 = vmax.f32 %v1249_v47, 0.0  ;;  %v2024_v26 = vmax.f32 %v1698_v43, 0.0 }
 0x17d   : > { %v2023_v7 = vmax.f32 %v1251_v50, 0.0  ;;  %v1254_v34 = vpop.f32.mrb[60].mxu0  ;;  %v2025_v35 = vmax.f32 %v1700_v10, 0.0  ;;  %v1703_v40 = vpop.f32.mrb[60].mxu1 }
 0x17e   : > { %v4360_v36 = vpack.c.bf16 %v2022_v14, %v2018_v55  ;;  %v1256_v24 = vpop.f32.mrb[61].mxu0  ;;  %v6073_v22 = vpack.c.bf16 %v2024_v26, %v2020_v61  ;;  %v1704_v20 = vadd.f32 %v1703_v40, %v635_v8  ;;  %v1705_v62 = vpop.f32.mrb[61].mxu1  ;;  %v1255_v4 = vadd.f32 %v1254_v34, %v635_v8 }
 0x17f   : > { %v4358_v12 = vpack.c.bf16 %v2023_v7, %v2019_v5  ;;  %v6075_v6 = vpack.c.bf16 %v2025_v35, %v2021_v28  ;;  %v1706_v63 = vadd.f32 %v1705_v62, %v635_v8  ;;  %v1257_v49 = vadd.f32 %v1256_v24, %v635_v8 }
 0x180   : > { %6984 = vst [vmem:[#allocation33_spill] sm:$0xff] %v6073_v22  ;;  %v2028_v19 = vmax.f32 %v1704_v20, 0.0  ;;  %v2026_v40 = vmax.f32 %v1255_v4, 0.0 }
 0x181   : > { %v1260_v47 = vpop.f32.mrb[62].mxu0  ;;  %4359 = vmatprep.subr.bf16.mxu0 %v4358_v12  ;;  %v1709_v46 = vpop.f32.mrb[62].mxu1  ;;  %v2029_v61 = vmax.f32 %v1706_v63, 0.0  ;;  %v2027_v7 = vmax.f32 %v1257_v49, 0.0 }
 0x182   : > { %v1261_v43 = vadd.f32 %v1260_v47, %v640_v57  ;;  %v1262_v50 = vpop.f32.mrb[63].mxu0  ;;  %v1710_v10 = vadd.f32 %v1709_v46, %v640_v57  ;;  %v1711_v55 = vpop.f32.mrb[63].mxu1 }
 0x183   : > { %v1263_v14 = vadd.f32 %v1262_v50, %v640_v57  ;;  %4361 = vmatpush1.bf16.xpose.msra.mxu0 %v4360_v36  ;;  %v1712_v26 = vadd.f32 %v1711_v55, %v640_v57 }
 0x184   : > { %v2030_v5 = vmax.f32 %v1261_v43, 0.0  ;;  %v2032_v28 = vmax.f32 %v1710_v10, 0.0 }
 0x185   : > { %v2031_v35 = vmax.f32 %v1263_v14, 0.0  ;;  %v2033_v62 = vmax.f32 %v1712_v26, 0.0  ;;  %v1266_v34 = vpop.f32.mrb[64].mxu0  ;;  %v1715_v24 = vpop.f32.mrb[64].mxu1 }
 0x186   : > { %v4364_v8 = vpack.c.bf16 %v2030_v5, %v2026_v40  ;;  %v6077_v12 = vpack.c.bf16 %v2032_v28, %v2028_v19  ;;  %v1268_v47 = vpop.f32.mrb[65].mxu0  ;;  %v1717_v20 = vpop.f32.mrb[65].mxu1  ;;  %v1267_v63 = vadd.f32 %v1266_v34, %v5584_v45  ;;  %v1716_v36 = vadd.f32 %v1715_v24, %v5584_v45 }
 0x187   : > { %v4362_v22 = vpack.c.bf16 %v2031_v35, %v2027_v7  ;;  %v6079_v46 = vpack.c.bf16 %v2033_v62, %v2029_v61  ;;  %v1269_v57 = vadd.f32 %v1268_v47, %v5584_v45  ;;  %v1718_v4 = vadd.f32 %v1717_v20, %v5584_v45 }
 0x188   : > { %v2034_v26 = vmax.f32 %v1267_v63, 0.0  ;;  %v2036_v40 = vmax.f32 %v1716_v36, 0.0 }
 0x189   : > { %v1272_v49 = vpop.f32.mrb[66].mxu0  ;;  %v1721_v43 = vpop.f32.mrb[66].mxu1  ;;  %4363 = vmatprep.subr.bf16.mxu0 %v4362_v22  ;;  %v2035_v45 = vmax.f32 %v1269_v57, 0.0  ;;  %v2037_v7 = vmax.f32 %v1718_v4, 0.0 }
 0x18a   : > { %v1273_v50 = vadd.f32 %v1272_v49, %v5595_v48  ;;  %v1722_v19 = vadd.f32 %v1721_v43, %v5595_v48  ;;  %v1274_v10 = vpop.f32.mrb[67].mxu0  ;;  %v1723_v55 = vpop.f32.mrb[67].mxu1 }
 0x18b   : > { %v1275_v14 = vadd.f32 %v1274_v10, %v5595_v48  ;;  %v1724_v61 = vadd.f32 %v1723_v55, %v5595_v48  ;;  %4365 = vmatpush1.bf16.xpose.msra.mxu0 %v4364_v8 }
 0x18c   : > { %v2038_v5 = vmax.f32 %v1273_v50, 0.0  ;;  %v2040_v28 = vmax.f32 %v1722_v19, 0.0  ;;  %4367 = vmatprep.subr.bf16.mxu0 %v5812_v33 }
 0x18d   : > { %v2039_v22 = vmax.f32 %v1275_v14, 0.0  ;;  %v2041_v35 = vmax.f32 %v1724_v61, 0.0  ;;  %v1278_v62 = vpop.f32.mrb[68].mxu0  ;;  %v1727_v34 = vpop.f32.mrb[68].mxu1  ;;  %v6985_v14 = vmov 0.0009765625  }
 0x18e   : > { %v4432_v24 = vpack.c.bf16 %v2038_v5, %v2034_v26  ;;  %v6090_v47 = vpack.c.bf16 %v2040_v28, %v2036_v40  ;;  %v1280_v20 = vpop.f32.mrb[69].mxu0  ;;  %v1729_v49 = vpop.f32.mrb[69].mxu1  ;;  %v1279_v8 = vadd.f32 %v1278_v62, %v5608_v52  ;;  %v1728_v63 = vadd.f32 %v1727_v34, %v5608_v52 }
 0x18f   : > { %v4430_v43 = vpack.c.bf16 %v2039_v22, %v2035_v45  ;;  %v6092_v48 = vpack.c.bf16 %v2041_v35, %v2037_v7  ;;  %v1281_v33 = vadd.f32 %v1280_v20, %v5608_v52  ;;  %v1730_v36 = vadd.f32 %v1729_v49, %v5608_v52 }
 0x190   : > { %v2042_v52 = vmax.f32 %v1279_v8, 0.0  ;;  %v2044_v40 = vmax.f32 %v1728_v63, 0.0 }
 0x191   : > { %v1284_v57 = vpop.f32.mrb[70].mxu0  ;;  %v1733_v4 = vpop.f32.mrb[70].mxu1  ;;  %4431 = vmatprep.subr.bf16.mxu1 %v4430_v43  ;;  %v2043_v45 = vmax.f32 %v1281_v33, 0.0  ;;  %v2045_v7 = vmax.f32 %v1730_v36, 0.0 }
 0x192   : > { %v1285_v50 = vadd.f32 %v1284_v57, %v5617_v54  ;;  %v1734_v19 = vadd.f32 %v1733_v4, %v5617_v54  ;;  %v1286_v10 = vpop.f32.mrb[71].mxu0  ;;  %v1735_v55 = vpop.f32.mrb[71].mxu1  ;;  %2227 = vmatmul.mubr.f32.vlgmr.msra.gmra.mrb[128].mxu0 %v6985_v14  ;;  %4433 = vmatpush1.bf16.xpose.msra.mxu1 %v4432_v24 }
 0x193   : > { %v1287_v61 = vadd.f32 %v1286_v10, %v5617_v54  ;;  %v1736_v26 = vadd.f32 %v1735_v55, %v5617_v54  ;;  %4369 = vmatpush1.bf16.xpose.msra.mxu0 %v5805_v29  ;;  %2297 = vmatprep.mubr.f32.mxu0 %v6985_v14 }
 0x194   : > { %v2046_v5 = vmax.f32 %v1285_v50, 0.0  ;;  %v2048_v28 = vmax.f32 %v1734_v19, 0.0  ;;  %4371 = vmatprep.subr.bf16.mxu0 %v5842_v32 }
 0x195   : > { %v2047_v22 = vmax.f32 %v1287_v61, 0.0  ;;  %v2049_v35 = vmax.f32 %v1736_v26, 0.0  ;;  %v1290_v62 = vpop.f32.mrb[72].mxu0  ;;  %v1739_v34 = vpop.f32.mrb[72].mxu1 }
 0x196   : > { %v4436_v24 = vpack.c.bf16 %v2046_v5, %v2042_v52  ;;  %v6106_v20 = vpack.c.bf16 %v2048_v28, %v2044_v40  ;;  %v1292_v54 = vpop.f32.mrb[73].mxu0  ;;  %v1741_v49 = vpop.f32.mrb[73].mxu1  ;;  %v1291_v8 = vadd.f32 %v1290_v62, %v5630_v58  ;;  %v1740_v63 = vadd.f32 %v1739_v34, %v5630_v58 }
 0x197   : > { %v4434_v29 = vpack.c.bf16 %v2047_v22, %v2043_v45  ;;  %v6108_v43 = vpack.c.bf16 %v2049_v35, %v2045_v7  ;;  %v1293_v32 = vadd.f32 %v1292_v54, %v5630_v58  ;;  %v1742_v33 = vadd.f32 %v1741_v49, %v5630_v58 }
 0x198   : > { %v2050_v26 = vmax.f32 %v1291_v8, 0.0  ;;  %v2052_v52 = vmax.f32 %v1740_v63, 0.0 }
 0x199   : > { %v1296_v36 = vpop.f32.mrb[74].mxu0  ;;  %v1745_v57 = vpop.f32.mrb[74].mxu1  ;;  %4435 = vmatprep.subr.bf16.mxu1 %v4434_v29  ;;  %v2051_v5 = vmax.f32 %v1293_v32, 0.0  ;;  %v2053_v28 = vmax.f32 %v1742_v33, 0.0 }
 0x19a   : > { %v1297_v4 = vadd.f32 %v1296_v36, %v5639_v60  ;;  %v1746_v50 = vadd.f32 %v1745_v57, %v5639_v60  ;;  %v1298_v19 = vpop.f32.mrb[75].mxu0  ;;  %v1747_v10 = vpop.f32.mrb[75].mxu1  ;;  %4437 = vmatpush1.bf16.xpose.msra.mxu1 %v4436_v24 }
 0x19b   : > { %v1299_v55 = vadd.f32 %v1298_v19, %v5639_v60  ;;  %v1748_v61 = vadd.f32 %v1747_v10, %v5639_v60  ;;  %4373 = vmatpush1.bf16.xpose.msra.mxu0 %v5835_v27 }
 0x19c   : > { %v2054_v40 = vmax.f32 %v1297_v4, 0.0  ;;  %v2056_v58 = vmax.f32 %v1746_v50, 0.0  ;;  %4375 = vmatprep.subr.bf16.mxu0 %v5872_v37 }
 0x19d   : > { %v2055_v45 = vmax.f32 %v1299_v55, 0.0  ;;  %v2057_v7 = vmax.f32 %v1748_v61, 0.0  ;;  %v1302_v22 = vpop.f32.mrb[76].mxu0  ;;  %v1751_v35 = vpop.f32.mrb[76].mxu1 }
 0x19e   : > { %v4440_v62 = vpack.c.bf16 %v2054_v40, %v2050_v26  ;;  %v6120_v34 = vpack.c.bf16 %v2056_v58, %v2052_v52  ;;  %v1304_v24 = vpop.f32.mrb[77].mxu0  ;;  %v1753_v54 = vpop.f32.mrb[77].mxu1  ;;  %v1303_v27 = vadd.f32 %v1302_v22, %v5659_v1  ;;  %v1752_v29 = vadd.f32 %v1751_v35, %v5659_v1 }
 0x19f   : > { %v4438_v60 = vpack.c.bf16 %v2055_v45, %v2051_v5  ;;  %v6122_v49 = vpack.c.bf16 %v2057_v7, %v2053_v28  ;;  %v1305_v37 = vadd.f32 %v1304_v24, %v5659_v1  ;;  %v1754_v8 = vadd.f32 %v1753_v54, %v5659_v1 }
 0x1a0   : > { %v2058_v10 = vmax.f32 %v1303_v27, 0.0  ;;  %v2060_v55 = vmax.f32 %v1752_v29, 0.0 }
 0x1a1   : > { %v1308_v63 = vpop.f32.mrb[78].mxu0  ;;  %v1757_v32 = vpop.f32.mrb[78].mxu1  ;;  %4439 = vmatprep.subr.bf16.mxu1 %v4438_v60  ;;  %v2059_v26 = vmax.f32 %v1305_v37, 0.0  ;;  %v2061_v52 = vmax.f32 %v1754_v8, 0.0 }
 0x1a2   : > { %v1309_v33 = vadd.f32 %v1308_v63, %v5668_v3  ;;  %v1758_v36 = vadd.f32 %v1757_v32, %v5668_v3  ;;  %v1310_v57 = vpop.f32.mrb[79].mxu0  ;;  %v1759_v4 = vpop.f32.mrb[79].mxu1  ;;  %4441 = vmatpush1.bf16.xpose.msra.mxu1 %v4440_v62 }
 0x1a3   : > { %v1311_v50 = vadd.f32 %v1310_v57, %v5668_v3  ;;  %v1760_v19 = vadd.f32 %v1759_v4, %v5668_v3  ;;  %4377 = vmatpush1.bf16.xpose.msra.mxu0 %v5865_v31 }
 0x1a4   : > { %v2062_v61 = vmax.f32 %v1309_v33, 0.0  ;;  %v2064_v1 = vmax.f32 %v1758_v36, 0.0  ;;  %4379 = vmatprep.subr.bf16.mxu0 %v5902_v44 }
 0x1a5   : > { %v2063_v40 = vmax.f32 %v1311_v50, 0.0  ;;  %v2065_v58 = vmax.f32 %v1760_v19, 0.0  ;;  %v1314_v5 = vpop.f32.mrb[80].mxu0  ;;  %v1763_v28 = vpop.f32.mrb[80].mxu1 }
 0x1a6   : > { %v4444_v45 = vpack.c.bf16 %v2062_v61, %v2058_v10  ;;  %v6134_v7 = vpack.c.bf16 %v2064_v1, %v2060_v55  ;;  %v1316_v22 = vpop.f32.mrb[81].mxu0  ;;  %v1765_v35 = vpop.f32.mrb[81].mxu1  ;;  %v1315_v31 = vadd.f32 %v1314_v5, %v5688_v9  ;;  %v1764_v24 = vadd.f32 %v1763_v28, %v5688_v9 }
 0x1a7   : > { %v4442_v3 = vpack.c.bf16 %v2063_v40, %v2059_v26  ;;  %v6136_v62 = vpack.c.bf16 %v2065_v58, %v2061_v52  ;;  %v1317_v44 = vadd.f32 %v1316_v22, %v5688_v9  ;;  %v1766_v54 = vadd.f32 %v1765_v35, %v5688_v9 }
 0x1a8   : > { %v2066_v36 = vmax.f32 %v1315_v31, 0.0  ;;  %v2068_v57 = vmax.f32 %v1764_v24, 0.0 }
 0x1a9   : > { %v1320_v60 = vpop.f32.mrb[82].mxu0  ;;  %v1769_v27 = vpop.f32.mrb[82].mxu1  ;;  %4443 = vmatprep.subr.bf16.mxu1 %v4442_v3  ;;  %v2067_v50 = vmax.f32 %v1317_v44, 0.0  ;;  %v2069_v19 = vmax.f32 %v1766_v54, 0.0 }
 0x1aa   : > { %v1321_v29 = vadd.f32 %v1320_v60, %v5697_v11  ;;  %v1770_v37 = vadd.f32 %v1769_v27, %v5697_v11  ;;  %v1322_v8 = vpop.f32.mrb[83].mxu0  ;;  %v1771_v63 = vpop.f32.mrb[83].mxu1  ;;  %4445 = vmatpush1.bf16.xpose.msra.mxu1 %v4444_v45 }
 0x1ab   : > { %v1323_v32 = vadd.f32 %v1322_v8, %v5697_v11  ;;  %v1772_v33 = vadd.f32 %v1771_v63, %v5697_v11  ;;  %4381 = vmatpush1.bf16.xpose.msra.mxu0 %v5895_v41 }
 0x1ac   : > { %v2070_v4 = vmax.f32 %v1321_v29, 0.0  ;;  %v2072_v9 = vmax.f32 %v1770_v37, 0.0  ;;  %4383 = vmatprep.subr.bf16.mxu0 %v5927_v59 }
 0x1ad   : > { %v2071_v10 = vmax.f32 %v1323_v32, 0.0  ;;  %v2073_v55 = vmax.f32 %v1772_v33, 0.0  ;;  %v1326_v61 = vpop.f32.mrb[84].mxu0  ;;  %v1775_v1 = vpop.f32.mrb[84].mxu1 }
 0x1ae   : > { %v4448_v26 = vpack.c.bf16 %v2070_v4, %v2066_v36  ;;  %v6148_v52 = vpack.c.bf16 %v2072_v9, %v2068_v57  ;;  %v1328_v40 = vpop.f32.mrb[85].mxu0  ;;  %v1777_v58 = vpop.f32.mrb[85].mxu1  ;;  %v1327_v41 = vadd.f32 %v1326_v61, %v5717_v16  ;;  %v1776_v28 = vadd.f32 %v1775_v1, %v5717_v16 }
 0x1af   : > { %v4446_v11 = vpack.c.bf16 %v2071_v10, %v2067_v50  ;;  %v6150_v5 = vpack.c.bf16 %v2073_v55, %v2069_v19  ;;  %v1329_v59 = vadd.f32 %v1328_v40, %v5717_v16  ;;  %v1778_v45 = vadd.f32 %v1777_v58, %v5717_v16 }
 0x1b0   : > { %v2074_v27 = vmax.f32 %v1327_v41, 0.0  ;;  %v2076_v29 = vmax.f32 %v1776_v28, 0.0 }
 0x1b1   : > { %v1332_v22 = vpop.f32.mrb[86].mxu0  ;;  %v1781_v35 = vpop.f32.mrb[86].mxu1  ;;  %4447 = vmatprep.subr.bf16.mxu1 %v4446_v11  ;;  %v2075_v8 = vmax.f32 %v1329_v59, 0.0  ;;  %v2077_v63 = vmax.f32 %v1778_v45, 0.0 }
 0x1b2   : > { %v1333_v3 = vadd.f32 %v1332_v22, %v5726_v18  ;;  %v1782_v31 = vadd.f32 %v1781_v35, %v5726_v18  ;;  %v1334_v24 = vpop.f32.mrb[87].mxu0  ;;  %v1783_v44 = vpop.f32.mrb[87].mxu1  ;;  %4449 = vmatpush1.bf16.xpose.msra.mxu1 %v4448_v26 }
 0x1b3   : > { %v1335_v54 = vadd.f32 %v1334_v24, %v5726_v18  ;;  %v1784_v60 = vadd.f32 %v1783_v44, %v5726_v18  ;;  %4385 = vmatpush1.bf16.xpose.msra.mxu0 %v5925_v56 }
 0x1b4   : > { %v2078_v37 = vmax.f32 %v1333_v3, 0.0  ;;  %v2080_v16 = vmax.f32 %v1782_v31, 0.0  ;;  %4387 = vmatprep.subr.bf16.mxu0 %v5946_v15 }
 0x1b5   : > { %v2079_v32 = vmax.f32 %v1335_v54, 0.0  ;;  %v2081_v33 = vmax.f32 %v1784_v60, 0.0  ;;  %v1338_v36 = vpop.f32.mrb[88].mxu0  ;;  %v1787_v57 = vpop.f32.mrb[88].mxu1 }
 0x1b6   : > { %v4452_v4 = vpack.c.bf16 %v2078_v37, %v2074_v27  ;;  %v6162_v9 = vpack.c.bf16 %v2080_v16, %v2076_v29  ;;  %v1340_v50 = vpop.f32.mrb[89].mxu0  ;;  %v1789_v19 = vpop.f32.mrb[89].mxu1  ;;  %v1339_v56 = vadd.f32 %v1338_v36, %v5746_v23  ;;  %v1788_v55 = vadd.f32 %v1787_v57, %v5746_v23 }
 0x1b7   : > { %v4450_v18 = vpack.c.bf16 %v2079_v32, %v2075_v8  ;;  %v6164_v10 = vpack.c.bf16 %v2081_v33, %v2077_v63  ;;  %v1341_v15 = vadd.f32 %v1340_v50, %v5746_v23  ;;  %v1790_v61 = vadd.f32 %v1789_v19, %v5746_v23 }
 0x1b8   : > { %v2082_v45 = vmax.f32 %v1339_v56, 0.0  ;;  %v2084_v22 = vmax.f32 %v1788_v55, 0.0 }
 0x1b9   : > { %v1344_v1 = vpop.f32.mrb[90].mxu0  ;;  %v1793_v26 = vpop.f32.mrb[90].mxu1  ;;  %4451 = vmatprep.subr.bf16.mxu1 %v4450_v18  ;;  %v2083_v3 = vmax.f32 %v1341_v15, 0.0  ;;  %v2085_v31 = vmax.f32 %v1790_v61, 0.0 }
 0x1ba   : > { %v1345_v40 = vadd.f32 %v1344_v1, %v5755_v25  ;;  %v1794_v58 = vadd.f32 %v1793_v26, %v5755_v25  ;;  %v1346_v11 = vpop.f32.mrb[91].mxu0  ;;  %v1795_v41 = vpop.f32.mrb[91].mxu1  ;;  %4453 = vmatpush1.bf16.xpose.msra.mxu1 %v4452_v4 }
 0x1bb   : > { %v1347_v28 = vadd.f32 %v1346_v11, %v5755_v25  ;;  %v1796_v59 = vadd.f32 %v1795_v41, %v5755_v25  ;;  %4389 = vmatpush1.bf16.xpose.msra.mxu0 %v5943_v13 }
 0x1bc   : > { %v2086_v35 = vmax.f32 %v1345_v40, 0.0  ;;  %v2088_v23 = vmax.f32 %v1794_v58, 0.0  ;;  %4391 = vmatprep.subr.bf16.mxu0 %v5962_v42 }
 0x1bd   : > { %v2087_v24 = vmax.f32 %v1347_v28, 0.0  ;;  %v2089_v44 = vmax.f32 %v1796_v59, 0.0  ;;  %v1350_v54 = vpop.f32.mrb[92].mxu0  ;;  %v1799_v60 = vpop.f32.mrb[92].mxu1 }
 0x1be   : > { %v4456_v27 = vpack.c.bf16 %v2086_v35, %v2082_v45  ;;  %v6176_v29 = vpack.c.bf16 %v2088_v23, %v2084_v22  ;;  %v1352_v37 = vpop.f32.mrb[93].mxu0  ;;  %v1801_v16 = vpop.f32.mrb[93].mxu1  ;;  %v1351_v13 = vadd.f32 %v1350_v54, %v5775_v30  ;;  %v1800_v63 = vadd.f32 %v1799_v60, %v5775_v30  ;;  %v6987_v54 = vld [vmem:[#allocation12_spill] sm:$0xff] }
 0x1bf   : > { %v4454_v25 = vpack.c.bf16 %v2087_v24, %v2083_v3  ;;  %v6178_v8 = vpack.c.bf16 %v2089_v44, %v2085_v31  ;;  %v1353_v42 = vadd.f32 %v1352_v37, %v5775_v30  ;;  %v1802_v32 = vadd.f32 %v1801_v16, %v5775_v30 }
 0x1c0   : > { %v2090_v55 = vmax.f32 %v1351_v13, 0.0  ;;  %v2092_v15 = vmax.f32 %v1800_v63, 0.0 }
 0x1c1   : > { %v1356_v33 = vpop.f32.mrb[94].mxu0  ;;  %v1805_v36 = vpop.f32.mrb[94].mxu1  ;;  %4455 = vmatprep.subr.bf16.mxu1 %v4454_v25  ;;  %v2091_v1 = vmax.f32 %v1353_v42, 0.0  ;;  %v2093_v26 = vmax.f32 %v1802_v32, 0.0 }
 0x1c2   : > { %v1357_v57 = vadd.f32 %v1356_v33, %v5787_v39  ;;  %v1806_v4 = vadd.f32 %v1805_v36, %v5787_v39  ;;  %v1358_v50 = vpop.f32.mrb[95].mxu0  ;;  %v1807_v19 = vpop.f32.mrb[95].mxu1  ;;  %4457 = vmatpush1.bf16.xpose.msra.mxu1 %v4456_v27  ;;  %v6988_v36 = vld [vmem:[#allocation20_spill] sm:$0xff] }
 0x1c3   : > { %v1359_v18 = vadd.f32 %v1358_v50, %v5787_v39  ;;  %v1808_v56 = vadd.f32 %v1807_v19, %v5787_v39  ;;  %4393 = vmatpush1.bf16.xpose.msra.mxu0 %v5959_v51  ;;  %v6986_v51 = vld [vmem:[#allocation11_spill] sm:$0xff] }
 0x1c4   : > { %v2094_v61 = vmax.f32 %v1357_v57, 0.0  ;;  %v2096_v30 = vmax.f32 %v1806_v4, 0.0  ;;  %4395 = vmatprep.subr.bf16.mxu0 %v5978_v2 }
 0x1c5   : > { %v2095_v40 = vmax.f32 %v1359_v18, 0.0  ;;  %v2097_v58 = vmax.f32 %v1808_v56, 0.0  ;;  %v1362_v11 = vpop.f32.mrb[96].mxu0  ;;  %v1811_v41 = vpop.f32.mrb[96].mxu1 }
 0x1c6   : > { %v4460_v28 = vpack.c.bf16 %v2094_v61, %v2090_v55  ;;  %v6190_v59 = vpack.c.bf16 %v2096_v30, %v2092_v15  ;;  %v1364_v45 = vpop.f32.mrb[97].mxu0  ;;  %v1813_v22 = vpop.f32.mrb[97].mxu1  ;;  %v1363_v23 = vadd.f32 %v1362_v11, %v6986_v51  ;;  %v1812_v3 = vadd.f32 %v1811_v41, %v6986_v51 }
 0x1c7   : > { %v4458_v39 = vpack.c.bf16 %v2095_v40, %v2091_v1  ;;  %v6192_v35 = vpack.c.bf16 %v2097_v58, %v2093_v26  ;;  %v1365_v2 = vadd.f32 %v1364_v45, %v6986_v51  ;;  %v1814_v31 = vadd.f32 %v1813_v22, %v6986_v51  ;;  %v6990_v22 = vld [vmem:[#allocation14_spill] sm:$0xff] }
 0x1c8   : > { %v2098_v63 = vmax.f32 %v1363_v23, 0.0  ;;  %v2100_v42 = vmax.f32 %v1812_v3, 0.0 }
 0x1c9   : > { %v1368_v24 = vpop.f32.mrb[98].mxu0  ;;  %v1817_v44 = vpop.f32.mrb[98].mxu1  ;;  %4459 = vmatprep.subr.bf16.mxu1 %v4458_v39  ;;  %v2099_v57 = vmax.f32 %v1365_v2, 0.0  ;;  %v2101_v4 = vmax.f32 %v1814_v31, 0.0 }
 0x1ca   : > { %v1369_v60 = vadd.f32 %v1368_v24, %v6987_v54  ;;  %v1818_v27 = vadd.f32 %v1817_v44, %v6987_v54  ;;  %v1370_v37 = vpop.f32.mrb[99].mxu0  ;;  %v1819_v16 = vpop.f32.mrb[99].mxu1  ;;  %4461 = vmatpush1.bf16.xpose.msra.mxu1 %v4460_v28  ;;  %v6991_v24 = vld [vmem:[#allocation19_spill] sm:$0xff] }
 0x1cb   : > { %v1371_v25 = vadd.f32 %v1370_v37, %v6987_v54  ;;  %v1820_v13 = vadd.f32 %v1819_v16, %v6987_v54  ;;  %4397 = vmatpush1.bf16.xpose.msra.mxu0 %v5975_v38  ;;  %v6989_v38 = vld [vmem:[#allocation13_spill] sm:$0xff] }
 0x1cc   : > { %v2102_v32 = vmax.f32 %v1369_v60, 0.0  ;;  %v2104_v33 = vmax.f32 %v1818_v27, 0.0  ;;  %4399 = vmatprep.subr.bf16.mxu0 %v6988_v36 }
 0x1cd   : > { %v2103_v50 = vmax.f32 %v1371_v25, 0.0  ;;  %v2105_v19 = vmax.f32 %v1820_v13, 0.0  ;;  %v1374_v18 = vpop.f32.mrb[100].mxu0  ;;  %v1823_v56 = vpop.f32.mrb[100].mxu1 }
 0x1ce   : > { %v4464_v55 = vpack.c.bf16 %v2102_v32, %v2098_v63  ;;  %v6204_v15 = vpack.c.bf16 %v2104_v33, %v2100_v42  ;;  %v1376_v61 = vpop.f32.mrb[101].mxu0  ;;  %v1825_v30 = vpop.f32.mrb[101].mxu1  ;;  %v1375_v40 = vadd.f32 %v1374_v18, %v6989_v38  ;;  %v1824_v58 = vadd.f32 %v1823_v56, %v6989_v38 }
 0x1cf   : > { %v4462_v1 = vpack.c.bf16 %v2103_v50, %v2099_v57  ;;  %v6206_v26 = vpack.c.bf16 %v2105_v19, %v2101_v4  ;;  %v1377_v11 = vadd.f32 %v1376_v61, %v6989_v38  ;;  %v1826_v41 = vadd.f32 %v1825_v30, %v6989_v38  ;;  %v6992_v19 = vld [vmem:[#allocation15_spill] sm:$0xff] }
 0x1d0   : > { %v2106_v44 = vmax.f32 %v1375_v40, 0.0  ;;  %v2108_v54 = vmax.f32 %v1824_v58, 0.0 }
 0x1d1   : > { %v1380_v28 = vpop.f32.mrb[102].mxu0  ;;  %v1829_v45 = vpop.f32.mrb[102].mxu1  ;;  %4463 = vmatprep.subr.bf16.mxu1 %v4462_v1  ;;  %v2107_v37 = vmax.f32 %v1377_v11, 0.0  ;;  %v2109_v16 = vmax.f32 %v1826_v41, 0.0  ;;  %v6993_v1 = vld [vmem:[#allocation16_spill] sm:$0xff] }
 0x1d2   : > { %v1381_v39 = vadd.f32 %v1380_v28, %v6990_v22  ;;  %v1830_v51 = vadd.f32 %v1829_v45, %v6990_v22  ;;  %v1382_v23 = vpop.f32.mrb[103].mxu0  ;;  %v1831_v3 = vpop.f32.mrb[103].mxu1  ;;  %4465 = vmatpush1.bf16.xpose.msra.mxu1 %v4464_v55 }
 0x1d3   : > { %v1383_v2 = vadd.f32 %v1382_v23, %v6990_v22  ;;  %v1832_v31 = vadd.f32 %v1831_v3, %v6990_v22  ;;  %4401 = vmatpush1.bf16.xpose.msra.mxu0 %v6991_v24  ;;  %v6994_v23 = vld [vmem:[#allocation24_spill] sm:$0xff] }
 0x1d4   : > { %v2110_v60 = vmax.f32 %v1381_v39, 0.0  ;;  %v2112_v27 = vmax.f32 %v1830_v51, 0.0  ;;  %4403 = vmatprep.subr.bf16.mxu0 %v6010_v0 }
 0x1d5   : > { %v2111_v25 = vmax.f32 %v1383_v2, 0.0  ;;  %v2113_v13 = vmax.f32 %v1832_v31, 0.0  ;;  %v1386_v63 = vpop.f32.mrb[104].mxu0  ;;  %v1835_v42 = vpop.f32.mrb[104].mxu1 }
 0x1d6   : > { %v4468_v32 = vpack.c.bf16 %v2110_v60, %v2106_v44  ;;  %v6218_v33 = vpack.c.bf16 %v2112_v27, %v2108_v54  ;;  %v1388_v36 = vpop.f32.mrb[105].mxu0  ;;  %v1837_v57 = vpop.f32.mrb[105].mxu1  ;;  %v1387_v18 = vadd.f32 %v1386_v63, %v6992_v19  ;;  %v1836_v56 = vadd.f32 %v1835_v42, %v6992_v19 }
 0x1d7   : > { %v4466_v4 = vpack.c.bf16 %v2111_v25, %v2107_v37  ;;  %v6220_v50 = vpack.c.bf16 %v2113_v13, %v2109_v16  ;;  %v1389_v0 = vadd.f32 %v1388_v36, %v6992_v19  ;;  %v1838_v55 = vadd.f32 %v1837_v57, %v6992_v19  ;;  %v6996_v19 = vld [vmem:[#allocation18_spill] sm:$0xff] }
 0x1d8   : > { %v2114_v45 = vmax.f32 %v1387_v18, 0.0  ;;  %v2116_v22 = vmax.f32 %v1836_v56, 0.0 }
 0x1d9   : > { %v1392_v61 = vpop.f32.mrb[106].mxu0  ;;  %v1841_v30 = vpop.f32.mrb[106].mxu1  ;;  %4467 = vmatprep.subr.bf16.mxu1 %v4466_v4  ;;  %v2115_v3 = vmax.f32 %v1389_v0, 0.0  ;;  %v2117_v2 = vmax.f32 %v1838_v55, 0.0 }
 0x1da   : > { %v1393_v38 = vadd.f32 %v1392_v61, %v6993_v1  ;;  %v1842_v40 = vadd.f32 %v1841_v30, %v6993_v1  ;;  %v1394_v58 = vpop.f32.mrb[107].mxu0  ;;  %v1843_v11 = vpop.f32.mrb[107].mxu1  ;;  %4469 = vmatpush1.bf16.xpose.msra.mxu1 %v4468_v32 }
 0x1db   : > { %v1395_v41 = vadd.f32 %v1394_v58, %v6993_v1  ;;  %v1844_v28 = vadd.f32 %v1843_v11, %v6993_v1  ;;  %4405 = vmatpush1.bf16.xpose.msra.mxu0 %v6007_v53  ;;  %v6995_v53 = vld [vmem:[#allocation17_spill] sm:$0xff]  ;;  %v6997_v1 = vld [vmem:[#allocation23_spill] sm:$0xff] }
 0x1dc   : > { %v2118_v39 = vmax.f32 %v1393_v38, 0.0  ;;  %v2120_v51 = vmax.f32 %v1842_v40, 0.0  ;;  %4407 = vmatprep.subr.bf16.mxu0 %v6994_v23 }
 0x1dd   : > { %v2119_v31 = vmax.f32 %v1395_v41, 0.0  ;;  %v2121_v24 = vmax.f32 %v1844_v28, 0.0  ;;  %v1398_v44 = vpop.f32.mrb[108].mxu0  ;;  %v1847_v54 = vpop.f32.mrb[108].mxu1 }
 0x1de   : > { %v4472_v60 = vpack.c.bf16 %v2118_v39, %v2114_v45  ;;  %v6232_v27 = vpack.c.bf16 %v2120_v51, %v2116_v22  ;;  %v1400_v37 = vpop.f32.mrb[109].mxu0  ;;  %v1849_v16 = vpop.f32.mrb[109].mxu1  ;;  %v1399_v63 = vadd.f32 %v1398_v44, %v6995_v53  ;;  %v1848_v42 = vadd.f32 %v1847_v54, %v6995_v53  ;;  %v6998_v54 = vld [vmem:[#allocation21_spill] sm:$0xff] }
 0x1df   : > { %v4470_v25 = vpack.c.bf16 %v2119_v31, %v2115_v3  ;;  %v6234_v13 = vpack.c.bf16 %v2121_v24, %v2117_v2  ;;  %v1401_v32 = vadd.f32 %v1400_v37, %v6995_v53  ;;  %v1850_v36 = vadd.f32 %v1849_v16, %v6995_v53 }
 0x1e0   : > { %v2122_v38 = vmax.f32 %v1399_v63, 0.0  ;;  %v2124_v40 = vmax.f32 %v1848_v42, 0.0  ;;  %v6999_v63 = vld [vmem:[#allocation22_spill] sm:$0xff] }
 0x1e1   : > { %v1404_v57 = vpop.f32.mrb[110].mxu0  ;;  %v1853_v4 = vpop.f32.mrb[110].mxu1  ;;  %4471 = vmatprep.subr.bf16.mxu1 %v4470_v25  ;;  %v2123_v41 = vmax.f32 %v1401_v32, 0.0  ;;  %v2125_v28 = vmax.f32 %v1850_v36, 0.0 }
 0x1e2   : > { %v1405_v18 = vadd.f32 %v1404_v57, %v6996_v19  ;;  %v1854_v56 = vadd.f32 %v1853_v4, %v6996_v19  ;;  %v1406_v0 = vpop.f32.mrb[111].mxu0  ;;  %v1855_v55 = vpop.f32.mrb[111].mxu1  ;;  %4473 = vmatpush1.bf16.xpose.msra.mxu1 %v4472_v60 }
 0x1e3   : > { %v1407_v61 = vadd.f32 %v1406_v0, %v6996_v19  ;;  %v1856_v30 = vadd.f32 %v1855_v55, %v6996_v19  ;;  %4409 = vmatpush1.bf16.xpose.msra.mxu0 %v6997_v1 }
 0x1e4   : > { %v2126_v58 = vmax.f32 %v1405_v18, 0.0  ;;  %v2128_v11 = vmax.f32 %v1854_v56, 0.0  ;;  %4411 = vmatprep.subr.bf16.mxu0 %v6042_v21 }
 0x1e5   : > { %v2127_v45 = vmax.f32 %v1407_v61, 0.0  ;;  %v2129_v22 = vmax.f32 %v1856_v30, 0.0  ;;  %v1410_v39 = vpop.f32.mrb[112].mxu0  ;;  %v1859_v51 = vpop.f32.mrb[112].mxu1  ;;  %v7000_v61 = vld [vmem:[#allocation28_spill] sm:$0xff] }
 0x1e6   : > { %v4476_v23 = vpack.c.bf16 %v2126_v58, %v2122_v38  ;;  %v6246_v3 = vpack.c.bf16 %v2128_v11, %v2124_v40  ;;  %v1412_v2 = vpop.f32.mrb[113].mxu0  ;;  %v1861_v31 = vpop.f32.mrb[113].mxu1  ;;  %v1411_v60 = vadd.f32 %v1410_v39, %v6998_v54  ;;  %v1860_v37 = vadd.f32 %v1859_v51, %v6998_v54 }
 0x1e7   : > { %v4474_v24 = vpack.c.bf16 %v2127_v45, %v2123_v41  ;;  %v6248_v44 = vpack.c.bf16 %v2129_v22, %v2125_v28  ;;  %v1413_v21 = vadd.f32 %v1412_v2, %v6998_v54  ;;  %v1862_v16 = vadd.f32 %v1861_v31, %v6998_v54 }
 0x1e8   : > { %v2130_v18 = vmax.f32 %v1411_v60, 0.0  ;;  %v2132_v56 = vmax.f32 %v1860_v37, 0.0  ;;  %v7002_v37 = vld [vmem:[#allocation26_spill] sm:$0xff] }
 0x1e9   : > { %v1416_v25 = vpop.f32.mrb[114].mxu0  ;;  %v1865_v53 = vpop.f32.mrb[114].mxu1  ;;  %4475 = vmatprep.subr.bf16.mxu1 %v4474_v24  ;;  %v2131_v30 = vmax.f32 %v1413_v21, 0.0  ;;  %v2133_v1 = vmax.f32 %v1862_v16, 0.0 }
 0x1ea   : > { %v1417_v42 = vadd.f32 %v1416_v25, %v6999_v63  ;;  %v1866_v32 = vadd.f32 %v1865_v53, %v6999_v63  ;;  %v1418_v36 = vpop.f32.mrb[115].mxu0  ;;  %v1867_v57 = vpop.f32.mrb[115].mxu1  ;;  %4477 = vmatpush1.bf16.xpose.msra.mxu1 %v4476_v23 }
 0x1eb   : > { %v1419_v4 = vadd.f32 %v1418_v36, %v6999_v63  ;;  %v1868_v19 = vadd.f32 %v1867_v57, %v6999_v63  ;;  %4413 = vmatpush1.bf16.xpose.msra.mxu0 %v6039_v17  ;;  %v7001_v17 = vld [vmem:[#allocation25_spill] sm:$0xff] }
 0x1ec   : > { %v2134_v0 = vmax.f32 %v1417_v42, 0.0  ;;  %v2136_v55 = vmax.f32 %v1866_v32, 0.0  ;;  %4415 = vmatprep.subr.bf16.mxu0 %v7000_v61  ;;  %v7003_v32 = vld [vmem:[#allocation27_spill] sm:$0xff] }
 0x1ed   : > { %v2135_v38 = vmax.f32 %v1419_v4, 0.0  ;;  %v2137_v40 = vmax.f32 %v1868_v19, 0.0  ;;  %v1422_v58 = vpop.f32.mrb[116].mxu0  ;;  %v1871_v11 = vpop.f32.mrb[116].mxu1 }
 0x1ee   : > { %v4480_v41 = vpack.c.bf16 %v2134_v0, %v2130_v18  ;;  %v6260_v28 = vpack.c.bf16 %v2136_v55, %v2132_v56  ;;  %v1424_v45 = vpop.f32.mrb[117].mxu0  ;;  %v1873_v22 = vpop.f32.mrb[117].mxu1  ;;  %v1423_v23 = vadd.f32 %v1422_v58, %v7001_v17  ;;  %v1872_v2 = vadd.f32 %v1871_v11, %v7001_v17  ;;  %v7004_v18 = vld [vmem:[#allocation31_spill] sm:$0xff] }
 0x1ef   : > { %v4478_v39 = vpack.c.bf16 %v2135_v38, %v2131_v30  ;;  %v6262_v51 = vpack.c.bf16 %v2137_v40, %v2133_v1  ;;  %v1425_v31 = vadd.f32 %v1424_v45, %v7001_v17  ;;  %v1874_v24 = vadd.f32 %v1873_v22, %v7001_v17  ;;  %v7005_v22 = vld [vmem:[#allocation29_spill] sm:$0xff] }
 0x1f0   : > { %v2138_v36 = vmax.f32 %v1423_v23, 0.0  ;;  %v2140_v57 = vmax.f32 %v1872_v2, 0.0 }
 0x1f1   : > { %v1428_v54 = vpop.f32.mrb[118].mxu0  ;;  %v1877_v60 = vpop.f32.mrb[118].mxu1  ;;  %4479 = vmatprep.subr.bf16.mxu1 %v4478_v39  ;;  %v2139_v56 = vmax.f32 %v1425_v31, 0.0  ;;  %v2141_v0 = vmax.f32 %v1874_v24, 0.0 }
 0x1f2   : > { %v1429_v21 = vadd.f32 %v1428_v54, %v7002_v37  ;;  %v1878_v16 = vadd.f32 %v1877_v60, %v7002_v37  ;;  %v1430_v25 = vpop.f32.mrb[119].mxu0  ;;  %v1879_v53 = vpop.f32.mrb[119].mxu1  ;;  %4481 = vmatpush1.bf16.xpose.msra.mxu1 %v4480_v41  ;;  %v7006_v54 = vld [vmem:[#allocation32_spill] sm:$0xff] }
 0x1f3   : > { %v1431_v63 = vadd.f32 %v1430_v25, %v7002_v37  ;;  %v1880_v42 = vadd.f32 %v1879_v53, %v7002_v37  ;;  %4417 = vmatpush1.bf16.xpose.msra.mxu0 %v7003_v32 }
 0x1f4   : > { %v2142_v4 = vmax.f32 %v1429_v21, 0.0  ;;  %v2144_v19 = vmax.f32 %v1878_v16, 0.0  ;;  %4419 = vmatprep.subr.bf16.mxu0 %v7004_v18 }
 0x1f5   : > { %v2143_v55 = vmax.f32 %v1431_v63, 0.0  ;;  %v2145_v61 = vmax.f32 %v1880_v42, 0.0  ;;  %v1434_v30 = vpop.f32.mrb[120].mxu0  ;;  %v1883_v1 = vpop.f32.mrb[120].mxu1  ;;  %v7007_v63 = vld [vmem:[#allocation30_spill] sm:$0xff] }
 0x1f6   : > { %v4484_v38 = vpack.c.bf16 %v2142_v4, %v2138_v36  ;;  %v6274_v40 = vpack.c.bf16 %v2144_v19, %v2140_v57  ;;  %v1436_v58 = vpop.f32.mrb[121].mxu0  ;;  %v1885_v11 = vpop.f32.mrb[121].mxu1  ;;  %v1435_v39 = vadd.f32 %v1434_v30, %v7005_v22  ;;  %v1884_v17 = vadd.f32 %v1883_v1, %v7005_v22 }
 0x1f7   : > { %v4482_v41 = vpack.c.bf16 %v2143_v55, %v2139_v56  ;;  %v6276_v45 = vpack.c.bf16 %v2145_v61, %v2141_v0  ;;  %v1437_v23 = vadd.f32 %v1436_v58, %v7005_v22  ;;  %v1886_v2 = vadd.f32 %v1885_v11, %v7005_v22  ;;  %v795_v42 = vpop.permute.xlu0 %794 }
 0x1f8   : > { %v2146_v32 = vmax.f32 %v1435_v39, 0.0  ;;  %v2148_v36 = vmax.f32 %v1884_v17, 0.0  ;;  %v800_v17 = vpop.permute.xlu1 %799 }
 0x1f9   : > { %v1440_v31 = vpop.f32.mrb[122].mxu0  ;;  %v1889_v24 = vpop.f32.mrb[122].mxu1  ;;  %4483 = vmatprep.subr.bf16.mxu1 %v4482_v41  ;;  %v2147_v19 = vmax.f32 %v1437_v23, 0.0  ;;  %v2149_v18 = vmax.f32 %v1886_v2, 0.0 }
 0x1fa   : > { %v1441_v60 = vadd.f32 %v1440_v31, %v7006_v54  ;;  %v1890_v37 = vadd.f32 %v1889_v24, %v7006_v54  ;;  %v1442_v21 = vpop.f32.mrb[123].mxu0  ;;  %v1891_v16 = vpop.f32.mrb[123].mxu1  ;;  %4485 = vmatpush1.bf16.xpose.msra.mxu1 %v4484_v38 }
 0x1fb   : > { %v1443_v25 = vadd.f32 %v1442_v21, %v7006_v54  ;;  %v1892_v53 = vadd.f32 %v1891_v16, %v7006_v54  ;;  %4421 = vmatpush1.bf16.xpose.msra.mxu0 %v7007_v63 }
 0x1fc   : > { %v2150_v57 = vmax.f32 %v1441_v60, 0.0  ;;  %v2152_v4 = vmax.f32 %v1890_v37, 0.0  ;;  %4423 = vmatprep.subr.bf16.mxu0 %v6075_v6 }
 0x1fd   : > { %v2151_v56 = vmax.f32 %v1443_v25, 0.0  ;;  %v2153_v0 = vmax.f32 %v1892_v53, 0.0  ;;  %v1446_v55 = vpop.f32.mrb[124].mxu0  ;;  %v1895_v61 = vpop.f32.mrb[124].mxu1  ;;  %v7008_v25 = vld [vmem:[#allocation33_spill] sm:$0xff] }
 0x1fe   : > { %v4488_v30 = vpack.c.bf16 %v2150_v57, %v2146_v32  ;;  %v6288_v1 = vpack.c.bf16 %v2152_v4, %v2148_v36  ;;  %v1896_v38 = vadd.f32 %v1895_v61, %v795_v42  ;;  %v1448_v58 = vpop.f32.mrb[125].mxu0  ;;  %v1897_v11 = vpop.f32.mrb[125].mxu1  ;;  %v1447_v31 = vadd.f32 %v1446_v55, %v795_v42  ;;  %v4679_v61 = vld [vmem:[%s6929_s3 + $0x6c] ss:$16 sps:$4 sm:$0xff] (!%p4090_p1)  }
 0x1ff   : > { %v4486_v41 = vpack.c.bf16 %v2151_v56, %v2147_v19  ;;  %v4550_v22 = vpack.c.bf16 %v2153_v0, %v2149_v18  ;;  %v1898_v39 = vadd.f32 %v1897_v11, %v795_v42  ;;  %v1449_v24 = vadd.f32 %v1448_v58, %v795_v42  ;;  %v4685_v58 = vld [vmem:[%s6929_s3 + $0x8c] ss:$16 sps:$4 sm:$0xff] (!%p4090_p1)   ;;  %v4687_v11 = vld [vmem:[%s6929_s3 + $0x80] ss:$16 sps:$4 sm:$0xff] (!%p4090_p1)  }
 0x200   : > { %v2154_v53 = vmax.f32 %v1447_v31, 0.0  ;;  %v2156_v63 = vmax.f32 %v1896_v38, 0.0  ;;  %v4683_v38 = vld [vmem:[%s6929_s3 + $0x84] ss:$16 sps:$4 sm:$0xff] (!%p4090_p1)   ;;  %v4694_v31 = vld [vmem:[%s6929_s3 + $0xa8] ss:$16 sps:$4 sm:$0xff] (!%p4090_p1)  }
 0x201   : > { %v1452_v54 = vpop.f32.mrb[126].mxu0  ;;  %v1901_v6 = vpop.f32.mrb[126].mxu1  ;;  %4487 = vmatprep.subr.bf16.mxu1 %v4486_v41  ;;  %v2155_v57 = vmax.f32 %v1449_v24, 0.0  ;;  %v2157_v42 = vmax.f32 %v1898_v39, 0.0  ;;  %v4688_v41 = vld [vmem:[%s6929_s3 + $0x88] ss:$16 sps:$4 sm:$0xff] (!%p4090_p1)  }
 0x202   : > { %v1453_v23 = vadd.f32 %v1452_v54, %v800_v17  ;;  %v1902_v2 = vadd.f32 %v1901_v6, %v800_v17  ;;  %v1454_v60 = vpop.f32.mrb[127].mxu0  ;;  %v1903_v37 = vpop.f32.mrb[127].mxu1  ;;  %4489 = vmatpush1.bf16.xpose.msra.mxu1 %v4488_v30  ;;  %v4681_v30 = vld [vmem:[%s6929_s3 + $0x60] ss:$16 sps:$4 sm:$0xff] (!%p4090_p1)   ;;  %v4691_v39 = vld [vmem:[%s6929_s3 + $0xac] ss:$16 sps:$4 sm:$0xff] (!%p4090_p1)  }
 0x203   : > { %v1455_v21 = vadd.f32 %v1454_v60, %v800_v17  ;;  %v1904_v16 = vadd.f32 %v1903_v37, %v800_v17  ;;  %4425 = vmatpush1.bf16.xpose.msra.mxu0 %v7008_v25  ;;  %v4693_v17 = vld [vmem:[%s6929_s3 + $0xa0] ss:$16 sps:$4 sm:$0xff] (!%p4090_p1)   ;;  %v4695_v24 = vld [vmem:[%s6929_s3 + $0xc4] ss:$16 sps:$4 sm:$0xff] (!%p4090_p1)   ;;  %v4697_v54 = vld [vmem:[%s6929_s3 + $0xcc] ss:$16 sps:$4 sm:$0xff] (!%p4090_p1)  }
 0x204   : > { %v2158_v32 = vmax.f32 %v1453_v23, 0.0  ;;  %v2160_v36 = vmax.f32 %v1902_v2, 0.0  ;;  %4427 = vmatprep.subr.bf16.mxu0 %v6079_v46  ;;  %v4699_v6 = vld [vmem:[%s6929_s3 + $0xc0] ss:$16 sps:$4 sm:$0xff] (!%p4090_p1)   ;;  %v4700_v23 = vld [vmem:[%s6929_s3 + $0xc8] ss:$16 sps:$4 sm:$0xff] (!%p4090_p1)  }
 0x205   : > { %v2159_v4 = vmax.f32 %v1455_v21, 0.0  ;;  %v2161_v19 = vmax.f32 %v1904_v16, 0.0  ;;  %v4701_v2 = vld [vmem:[%s6929_s3 + $0xe4] ss:$16 sps:$4 sm:$0xff] (!%p4090_p1)   ;;  %v4703_v60 = vld [vmem:[%s6929_s3 + $0xec] ss:$16 sps:$4 sm:$0xff] (!%p4090_p1)  }
 0x206   : > { %v4492_v18 = vpack.c.bf16 %v2158_v32, %v2154_v53  ;;  %v4556_v56 = vpack.c.bf16 %v2160_v36, %v2156_v63  ;;  %v4705_v37 = vld [vmem:[%s6929_s3 + $0xe0] ss:$16 sps:$4 sm:$0xff] (!%p4090_p1)   ;;  %v4706_v21 = vld [vmem:[%s6929_s3 + $0xe8] ss:$16 sps:$4 sm:$0xff] (!%p4090_p1)   ;;  %v4707_v16 = vld [vmem:[%s6929_s3 + $0x104] ss:$16 sps:$4 sm:$0xff] (!%p4090_p1)  }
 0x207   : > { %v4490_v0 = vpack.c.bf16 %v2159_v4, %v2155_v57  ;;  %v4554_v55 = vpack.c.bf16 %v2161_v19, %v2157_v42  ;;  %v4709_v25 = vld [vmem:[%s6929_s3 + $0x10c] ss:$16 sps:$4 sm:$0xff] (!%p4090_p1)   ;;  %v4711_v53 = vld [vmem:[%s6929_s3 + $0x100] ss:$16 sps:$4 sm:$0xff] (!%p4090_p1)   ;;  %v4712_v63 = vld [vmem:[%s6929_s3 + $0x108] ss:$16 sps:$4 sm:$0xff] (!%p4090_p1)  }
 0x208   : > { %v4713_v32 = vld [vmem:[%s6929_s3 + $0x124] ss:$16 sps:$4 sm:$0xff] (!%p4090_p1)   ;;  %v4715_v36 = vld [vmem:[%s6929_s3 + $0x12c] ss:$16 sps:$4 sm:$0xff] (!%p4090_p1)   ;;  %v4717_v57 = vld [vmem:[%s6929_s3 + $0x120] ss:$16 sps:$4 sm:$0xff] (!%p4090_p1)  }
 0x209   : > { %4491 = vmatprep.subr.bf16.mxu1 %v4490_v0  ;;  %v4718_v42 = vld [vmem:[%s6929_s3 + $0x128] ss:$16 sps:$4 sm:$0xff] (!%p4090_p1)   ;;  %v4719_v4 = vld [vmem:[%s6929_s3 + $0x144] ss:$16 sps:$4 sm:$0xff] (!%p4090_p1)   ;;  %v4721_v19 = vld [vmem:[%s6929_s3 + $0x14c] ss:$16 sps:$4 sm:$0xff] (!%p4090_p1)  }
 0x20a   : > { %4493 = vmatpush1.bf16.xpose.msra.mxu1 %v4492_v18  ;;  %v4723_v18 = vld [vmem:[%s6929_s3 + $0x140] ss:$16 sps:$4 sm:$0xff] (!%p4090_p1)  }
 0x20b   : > { %4429 = vmatpush1.bf16.xpose.msra.mxu0 %v6077_v12  ;;  %4495 = vmatprep.subr.bf16.mxu1 %v6092_v48  ;;  %v5015_v48 = vmov 1966171168  }
 0x211   : > { %2369 = vmatmul.mubr.f32.vlgmr.msra.gmra.mrb[128].mxu1 %v6985_v14 }
 0x212   : > { %4497 = vmatpush1.bf16.xpose.msra.mxu1 %v6090_v47  ;;  %2439 = vmatprep.mubr.f32.mxu1 %v6985_v14 }
 0x213   : > { %4499 = vmatprep.subr.bf16.mxu1 %v6108_v43  ;;  %2298 = vmatmul.mubr.f32.vlgmr.msra.gmra.mrb[128].mxu0 %v6985_v14  ;;  %v2456_v43 = vlaneseq }
 0x215   : > { %vm2479_vm3 = vcmp.lt.s32.totalorder %v2456_v43, 512 }
 0x21a   : > { %4501 = vmatpush1.bf16.xpose.msra.mxu1 %v6106_v20  ;;  %v2454_v20 = vunpack.c.l.s4 %v5015_v48 }
 0x21b   : > { %4503 = vmatprep.subr.bf16.mxu1 %v6122_v49  ;;  %v6326_v49 = vshrl.u32 %v2456_v43, 7  ;;  %v4731_v43 = vld [vmem:[%s6929_s3 + $0x184] ss:$16 sps:$4 sm:$0xff] (!%p4090_p1)  }
 0x21d   : > { %v2494_v0 = vsub.s32 (!%p4090_p1), 1, %v6326_v49 }
 0x222   : > { %4505 = vmatpush1.bf16.xpose.msra.mxu1 %v6120_v34  ;;  %v2455_v34 = vunpack.c.0.s8 %v2454_v20  ;;  %v4730_v20 = vld [vmem:[%s6929_s3 + $0x168] ss:$16 sps:$4 sm:$0xff] (!%p4090_p1)  }
 0x223   : > { %4507 = vmatprep.subr.bf16.mxu1 %v6136_v62 }
 0x224   : > { %v2458_v62 = vsub.s32 %v2455_v34, %v6326_v49  ;;  %v4733_v34 = vld [vmem:[%s6929_s3 + $0x18c] ss:$16 sps:$4 sm:$0xff] (!%p4090_p1)  }
 0x22a   : > { %4509 = vmatpush1.bf16.xpose.msra.mxu1 %v6134_v7 }
 0x22b   : > { %4511 = vmatprep.subr.bf16.mxu1 %v6150_v5 }
 0x232   : > { %4513 = vmatpush1.bf16.xpose.msra.mxu1 %v6148_v52 }
 0x233   : > { %4515 = vmatprep.subr.bf16.mxu1 %v6164_v10 }
 0x23a   : > { %4517 = vmatpush1.bf16.xpose.msra.mxu1 %v6162_v9 }
 0x23b   : > { %4519 = vmatprep.subr.bf16.mxu1 %v6178_v8 }
 0x242   : > { %4521 = vmatpush1.bf16.xpose.msra.mxu1 %v6176_v29 }
 0x243   : > { %4523 = vmatprep.subr.bf16.mxu1 %v6192_v35  ;;  %v4659_v35 = vld [vmem:[%s6929_s3 + $0x4] ss:$16 sps:$4 sm:$0xff] (!%p4090_p1)  }
 0x244   : > { %3302 = vmatprep.subr.bf16.mxu0 (!%p4090_p1), %v4659_v35  ;;  %v2490_v35 = vsub.s32 (!%p4090_p1), 0, %v6326_v49 }
 0x24a   : > { %4525 = vmatpush1.bf16.xpose.msra.mxu1 %v6190_v59 }
 0x24b   : > { %4527 = vmatprep.subr.bf16.mxu1 %v6206_v26  ;;  %v4663_v26 = vld [vmem:[%s6929_s3] ss:$16 sps:$4 sm:$0xff] (!%p4090_p1)  }
 0x24c   : > { %3303 = vmatpush1.bf16.msra.mxu0 (!%p4090_p1), %v4663_v26  ;;  %v4749_v26 = vld [vmem:[%s6929_s3 + $0x1e4] ss:$16 sps:$4 sm:$0xff] (!%p4090_p1)  }
 0x252   : > { %4529 = vmatpush1.bf16.xpose.msra.mxu1 %v6204_v15  ;;  %v4661_v15 = vld [vmem:[%s6929_s3 + $0xc] ss:$16 sps:$4 sm:$0xff] (!%p4090_p1)  }
 0x253   : > { %4531 = vmatprep.subr.bf16.mxu1 %v6220_v50  ;;  %v4665_v50 = vld [vmem:[%s6929_s3 + $0x24] ss:$16 sps:$4 sm:$0xff] (!%p4090_p1)  }
 0x254   : > { %3304 = vmatprep.subr.bf16.mxu0 (!%p4090_p1), %v4665_v50  ;;  %v2502_v50 = vsub.s32 (!%p4090_p1), 3, %v6326_v49 }
 0x25a   : > { %4533 = vmatpush1.bf16.xpose.msra.mxu1 %v6218_v33  ;;  %v4664_v33 = vld [vmem:[%s6929_s3 + $0x8] ss:$16 sps:$4 sm:$0xff] (!%p4090_p1)  }
 0x25b   : > { %4535 = vmatprep.subr.bf16.mxu1 %v6234_v13  ;;  %v4669_v13 = vld [vmem:[%s6929_s3 + $0x20] ss:$16 sps:$4 sm:$0xff] (!%p4090_p1)  }
 0x25c   : > { %3305 = vmatpush1.bf16.msra.mxu0 (!%p4090_p1), %v4669_v13 }
 0x262   : > { %4537 = vmatpush1.bf16.xpose.msra.mxu1 %v6232_v27  ;;  %v4667_v27 = vld [vmem:[%s6929_s3 + $0x2c] ss:$16 sps:$4 sm:$0xff] (!%p4090_p1)  }
 0x263   : > { %4539 = vmatprep.subr.bf16.mxu1 %v6248_v44  ;;  %v4671_v44 = vld [vmem:[%s6929_s3 + $0x44] ss:$16 sps:$4 sm:$0xff] (!%p4090_p1)  }
 0x264   : > { %3306 = vmatprep.subr.bf16.mxu0 (!%p4090_p1), %v4671_v44  ;;  %v4757_v44 = vld [vmem:[%s6929_s3 + $0x204] ss:$16 sps:$4 sm:$0xff] (!%p4090_p1)  }
 0x26a   : > { %4541 = vmatpush1.bf16.xpose.msra.mxu1 %v6246_v3  ;;  %v4670_v3 = vld [vmem:[%s6929_s3 + $0x28] ss:$16 sps:$4 sm:$0xff] (!%p4090_p1)  }
 0x26b   : > { %4543 = vmatprep.subr.bf16.mxu1 %v6262_v51  ;;  %v4675_v51 = vld [vmem:[%s6929_s3 + $0x40] ss:$16 sps:$4 sm:$0xff] (!%p4090_p1)  }
 0x26c   : > { %3307 = vmatpush1.bf16.msra.mxu0 (!%p4090_p1), %v4675_v51 }
 0x272   : > { %4545 = vmatpush1.bf16.xpose.msra.mxu1 %v6260_v28  ;;  %v4673_v28 = vld [vmem:[%s6929_s3 + $0x4c] ss:$16 sps:$4 sm:$0xff] (!%p4090_p1)  }
 0x273   : > { %4547 = vmatprep.subr.bf16.mxu1 %v6276_v45  ;;  %v4677_v45 = vld [vmem:[%s6929_s3 + $0x64] ss:$16 sps:$4 sm:$0xff] (!%p4090_p1)  }
 0x274   : > { %3308 = vmatprep.subr.bf16.mxu0 (!%p4090_p1), %v4677_v45 }
 0x275   : > { %3309 = vmatpush1.bf16.msra.mxu0 (!%p4090_p1), %v4681_v30  ;;  %v4763_v30 = vld [vmem:[%s6929_s3 + $0x224] ss:$16 sps:$4 sm:$0xff] (!%p4090_p1)  }
 0x276   : > { %3310 = vmatprep.subr.bf16.mxu0 (!%p4090_p1), %v4683_v38 }
 0x279   : > { %3311 = vmatpush1.bf16.msra.mxu0 (!%p4090_p1), %v4687_v11  ;;  %v4764_v11 = vld [vmem:[%s6929_s3 + $0x228] ss:$16 sps:$4 sm:$0xff] (!%p4090_p1)  }
 0x27a   : > { %4549 = vmatpush1.bf16.xpose.msra.mxu1 %v6274_v40  ;;  %v4676_v40 = vld [vmem:[%s6929_s3 + $0x48] ss:$16 sps:$4 sm:$0xff] (!%p4090_p1)  }
 0x27b   : > { %4551 = vmatprep.subr.bf16.mxu1 %v4550_v22  ;;  %v4689_v22 = vld [vmem:[%s6929_s3 + $0xa4] ss:$16 sps:$4 sm:$0xff] (!%p4090_p1)  }
 0x27c   : > { %3312 = vmatprep.subr.bf16.mxu0 (!%p4090_p1), %v4689_v22  ;;  %v4772_v22 = vld [vmem:[%s6929_s3 + $0x24c] ss:$16 sps:$4 sm:$0xff] (!%p4090_p1)  }
 0x27d   : > { %3313 = vmatpush1.bf16.msra.mxu0 (!%p4090_p1), %v4693_v17  ;;  %v4770_v17 = vld [vmem:[%s6929_s3 + $0x248] ss:$16 sps:$4 sm:$0xff] (!%p4090_p1)  }
 0x27e   : > { %3314 = vmatprep.subr.bf16.mxu0 (!%p4090_p1), %v4695_v24  ;;  %v4778_v24 = vld [vmem:[%s6929_s3 + $0x26c] ss:$16 sps:$4 sm:$0xff] (!%p4090_p1)  }
 0x281   : > { %3315 = vmatpush1.bf16.msra.mxu0 (!%p4090_p1), %v4699_v6  ;;  %v4776_v6 = vld [vmem:[%s6929_s3 + $0x268] ss:$16 sps:$4 sm:$0xff] (!%p4090_p1)  }
 0x282   : > { %4553 = vmatpush1.bf16.xpose.msra.mxu1 %v6288_v1  ;;  %v4682_v1 = vld [vmem:[%s6929_s3 + $0x68] ss:$16 sps:$4 sm:$0xff] (!%p4090_p1)   ;;  %3316 = vmatprep.subr.bf16.mxu0 (!%p4090_p1), %v4701_v2  ;;  %v4784_v2 = vld [vmem:[%s6929_s3 + $0x28c] ss:$16 sps:$4 sm:$0xff] (!%p4090_p1)  }
 0x283   : > { %4555 = vmatprep.subr.bf16.mxu1 %v4554_v55  ;;  %v4725_v55 = vld [vmem:[%s6929_s3 + $0x164] ss:$16 sps:$4 sm:$0xff] (!%p4090_p1)  }
 0x285   : > { %3317 = vmatpush1.bf16.msra.mxu0 (!%p4090_p1), %v4705_v37  ;;  %v4782_v37 = vld [vmem:[%s6929_s3 + $0x288] ss:$16 sps:$4 sm:$0xff] (!%p4090_p1)  }
 0x286   : > { %3318 = vmatprep.subr.bf16.mxu0 (!%p4090_p1), %v4707_v16  ;;  %v4790_v16 = vld [vmem:[%s6929_s3 + $0x2ac] ss:$16 sps:$4 sm:$0xff] (!%p4090_p1)  }
 0x289   : > { %3319 = vmatpush1.bf16.msra.mxu0 (!%p4090_p1), %v4711_v53  ;;  %v4788_v53 = vld [vmem:[%s6929_s3 + $0x2a8] ss:$16 sps:$4 sm:$0xff] (!%p4090_p1)  }
 0x28a   : > { %4557 = vmatpush1.bf16.xpose.msra.mxu1 %v4556_v56  ;;  %3320 = vmatprep.subr.bf16.mxu0 (!%p4090_p1), %v4713_v32  ;;  %v4724_v56 = vld [vmem:[%s6929_s3 + $0x148] ss:$16 sps:$4 sm:$0xff] (!%p4090_p1)   ;;  %v4796_v32 = vld [vmem:[%s6929_s3 + $0x2cc] ss:$16 sps:$4 sm:$0xff] (!%p4090_p1)  }
 0x28b   : > { %3384 = vmatprep.subr.bf16.mxu1 (!%p4090_p1), %v4661_v15  ;;  %v4748_v15 = vld [vmem:[%s6929_s3 + $0x1c8] ss:$16 sps:$4 sm:$0xff] (!%p4090_p1)  }
 0x28d   : > { %3321 = vmatpush1.bf16.msra.mxu0 (!%p4090_p1), %v4717_v57  ;;  %v4794_v57 = vld [vmem:[%s6929_s3 + $0x2c8] ss:$16 sps:$4 sm:$0xff] (!%p4090_p1)  }
 0x28e   : > { %3322 = vmatprep.subr.bf16.mxu0 (!%p4090_p1), %v4719_v4  ;;  %v4802_v4 = vld [vmem:[%s6929_s3 + $0x2ec] ss:$16 sps:$4 sm:$0xff] (!%p4090_p1)  }
 0x291   : > { %2440 = vmatmul.mubr.f32.vlgmr.msra.gmra.mrb[128].mxu1 %v6985_v14  ;;  %v2446_v14 = vld [vmem:[%s5142_s15] sm:$0xf]  ;;  %3323 = vmatpush1.bf16.msra.mxu0 (!%p4090_p1), %v4723_v18  ;;  %v4800_v18 = vld [vmem:[%s6929_s3 + $0x2e8] ss:$16 sps:$4 sm:$0xff] (!%p4090_p1)  }
 0x292   : > { %3385 = vmatpush1.bf16.msra.mxu1 (!%p4090_p1), %v4664_v33  ;;  %3324 = vmatprep.subr.bf16.mxu0 (!%p4090_p1), %v4725_v55  ;;  %v4751_v33 = vld [vmem:[%s6929_s3 + $0x1ec] ss:$16 sps:$4 sm:$0xff] (!%p4090_p1)  }
 0x293   : > { %3386 = vmatprep.subr.bf16.mxu1 (!%p4090_p1), %v4667_v27  ;;  %v4753_v27 = vld [vmem:[%s6929_s3 + $0x1e0] ss:$16 sps:$4 sm:$0xff] (!%p4090_p1)   ;;  %v4808_v55 = vld [vmem:[%s6929_s3 + $0x30c] ss:$16 sps:$4 sm:$0xff] (!%p4090_p1)  }
 0x296   : > { %3387 = vmatpush1.bf16.msra.mxu1 (!%p4090_p1), %v4670_v3  ;;  %v4754_v3 = vld [vmem:[%s6929_s3 + $0x1e8] ss:$16 sps:$4 sm:$0xff] (!%p4090_p1)  }
 0x297   : > { %3388 = vmatprep.subr.bf16.mxu1 (!%p4090_p1), %v4673_v28  ;;  %v4760_v28 = vld [vmem:[%s6929_s3 + $0x20c] ss:$16 sps:$4 sm:$0xff] (!%p4090_p1)  }
 0x29a   : > { %3389 = vmatpush1.bf16.msra.mxu1 (!%p4090_p1), %v4676_v40  ;;  %v4755_v40 = vld [vmem:[%s6929_s3 + $0x200] ss:$16 sps:$4 sm:$0xff] (!%p4090_p1)  }
 0x29b   : > { %3390 = vmatprep.subr.bf16.mxu1 (!%p4090_p1), %v4679_v61  ;;  %v4758_v61 = vld [vmem:[%s6929_s3 + $0x208] ss:$16 sps:$4 sm:$0xff] (!%p4090_p1)  }
 0x29e   : > { %3391 = vmatpush1.bf16.msra.mxu1 (!%p4090_p1), %v4682_v1  ;;  %v4766_v1 = vld [vmem:[%s6929_s3 + $0x22c] ss:$16 sps:$4 sm:$0xff] (!%p4090_p1)  }
 0x29f   : > { %3392 = vmatprep.subr.bf16.mxu1 (!%p4090_p1), %v4685_v58  ;;  %v4761_v58 = vld [vmem:[%s6929_s3 + $0x220] ss:$16 sps:$4 sm:$0xff] (!%p4090_p1)  }
 0x2a2   : > { %3393 = vmatpush1.bf16.msra.mxu1 (!%p4090_p1), %v4688_v41  ;;  %v4769_v41 = vld [vmem:[%s6929_s3 + $0x244] ss:$16 sps:$4 sm:$0xff] (!%p4090_p1)  }
 0x2a3   : > { %3394 = vmatprep.subr.bf16.mxu1 (!%p4090_p1), %v4691_v39  ;;  %v4767_v39 = vld [vmem:[%s6929_s3 + $0x240] ss:$16 sps:$4 sm:$0xff] (!%p4090_p1)  }
 0x2a6   : > { %3395 = vmatpush1.bf16.msra.mxu1 (!%p4090_p1), %v4694_v31  ;;  %v4775_v31 = vld [vmem:[%s6929_s3 + $0x264] ss:$16 sps:$4 sm:$0xff] (!%p4090_p1)  }
 0x2a7   : > { %3396 = vmatprep.subr.bf16.mxu1 (!%p4090_p1), %v4697_v54  ;;  %v4773_v54 = vld [vmem:[%s6929_s3 + $0x260] ss:$16 sps:$4 sm:$0xff] (!%p4090_p1)  }
 0x2aa   : > { %3397 = vmatpush1.bf16.msra.mxu1 (!%p4090_p1), %v4700_v23  ;;  %v4781_v23 = vld [vmem:[%s6929_s3 + $0x284] ss:$16 sps:$4 sm:$0xff] (!%p4090_p1)  }
 0x2ab   : > { %3398 = vmatprep.subr.bf16.mxu1 (!%p4090_p1), %v4703_v60  ;;  %v4779_v60 = vld [vmem:[%s6929_s3 + $0x280] ss:$16 sps:$4 sm:$0xff] (!%p4090_p1)  }
 0x2ae   : > { %3399 = vmatpush1.bf16.msra.mxu1 (!%p4090_p1), %v4706_v21  ;;  %v4787_v21 = vld [vmem:[%s6929_s3 + $0x2a4] ss:$16 sps:$4 sm:$0xff] (!%p4090_p1)  }
 0x2af   : > { %3400 = vmatprep.subr.bf16.mxu1 (!%p4090_p1), %v4709_v25  ;;  %v4785_v25 = vld [vmem:[%s6929_s3 + $0x2a0] ss:$16 sps:$4 sm:$0xff] (!%p4090_p1)  }
 0x2b2   : > { %3401 = vmatpush1.bf16.msra.mxu1 (!%p4090_p1), %v4712_v63  ;;  %v4793_v63 = vld [vmem:[%s6929_s3 + $0x2c4] ss:$16 sps:$4 sm:$0xff] (!%p4090_p1)  }
 0x2b3   : > { %3402 = vmatprep.subr.bf16.mxu1 (!%p4090_p1), %v4715_v36  ;;  %v4791_v36 = vld [vmem:[%s6929_s3 + $0x2c0] ss:$16 sps:$4 sm:$0xff] (!%p4090_p1)  }
 0x2b6   : > { %3403 = vmatpush1.bf16.msra.mxu1 (!%p4090_p1), %v4718_v42  ;;  %v4799_v42 = vld [vmem:[%s6929_s3 + $0x2e4] ss:$16 sps:$4 sm:$0xff] (!%p4090_p1)  }
 0x2b7   : > { %3404 = vmatprep.subr.bf16.mxu1 (!%p4090_p1), %v4721_v19  ;;  %v4797_v19 = vld [vmem:[%s6929_s3 + $0x2e0] ss:$16 sps:$4 sm:$0xff] (!%p4090_p1)  }
 0x2ba   : > { %3405 = vmatpush1.bf16.msra.mxu1 (!%p4090_p1), %v4724_v56  ;;  %v4805_v56 = vld [vmem:[%s6929_s3 + $0x304] ss:$16 sps:$4 sm:$0xff] (!%p4090_p1)  }
 0x2e6   : > { %v2299_v12 = vpop.f32.mrb[128].mxu0 }
 0x2e7   : > { %v2301_v46 = vpop.f32.mrb[129].mxu0 }
 0x2e8   : > { %v2451_v47 = vcombine.low %v2299_v12, %v2301_v46  ;;  %v4727_v12 = vld [vmem:[%s6929_s3 + $0x16c] ss:$16 sps:$4 sm:$0xff] (!%p4090_p1)  }
 0x2e9   : > { %3406 = vmatprep.subr.bf16.mxu1 (!%p4090_p1), %v4727_v12  ;;  %v4803_v12 = vld [vmem:[%s6929_s3 + $0x300] ss:$16 sps:$4 sm:$0xff] (!%p4090_p1)  }
 0x2ea   : > { %v2459_v9 = vrot.slane %v2451_v47, %v2458_v62  ;;  %v4729_v47 = vld [vmem:[%s6929_s3 + $0x160] ss:$16 sps:$4 sm:$0xff] (!%p4090_p1)   ;;  %3407 = vmatpush1.bf16.msra.mxu1 (!%p4090_p1), %v4730_v20  ;;  %v4814_v20 = vld [vmem:[%s6929_s3 + $0x32c] ss:$16 sps:$4 sm:$0xff] (!%p4090_p1)  }
 0x2eb   : > { %3325 = vmatpush1.bf16.msra.mxu0 (!%p4090_p1), %v4729_v47  ;;  %3408 = vmatprep.subr.bf16.mxu1 (!%p4090_p1), %v4733_v34  ;;  %v4806_v47 = vld [vmem:[%s6929_s3 + $0x308] ss:$16 sps:$4 sm:$0xff] (!%p4090_p1)  }
 0x2ec   : > { %3326 = vmatprep.subr.bf16.mxu0 (!%p4090_p1), %v4731_v43  ;;  %v4809_v43 = vld [vmem:[%s6929_s3 + $0x320] ss:$16 sps:$4 sm:$0xff] (!%p4090_p1)   ;;  %v4812_v34 = vld [vmem:[%s6929_s3 + $0x328] ss:$16 sps:$4 sm:$0xff] (!%p4090_p1)  }
 0x364   : > { %v2441_v7 = vpop.f32.mrb[128].mxu1 }
 0x365   : > { %v2443_v52 = vpop.f32.mrb[129].mxu1 }
 0x366   : > { %v2452_v5 = vcombine.low %v2441_v7, %v2443_v52  ;;  %v4736_v52 = vld [vmem:[%s6929_s3 + $0x188] ss:$16 sps:$4 sm:$0xff] (!%p4090_p1)  }
 0x367   : > { %3409 = vmatpush1.bf16.msra.mxu1 (!%p4090_p1), %v4736_v52  ;;  %v4815_v52 = vld [vmem:[%s6929_s3 + $0x340] ss:$16 sps:$4 sm:$0xff] (!%p4090_p1)  }
 0x368   : > { %v2466_v10 = vrot.slane %v2452_v5, %v2458_v62  ;;  %v4737_v5 = vld [vmem:[%s6929_s3 + $0x1a4] ss:$16 sps:$4 sm:$0xff] (!%p4090_p1)  }
 0x36a   : > { %v2467_v29 = vcombine.low %v2459_v9, %v2466_v10  ;;  %2485 = sbr.rel (%p4090_p1) target bundleno = 1397 (0x575), region = 56  ;;  %v4739_v9 = vld [vmem:[%s6929_s3 + $0x1ac] ss:$16 sps:$4 sm:$0xff] (!%p4090_p1)   ;;  %v4741_v10 = vld [vmem:[%s6929_s3 + $0x1a0] ss:$16 sps:$4 sm:$0xff] (!%p4090_p1)  }
 0x36b   : > { %3410 = vmatprep.subr.bf16.mxu1 (!%p4090_p1), %v4739_v9  ;;  %v4823_v9 = vld [vmem:[%s6929_s3 + $0x364] ss:$16 sps:$4 sm:$0xff] (!%p4090_p1)  }
 0x36c   : > { %v2474_v8 = vrot.slane %v2467_v29, %v2458_v62  ;;  %v4735_v62 = vld [vmem:[%s6929_s3 + $0x180] ss:$16 sps:$4 sm:$0xff] (!%p4090_p1)   ;;  %v4742_v29 = vld [vmem:[%s6929_s3 + $0x1a8] ss:$16 sps:$4 sm:$0xff] (!%p4090_p1)  }
 0x36d   : > { %3327 = vmatpush1.bf16.msra.mxu0 (!%p4090_p1), %v4735_v62  ;;  %3411 = vmatpush1.bf16.msra.mxu1 (!%p4090_p1), %v4742_v29  ;;  %v4820_v62 = vld [vmem:[%s6929_s3 + $0x34c] ss:$16 sps:$4 sm:$0xff] (!%p4090_p1)   ;;  %v4821_v29 = vld [vmem:[%s6929_s3 + $0x360] ss:$16 sps:$4 sm:$0xff] (!%p4090_p1)  }
 0x36e   : > { %v2476_v59 = vadd.f32 %v2474_v8, %v2446_v14  ;;  %3328 = vmatprep.subr.bf16.mxu0 (!%p4090_p1), %v4737_v5  ;;  %v4743_v14 = vld [vmem:[%s6929_s3 + $0x1c4] ss:$16 sps:$4 sm:$0xff] (!%p4090_p1)   ;;  %v4745_v8 = vld [vmem:[%s6929_s3 + $0x1cc] ss:$16 sps:$4 sm:$0xff] (!%p4090_p1)   ;;  %v4818_v5 = vld [vmem:[%s6929_s3 + $0x348] ss:$16 sps:$4 sm:$0xff] (!%p4090_p1)  }
 0x36f   : > { %3412 = vmatprep.subr.bf16.mxu1 (!%p4090_p1), %v4745_v8  ;;  %v4829_v8 = vld [vmem:[%s6929_s3 + $0x384] ss:$16 sps:$4 sm:$0xff] (!%p4090_p1)  }
 0x370   : > { %2481 = vst.msk [vmem:[%s5142_s15] sm:$0xf] %vm2479_vm3, %v2476_v59  ;;  %v4747_v59 = vld [vmem:[%s6929_s3 + $0x1c0] ss:$16 sps:$4 sm:$0xff] (!%p4090_p1)  }
 0x371   : > { %3329 = vmatpush1.bf16.msra.mxu0 %v4741_v10  ;;  %3413 = vmatpush1.bf16.msra.mxu1 %v4748_v15  ;;  %v4826_v10 = vld [vmem:[%s6929_s3 + $0x36c] ss:$16 sps:$4 sm:$0xff]   ;;  %v4827_v15 = vld [vmem:[%s6929_s3 + $0x380] ss:$16 sps:$4 sm:$0xff]  }
 0x372   : > { %3330 = vmatprep.subr.bf16.mxu0 %v4743_v14  ;;  %3414 = vmatprep.subr.bf16.mxu1 %v4751_v33  ;;  %v4824_v14 = vld [vmem:[%s6929_s3 + $0x368] ss:$16 sps:$4 sm:$0xff]   ;;  %v4835_v33 = vld [vmem:[%s6929_s3 + $0x3a4] ss:$16 sps:$4 sm:$0xff]  }
 0x375   : > { %3331 = vmatpush1.bf16.msra.mxu0 %v4747_v59  ;;  %3415 = vmatpush1.bf16.msra.mxu1 %v4754_v3  ;;  %v4832_v59 = vld [vmem:[%s6929_s3 + $0x38c] ss:$16 sps:$4 sm:$0xff]   ;;  %v4836_v3 = vld [vmem:[%s6929_s3 + $0x3a8] ss:$16 sps:$4 sm:$0xff]  }
 0x376   : > { %3332 = vmatprep.subr.bf16.mxu0 %v4749_v26  ;;  %3425 = vmatprep.subr.bf16.mxu1 %v4760_v28  ;;  %v4830_v26 = vld [vmem:[%s6929_s3 + $0x388] ss:$16 sps:$4 sm:$0xff]   ;;  %v4844_v28 = vld [vmem:[%s6929_s3 + $0x3cc] ss:$16 sps:$4 sm:$0xff]  }
 0x377   : > { %v6472_v46 = vld [vmem:[%s5142_s15] sm:$0xf] }
 0x378   : > { %v2495_v48 = vrot.slane %v6472_v46, %v2494_v0  ;;  %v2491_v13 = vrot.slane %v6472_v46, %v2490_v35  ;;  %v2503_v51 = vrot.slane %v6472_v46, %v2502_v50 }
 0x379   : > { %3333 = vmatpush1.bf16.msra.mxu0 %v4753_v27  ;;  %v4838_v27 = vld [vmem:[%s6929_s3 + $0x3ac] ss:$16 sps:$4 sm:$0xff]  }
 0x37a   : > { %v2509_v7 = vpack.c.bf16 %v2495_v48, %v2495_v48  ;;  %v2508_v45 = vpack.c.bf16 %v2491_v13, %v2491_v13  ;;  %3343 = vmatprep.subr.bf16.mxu0 %v4757_v44  ;;  %v2511_v38 = vpack.c.bf16 %v2503_v51, %v2503_v51  ;;  %v4811_v48 = vld [vmem:[%s6929_s3 + $0x324] ss:$16 sps:$4 sm:$0xff]   ;;  %v4833_v13 = vld [vmem:[%s6929_s3 + $0x3a0] ss:$16 sps:$4 sm:$0xff]   ;;  %v2498_v51 = vsub.s32 2, %v6326_v49 }
 0x37b   : > { %v4841_v44 = vld [vmem:[%s6929_s3 + $0x3c4] ss:$16 sps:$4 sm:$0xff]  }
 0x37c   : > { %3334 = vmatprep.mubr.bf16.mxu0 %v2509_v7  ;;  %3416 = vmatprep.mubr.bf16.mxu1 %v2509_v7  ;;  %v4817_v7 = vld [vmem:[%s6929_s3 + $0x344] ss:$16 sps:$4 sm:$0xff]  }
 0x37d   : > { %3335 = vmatmul.mubr.bf16.vlgmr.msra.gmra.mrb[0].mxu0 %v2508_v45  ;;  %3417 = vmatmul.mubr.bf16.vlgmr.msra.gmra.mrb[0].mxu1 %v2508_v45  ;;  %v4842_v45 = vld [vmem:[%s6929_s3 + $0x3c8] ss:$16 sps:$4 sm:$0xff]  }
 0x37e   : > { %3344 = vmatpush1.bf16.msra.mxu0 %v4755_v40  ;;  %3426 = vmatpush1.bf16.msra.mxu1 %v4758_v61  ;;  %v4839_v40 = vld [vmem:[%s6929_s3 + $0x3c0] ss:$16 sps:$4 sm:$0xff]   ;;  %v4847_v61 = vld [vmem:[%s6929_s3 + $0x3e4] ss:$16 sps:$4 sm:$0xff]  }
 0x37f   : > { %3345 = vmatprep.subr.bf16.mxu0 %v4763_v30  ;;  %3427 = vmatprep.subr.bf16.mxu1 %v4766_v1  ;;  %v4850_v30 = vld [vmem:[%s6929_s3 + $0x3ec] ss:$16 sps:$4 sm:$0xff]   ;;  %v2499_v1 = vrot.slane %v6472_v46, %v2498_v51  ;;  %v4852_v46 = vld [vmem:[%s6931_s5 + $0xc0] sm:$0xff]  }
 0x380   : > { %3375 = vmatprep.mubr.bf16.mxu0 %v2511_v38  ;;  %3457 = vmatprep.mubr.bf16.mxu1 %v2511_v38  ;;  %v4845_v38 = vld [vmem:[%s6929_s3 + $0x3e0] ss:$16 sps:$4 sm:$0xff]  }
 0x382   : > { %3346 = vmatpush1.bf16.msra.mxu0 %v4761_v58  ;;  %3428 = vmatpush1.bf16.msra.mxu1 %v4764_v11  ;;  %v4848_v58 = vld [vmem:[%s6929_s3 + $0x3e8] ss:$16 sps:$4 sm:$0xff]   ;;  %v4851_v11 = vld [vmem:[%s6931_s5 + $0x40] sm:$0xff]  }
 0x383   : > { %3347 = vmatprep.subr.bf16.mxu0 %v4769_v41  ;;  %3429 = vmatprep.subr.bf16.mxu1 %v4772_v22  ;;  %v2510_v41 = vpack.c.bf16 %v2499_v1, %v2499_v1  ;;  %v4853_v22 = vld [vmem:[%s6931_s5] sm:$0xff]  }
 0x386   : > { %3348 = vmatpush1.bf16.msra.mxu0 %v4767_v39  ;;  %3430 = vmatpush1.bf16.msra.mxu1 %v4770_v17  ;;  %v4854_v39 = vld [vmem:[%s6931_s5 + $0x80] sm:$0xff]   ;;  %v4855_v17 = vld [vmem:[%s6931_s5 + $0x48] sm:$0xff]  }
 0x387   : > { %3349 = vmatprep.subr.bf16.mxu0 %v4775_v31  ;;  %3431 = vmatprep.subr.bf16.mxu1 %v4778_v24  ;;  %v4856_v31 = vld [vmem:[%s6931_s5 + $0xc8] sm:$0xff]  }
 0x388   : > { %v4857_v24 = vld [vmem:[%s6931_s5 + $0x8] sm:$0xff]  }
 0x38a   : > { %3350 = vmatpush1.bf16.msra.mxu0 %v4773_v54  ;;  %3432 = vmatpush1.bf16.msra.mxu1 %v4776_v6  ;;  %v4858_v54 = vld [vmem:[%s6931_s5 + $0x88] sm:$0xff]   ;;  %v4859_v6 = vld [vmem:[%s6931_s5 + $0x50] sm:$0xff]  }
 0x38b   : > { %3351 = vmatprep.subr.bf16.mxu0 %v4781_v23  ;;  %3433 = vmatprep.subr.bf16.mxu1 %v4784_v2  ;;  %v4860_v23 = vld [vmem:[%s6931_s5 + $0xd0] sm:$0xff]  }
 0x38c   : > { %v4861_v2 = vld [vmem:[%s6931_s5 + $0x10] sm:$0xff]  }
 0x38e   : > { %3352 = vmatpush1.bf16.msra.mxu0 %v4779_v60  ;;  %3434 = vmatpush1.bf16.msra.mxu1 %v4782_v37  ;;  %v4862_v60 = vld [vmem:[%s6931_s5 + $0x90] sm:$0xff]   ;;  %v4863_v37 = vld [vmem:[%s6931_s5 + $0x58] sm:$0xff]  }
 0x38f   : > { %3353 = vmatprep.subr.bf16.mxu0 %v4787_v21  ;;  %3435 = vmatprep.subr.bf16.mxu1 %v4790_v16  ;;  %v4864_v21 = vld [vmem:[%s6931_s5 + $0xd8] sm:$0xff]  }
 0x390   : > { %v4865_v16 = vld [vmem:[%s6931_s5 + $0x18] sm:$0xff]  }
 0x392   : > { %3354 = vmatpush1.bf16.msra.mxu0 %v4785_v25  ;;  %3436 = vmatpush1.bf16.msra.mxu1 %v4788_v53  ;;  %v4866_v25 = vld [vmem:[%s6931_s5 + $0x98] sm:$0xff]   ;;  %v4867_v53 = vld [vmem:[%s6931_s5 + $0x60] sm:$0xff]  }
 0x393   : > { %3355 = vmatprep.subr.bf16.mxu0 %v4793_v63  ;;  %3437 = vmatprep.subr.bf16.mxu1 %v4796_v32  ;;  %v4868_v63 = vld [vmem:[%s6931_s5 + $0xe0] sm:$0xff]  }
 0x394   : > { %v4869_v32 = vld [vmem:[%s6931_s5 + $0x20] sm:$0xff]  }
 0x396   : > { %3356 = vmatpush1.bf16.msra.mxu0 %v4791_v36  ;;  %3438 = vmatpush1.bf16.msra.mxu1 %v4794_v57  ;;  %v4870_v36 = vld [vmem:[%s6931_s5 + $0xa0] sm:$0xff]   ;;  %v4871_v57 = vld [vmem:[%s6931_s5 + $0x68] sm:$0xff]  }
 0x397   : > { %3357 = vmatprep.subr.bf16.mxu0 %v4799_v42  ;;  %3439 = vmatprep.subr.bf16.mxu1 %v4802_v4  ;;  %v4872_v42 = vld [vmem:[%s6931_s5 + $0xe8] sm:$0xff]  }
 0x398   : > { %v4873_v4 = vld [vmem:[%s6931_s5 + $0x28] sm:$0xff]  }
 0x39a   : > { %3358 = vmatpush1.bf16.msra.mxu0 %v4797_v19  ;;  %3440 = vmatpush1.bf16.msra.mxu1 %v4800_v18  ;;  %v4874_v19 = vld [vmem:[%s6931_s5 + $0xa8] sm:$0xff]   ;;  %v4875_v18 = vld [vmem:[%s6931_s5 + $0x70] sm:$0xff]  }
 0x39b   : > { %3359 = vmatprep.subr.bf16.mxu0 %v4805_v56  ;;  %3441 = vmatprep.subr.bf16.mxu1 %v4808_v55  ;;  %v4876_v56 = vld [vmem:[%s6931_s5 + $0xf0] sm:$0xff]  }
 0x39c   : > { %v4877_v55 = vld [vmem:[%s6931_s5 + $0x30] sm:$0xff]  }
 0x39e   : > { %3360 = vmatpush1.bf16.msra.mxu0 %v4803_v12  ;;  %3442 = vmatpush1.bf16.msra.mxu1 %v4806_v47  ;;  %v4878_v12 = vld [vmem:[%s6931_s5 + $0xb0] sm:$0xff]   ;;  %v4879_v47 = vld [vmem:[%s6931_s5 + $0x78] sm:$0xff]  }
 0x39f   : > { %3361 = vmatprep.subr.bf16.mxu0 %v4811_v48  ;;  %3443 = vmatprep.subr.bf16.mxu1 %v4814_v20  ;;  %v4880_v48 = vld [vmem:[%s6931_s5 + $0xf8] sm:$0xff]  }
 0x3a0   : > { %v4881_v20 = vld [vmem:[%s6931_s5 + $0x38] sm:$0xff]  }
 0x3a2   : > { %3362 = vmatpush1.bf16.msra.mxu0 %v4809_v43  ;;  %3444 = vmatpush1.bf16.msra.mxu1 %v4812_v34  ;;  %v4882_v43 = vld [vmem:[%s6931_s5 + $0xb8] sm:$0xff]   ;;  %v2640_v34 = vld [vmem:[%s6930_s4] sm:$0xf] }
 0x3a3   : > { %3363 = vmatprep.subr.bf16.mxu0 %v4817_v7  ;;  %3445 = vmatprep.subr.bf16.mxu1 %v4820_v62  ;;  %v3285_v7 = vrot.slane %v2640_v34, %v2490_v35  ;;  %v3293_v62 = vrot.slane %v2640_v34, %v2498_v51 }
 0x3a6   : > { %3364 = vmatpush1.bf16.msra.mxu0 %v4815_v52  ;;  %3446 = vmatpush1.bf16.msra.mxu1 %v4818_v5  ;;  %v3289_v52 = vrot.slane %v2640_v34, %v2494_v0  ;;  %v3297_v5 = vrot.slane %v2640_v34, %v2502_v50 }
 0x3a7   : > { %3365 = vmatprep.subr.bf16.mxu0 %v4823_v9  ;;  %3447 = vmatprep.subr.bf16.mxu1 %v4826_v10 }
 0x3aa   : > { %3366 = vmatpush1.bf16.msra.mxu0 %v4821_v29  ;;  %3448 = vmatpush1.bf16.msra.mxu1 %v4824_v14 }
 0x3ab   : > { %3367 = vmatprep.subr.bf16.mxu0 %v4829_v8  ;;  %3449 = vmatprep.subr.bf16.mxu1 %v4832_v59 }
 0x3ae   : > { %3368 = vmatpush1.bf16.msra.mxu0 %v4827_v15  ;;  %3450 = vmatpush1.bf16.msra.mxu1 %v4830_v26 }
 0x3af   : > { %3369 = vmatprep.subr.bf16.mxu0 %v4835_v33  ;;  %3451 = vmatprep.subr.bf16.mxu1 %v4838_v27 }
 0x3b2   : > { %3370 = vmatpush1.bf16.msra.mxu0 %v4833_v13  ;;  %3452 = vmatpush1.bf16.msra.mxu1 %v4836_v3 }
 0x3b3   : > { %3371 = vmatprep.subr.bf16.mxu0 %v4841_v44  ;;  %3453 = vmatprep.subr.bf16.mxu1 %v4844_v28 }
 0x3b6   : > { %3372 = vmatpush1.bf16.msra.mxu0 %v4839_v40  ;;  %3454 = vmatpush1.bf16.msra.mxu1 %v4842_v45 }
 0x3b7   : > { %3373 = vmatprep.subr.bf16.mxu0 %v4847_v61  ;;  %3455 = vmatprep.subr.bf16.mxu1 %v4850_v30  ;;  %v3538_v30 = vld [vmem:[%s6932_s6] sm:$0x1] }
 0x3ba   : > { %3374 = vmatpush1.bf16.msra.mxu0 %v4845_v38  ;;  %3456 = vmatpush1.bf16.msra.mxu1 %v4848_v58 }
 0x3bb   : > { %4258 = vmatprep.subr.bf16.mxu0 %v4851_v11  ;;  %4280 = vmatprep.subr.bf16.mxu1 %v4852_v46 }
 0x3bd   : > { %3376 = vmatmul.mubr.bf16.vlgmr.msra.gmra.mrb[0].mxu0 %v2510_v41  ;;  %3458 = vmatmul.mubr.bf16.vlgmr.msra.gmra.mrb[0].mxu1 %v2510_v41 }
 0x3be   : > { %4259 = vmatpush3.bf16.msra.mxu0 %v4853_v22  ;;  %4281 = vmatpush3.bf16.msra.mxu1 %v4854_v39 }
 0x3bf   : > { %4260 = vmatprep.subr.bf16.mxu0 %v4855_v17  ;;  %4282 = vmatprep.subr.bf16.mxu1 %v4856_v31 }
 0x3c2   : > { %4261 = vmatpush3.bf16.msra.mxu0 %v4857_v24  ;;  %4283 = vmatpush3.bf16.msra.mxu1 %v4858_v54 }
 0x3c3   : > { %4262 = vmatprep.subr.bf16.mxu0 %v4859_v6  ;;  %4284 = vmatprep.subr.bf16.mxu1 %v4860_v23 }
 0x3c6   : > { %4263 = vmatpush3.bf16.msra.mxu0 %v4861_v2  ;;  %4285 = vmatpush3.bf16.msra.mxu1 %v4862_v60 }
 0x3c7   : > { %4264 = vmatprep.subr.bf16.mxu0 %v4863_v37  ;;  %4286 = vmatprep.subr.bf16.mxu1 %v4864_v21 }
 0x3ca   : > { %4265 = vmatpush3.bf16.msra.mxu0 %v4865_v16  ;;  %4287 = vmatpush3.bf16.msra.mxu1 %v4866_v25 }
 0x3cb   : > { %4266 = vmatprep.subr.bf16.mxu0 %v4867_v53  ;;  %4288 = vmatprep.subr.bf16.mxu1 %v4868_v63 }
 0x3ce   : > { %4267 = vmatpush3.bf16.msra.mxu0 %v4869_v32  ;;  %4289 = vmatpush3.bf16.msra.mxu1 %v4870_v36 }
 0x3cf   : > { %4268 = vmatprep.subr.bf16.mxu0 %v4871_v57  ;;  %4290 = vmatprep.subr.bf16.mxu1 %v4872_v42 }
 0x3d2   : > { %4269 = vmatpush3.bf16.msra.mxu0 %v4873_v4  ;;  %4291 = vmatpush3.bf16.msra.mxu1 %v4874_v19 }
 0x3d3   : > { %4270 = vmatprep.subr.bf16.mxu0 %v4875_v18  ;;  %4292 = vmatprep.subr.bf16.mxu1 %v4876_v56 }
 0x3d6   : > { %4271 = vmatpush3.bf16.msra.mxu0 %v4877_v55  ;;  %4293 = vmatpush3.bf16.msra.mxu1 %v4878_v12 }
 0x3d7   : > { %4272 = vmatprep.subr.bf16.mxu0 %v4879_v47  ;;  %4294 = vmatprep.subr.bf16.mxu1 %v4880_v48 }
 0x3da   : > { %4273 = vmatpush3.bf16.msra.mxu0 %v4881_v20  ;;  %4295 = vmatpush3.bf16.msra.mxu1 %v4882_v43 }
 0x490   : > { %v3377_v9 = vpop.f32.mrb[0].mxu0  ;;  %v3459_v10 = vpop.f32.mrb[0].mxu1 }
 0x491   : > { %v4562_v29 = vadd.f32 %v3377_v9, %v3285_v7  ;;  %v4564_v14 = vadd.f32 %v3459_v10, %v3293_v62  ;;  %v3379_v8 = vpop.f32.mrb[1].mxu0  ;;  %v3461_v59 = vpop.f32.mrb[1].mxu1 }
 0x492   : > { %v4563_v15 = vadd.f32 %v3379_v8, %v3289_v52  ;;  %v4565_v26 = vadd.f32 %v3461_v59, %v3297_v5  ;;  %v3381_v33 = vpop.f32.mrb[2].mxu0  ;;  %v3463_v27 = vpop.f32.mrb[2].mxu1 }
 0x493   : > { %v3466_v35 = vmax.f32 %v4562_v29, 0.0  ;;  %v3468_v13 = vmax.f32 %v4564_v14, 0.0  ;;  %v3382_v3 = vpop.f32.mrb[3].mxu0  ;;  %v3464_v44 = vpop.f32.mrb[3].mxu1 }
 0x494   : > { %v3467_v28 = vmax.f32 %v4563_v15, 0.0  ;;  %v3469_v51 = vmax.f32 %v4565_v26, 0.0 }
 0x495   : > { %v3470_v49 = vpack.c.bf16 %v3466_v35, %v3466_v35  ;;  %v3472_v50 = vpack.c.bf16 %v3468_v13, %v3468_v13 }
 0x496   : > { %v3471_v0 = vpack.c.bf16 %v3467_v28, %v3467_v28  ;;  %v3473_v40 = vpack.c.bf16 %v3469_v51, %v3469_v51 }
 0x498   : > { %3763 = vmatprep.mubr.bf16.mxu0 %v3471_v0  ;;  %3803 = vmatprep.mubr.bf16.mxu1 %v3473_v40 }
 0x499   : > { %3764 = vmatmul.mubr.bf16.vlgmr.msra.gmra.mrb[4].mxu0 %v3470_v49  ;;  %3804 = vmatmul.mubr.bf16.vlgmr.msra.gmra.mrb[4].mxu1 %v3472_v50 }
 0x56c   : > { %v4274_v45 = vpop.f32.mrb[4].mxu0  ;;  %v4296_v61 = vpop.f32.mrb[4].mxu1 }
 0x56d   : > { %v4275_v1 = vpop.f32.mrb[5].mxu0  ;;  %v4297_v38 = vpop.f32.mrb[5].mxu1 }
 0x56e   : > { %v4276_v58 = vadd.f32 %v4275_v1, %v4274_v45  ;;  %v4298_v11 = vadd.f32 %v4297_v38, %v4296_v61  ;;  %v4277_v46 = vpop.f32.mrb[6].mxu0  ;;  %v4299_v41 = vpop.f32.mrb[6].mxu1 }
 0x56f   : > { %v4278_v22 = vpop.f32.mrb[7].mxu0  ;;  %v4300_v39 = vpop.f32.mrb[7].mxu1 }
 0x570   : > { %v3766_v17 = vadd.f32 %v4276_v58, %v3538_v30 }
 0x572   : > { %v3806_v31 = vadd.f32 %v4298_v11, %v3766_v17 }
 0x574   : > { %3811 = vst [vmem:[%s7009_s30] sm:$0x1] %v3806_v31 }
 0x575 PF: > { %s4257_s25 = sshll.u32 %s4997_s9, 6  ;;  %s3831_s13 = sshll.u32 %s5142_s15, 4  ;;  %s3832_s13 = int_to_ptr.vmem [resolvable:$true] %s3831_s13 }
 0x576   : > { %s6851_s26 = scalar_lea.hbm %s6933_s7, %s4257_s25  ;;  %s3813_s14 = scalar_lea.sflag [#allocation3], %s5133_s22 }
 0x577   : > { %s4883_s19 = scalar_lea.vmem %s3832_s13, 64  ;;  %s5016_s20 = smov [#allocation2]  }
 0x578   : > { %p4884_p2 = scmp.ne.s32.totalorder %s3832_s13, %s4883_s19  ;;  %s4887_s23 = sshll.u32 %s5016_s20, 4  ;;  %s4888_s23 = int_to_ptr.vmem [resolvable:$false] %s4887_s23 }
 0x579   : > { %s4889_s24 = scalar_lea.vmem %s4888_s23, 128  ;;  %p4890_p6 = scmp.lt.s32.totalorder %s3832_s13, %s4888_s23 }
 0x57a   : > { %p4885_p4 = pnand %p4884_p2, %p5112_p3  ;;  %p4891_p7 = scmp.lt.s32.totalorder %s4889_s24, %s4883_s19 }
 0x57c   : > { %p4886_p5 = pneg %p4885_p4  ;;  %p4892_p8 = por %p4891_p7, %p4890_p6 }
 0x57e   : > { %p4893_p10 = pnand %p4892_p8, %p4886_p5 }
 0x580   : > { %4896 = shalt.err (!%p4893_p10)
}
 0x581   : > { %s4897_s15 = scalar_lea.hbm %s6851_s26, 64  ;;  %s4901_s25 = scalar_lea.hbm %s6933_s7, 512 }
 0x582   : > { %p4898_p11 = scmp.ne.s32.totalorder %s6851_s26, %s4897_s15  ;;  %p4902_p0 = scmp.lt.u32.totalorder %s6851_s26, %s6933_s7 }
 0x583   : > { %p4903_p1 = scmp.lt.u32.totalorder %s4901_s25, %s4897_s15  ;;  %p4905_p4 = scmp.lt.u32.totalorder %s4897_s15, %s6851_s26 }
 0x584   : > { %p4899_p12 = pnand %p4898_p11, %p5112_p3 }
 0x585   : > { %p4904_p2 = por %p4903_p1, %p4902_p0 }
 0x586   : > { %p4900_p13 = pneg %p4899_p12 }
 0x587   : > { %p4906_p5 = por %p4905_p4, %p4904_p2 }
 0x589   : > { %p4907_p6 = pnand %p4906_p5, %p4900_p13 }
 0x58b   : > { %4910 = shalt.err (!%p4907_p6)
}
 0x58c   : > { %4574 = dma.vmem_to_hbm [thread:$0]  (%p5112_p3), %s3832_s13, 64, %s6851_s26, %s3813_s14  }
 0x58d   : > { %s4254_s19 = sshll.u32 %s4997_s9, 4  ;;  %s7010_s20 = scalar_lea.vmem [#allocation4], %s5133_s22 }
 0x58e   : > { %s3844_s23 = sshll.u32 %s7010_s20, 4  ;;  %s6878_s30 = scalar_lea.hbm %s6934_s8, %s4254_s19  ;;  %s3845_s23 = int_to_ptr.vmem [resolvable:$true] %s3844_s23 }
 0x58f   : > { %s3818_s15 = scalar_lea.sflag [#allocation5], %s5133_s22  ;;  %s4911_s25 = scalar_lea.vmem %s3845_s23, 16 }
 0x590   : > { %p4912_p7 = scmp.ne.s32.totalorder %s3845_s23, %s4911_s25  ;;  %s5017_s0 = smov [#allocation4]  }
 0x591   : > { %s4915_s11 = sshll.u32 %s5017_s0, 4  ;;  %s4916_s11 = int_to_ptr.vmem [resolvable:$false] %s4915_s11 }
 0x592   : > { %p4913_p8 = pnand %p4912_p7, %p5112_p3  ;;  %s4917_s1 = scalar_lea.vmem %s4916_s11, 32 }
 0x593   : > { %p4918_p11 = scmp.lt.s32.totalorder %s3845_s23, %s4916_s11  ;;  %p4919_p12 = scmp.lt.s32.totalorder %s4917_s1, %s4911_s25 }
 0x594   : > { %p4914_p10 = pneg %p4913_p8 }
 0x595   : > { %p4920_p13 = por %p4919_p12, %p4918_p11 }
 0x597   : > { %p4921_p0 = pnand %p4920_p13, %p4914_p10 }
 0x599   : > { %4924 = shalt.err (!%p4921_p0)
}
 0x59a   : > { %s4925_s9 = scalar_lea.hbm %s6878_s30, 16  ;;  %s4929_s13 = scalar_lea.hbm %s6934_s8, 128 }
 0x59b   : > { %p4926_p1 = scmp.ne.s32.totalorder %s6878_s30, %s4925_s9  ;;  %p4930_p5 = scmp.lt.u32.totalorder %s6878_s30, %s6934_s8 }
 0x59c   : > { %p4931_p6 = scmp.lt.u32.totalorder %s4929_s13, %s4925_s9  ;;  %p4933_p8 = scmp.lt.u32.totalorder %s4925_s9, %s6878_s30 }
 0x59d   : > { %p4927_p2 = pnand %p4926_p1, %p5112_p3 }
 0x59e   : > { %p4932_p7 = por %p4931_p6, %p4930_p5 }
 0x59f   : > { %p4928_p4 = pneg %p4927_p2 }
 0x5a0   : > { %p4934_p10 = por %p4933_p8, %p4932_p7 }
 0x5a2   : > { %p4935_p11 = pnand %p4934_p10, %p4928_p4 }
 0x5a4   : > { %4938 = shalt.err (!%p4935_p11)
}
 0x5a5   : > { %4575 = dma.vmem_to_hbm [thread:$0]  (%p5112_p3), %s3845_s23, 16, %s6878_s30, %s3818_s15  }
 0x5a6 PF: > { %p4585_p12 = scmp.ge.s32.totalorder %s5009_s12, 2  ;;  %s3856_s1 = sand.u32 1, %s4981_s27  }
 0x5a7   : > { %s3857_s20 = scalar_lea.sflag [#allocation3], %s3856_s1 }
 0x5a8   : > { %p4579_p13 = pnand %p4585_p12, %p5122_p9 }
 0x5aa   : > { %4972 = dma.done.wait (!%p4579_p13), %s3857_s20, 64  }
 0x5ab   : > { %4974 = vsyncadd (!%p4579_p13), %s3857_s20, 4294967232  ;;  %s3866_s24 = scalar_lea.sflag [#allocation5], %s3856_s1 }
 0x5ac   : > { %4976 = dma.done.wait (!%p4579_p13), %s3866_s24, 16  }
 0x5ad   : > { %4978 = vsyncadd (!%p4579_p13), %s3866_s24, 4294967280  ;;  %s25_s12 = sadd.s32 1, %s5009_s12   ;;  %s7011_s9 = sld [smem:[#allocation8_spill]] }
 0x5ae   : > { %p22_p0 = scmp.ge.s32.totalorder %s25_s12, 18   ;;  %s7012_s17 = sld [smem:[#allocation9_spill]] }
 0x5af   : > { %s7013_s11 = sld [smem:[#allocation10_spill]]  ;;  %s7014_s27 = smov %s4985_s28 }
 0x5b0   : > { %s7015_s28 = smov %s4989_s29  ;;  %s7016_s29 = smov %s5130_s21 }
 0x5b1   : > { %s7017_s30 = smov %s5001_s10  ;;  %24 = sbr.rel (!%p22_p0) target bundleno = 10 (0xa), region = 108 }
 0x5b4   : > { %s7018_s10 = smov %s7012_s17 }
 0x5b8   :  { %3870 = vsyncpa [#allocation3], 1 }
 0x5b9   :  { %3872 = vsyncpa [#allocation3 + $0x1], 1 }
 0x5ba   :  { %3873 = vsyncpa [#allocation5], 1 }
 0x5bb   :  { %3875 = vsyncpa [#allocation5 + $0x1], 1 }

// kernel: model_clr_forward.3
= control target key start
LH: loop header
LB: loop body
LE: loop exit
PB: predicated region body
PF: predicated region fallthrough
CT: control target
= control target key end

     0   :  { %s4209_s21 = smov 0   ;;  %s5307_s0 = inlined_call_operand.vmem [shape: f32[8,16,768], index: 0, kind: input, shape index: {}]   ;;  %s5308_s1 = inlined_call_operand.vmem [shape: f32[8,1,16], index: 1, kind: input, shape index: {}]   ;;  %s5309_s2 = inlined_call_operand.vmem [shape: bf16[768,768], index: 2, kind: input, shape index: {}]   ;;  %s5310_s3 = inlined_call_operand.vmem [shape: f32[1,768], index: 3, kind: input, shape index: {}]   ;;  %s5311_s4 = inlined_call_operand.vmem [shape: bf16[768,128], index: 4, kind: input, shape index: {}]   ;;  %s5312_s5 = inlined_call_operand.vmem [shape: f32[1,128], index: 5, kind: input, shape index: {}]   ;;  %s5313_s6 = inlined_call_operand.vmem [shape: bf16[8,1,128], index: 6, kind: output, shape index: {}]  }
   0x1 LB: > { %s3220_s22 = sadd.s32 4294967295, %s4171_s21   ;;  %p3224_p0 = scmp.ge.s32.totalorder %s4171_s21, 1  ;;  %s4171_s21 = sphi %s4209_s21, %s16_s21  }
   0x2   : > { %p220_p1 = scmp.lt.s32.totalorder %s4171_s21, 9 }
   0x4   : > { %p221_p2 = pnand %p3224_p0, %p220_p1 }
   0x5   : > { %p251_p3 = scmp.lt.s32.totalorder (!%p221_p2), %s3220_s22, 7  ;;  %v4173_v0 = vmov (!%p221_p2), 0.0   ;;  %v3683_v1 = vld [vmem:[%s5309_s2 + $0x4] ss:$24 sps:$4 sm:$0xff] (!%p221_p2)   ;;  %v3685_v2 = vld [vmem:[%s5309_s2] ss:$24 sps:$4 sm:$0xff] (!%p221_p2)  }
   0x6   : > { %224 = sbr.rel (%p221_p2) target bundleno = 944 (0x3b0), region = 44  ;;  %344 = vmatprep.mubr.f32.mxu1 (!%p221_p2), %v4173_v0  ;;  %v3686_v3 = vld [vmem:[%s5309_s2 + $0x34] ss:$24 sps:$4 sm:$0xff] (!%p221_p2)   ;;  %vm493_vm0 = vcmask (!%p221_p2), 122880   ;;  %2271 = vmatprep.subr.bf16.mxu0 (!%p221_p2), %v3683_v1  ;;  %v3691_v4 = vld [vmem:[%s5309_s2 + $0x30] ss:$24 sps:$4 sm:$0xff] (!%p221_p2)  }
   0x7   : > { %2272 = vmatpush1.bf16.msra.mxu0 (!%p221_p2), %v3685_v2  ;;  %v3692_v6 = vld [vmem:[%s5309_s2 + $0x64] ss:$24 sps:$4 sm:$0xff] (!%p221_p2)   ;;  %vm276_vm1 = vcmask (!%p221_p2), 130048   ;;  %v3697_v24 = vld [vmem:[%s5309_s2 + $0x60] ss:$24 sps:$4 sm:$0xff] (!%p221_p2)   ;;  %vm3158_vm2 = vcmask (!%p221_p2), 1040384  }
   0x8   : > { %2273 = vmatprep.subr.bf16.mxu0 (!%p221_p2), %v3686_v3  ;;  %v3698_v26 = vld [vmem:[%s5309_s2 + $0x94] ss:$24 sps:$4 sm:$0xff] (!%p221_p2)   ;;  %v3703_v27 = vld [vmem:[%s5309_s2 + $0x90] ss:$24 sps:$4 sm:$0xff] (!%p221_p2)   ;;  %v3704_v28 = vld [vmem:[%s5309_s2 + $0xc4] ss:$24 sps:$4 sm:$0xff] (!%p221_p2)  }
   0x9   : > { %v3690_v30 = vld [vmem:[%s5309_s2 + $0x304] ss:$24 sps:$4 sm:$0xff] (!%p221_p2)   ;;  %v3709_v31 = vld [vmem:[%s5309_s2 + $0xc0] ss:$24 sps:$4 sm:$0xff] (!%p221_p2)   ;;  %v3710_v32 = vld [vmem:[%s5309_s2 + $0xf4] ss:$24 sps:$4 sm:$0xff] (!%p221_p2)  }
   0xa   : > { %v3688_v33 = vld [vmem:[%s5309_s2 + $0x300] ss:$24 sps:$4 sm:$0xff] (!%p221_p2)   ;;  %v3696_v34 = vld [vmem:[%s5309_s2 + $0x334] ss:$24 sps:$4 sm:$0xff] (!%p221_p2)   ;;  %v3715_v35 = vld [vmem:[%s5309_s2 + $0xf0] ss:$24 sps:$4 sm:$0xff] (!%p221_p2)  }
   0xb   : > { %2274 = vmatpush1.bf16.msra.mxu0 (!%p221_p2), %v3691_v4  ;;  %v3716_v36 = vld [vmem:[%s5309_s2 + $0x124] ss:$24 sps:$4 sm:$0xff] (!%p221_p2)   ;;  %v3694_v37 = vld [vmem:[%s5309_s2 + $0x330] ss:$24 sps:$4 sm:$0xff] (!%p221_p2)   ;;  %v3721_v39 = vld [vmem:[%s5309_s2 + $0x120] ss:$24 sps:$4 sm:$0xff] (!%p221_p2)  }
   0xc   : > { %2275 = vmatprep.subr.bf16.mxu0 (!%p221_p2), %v3692_v6  ;;  %v3702_v38 = vld [vmem:[%s5309_s2 + $0x364] ss:$24 sps:$4 sm:$0xff] (!%p221_p2)   ;;  %v3722_v40 = vld [vmem:[%s5309_s2 + $0x154] ss:$24 sps:$4 sm:$0xff] (!%p221_p2)   ;;  %v3700_v41 = vld [vmem:[%s5309_s2 + $0x360] ss:$24 sps:$4 sm:$0xff] (!%p221_p2)  }
   0xd   : > { %s5315_s22 = smov (!%p251_p3, %s3220_s22), 7  ;;  %v3708_v42 = vld [vmem:[%s5309_s2 + $0x394] ss:$24 sps:$4 sm:$0xff]   ;;  %v3727_v43 = vld [vmem:[%s5309_s2 + $0x150] ss:$24 sps:$4 sm:$0xff]  }
   0xe   : > { %s3673_s29 = smul.u32 96, %s5315_s22  ;;  %s258_s8 = scalar_lea.vmem %s5308_s1, %s5315_s22  ;;  %v3728_v44 = vld [vmem:[%s5309_s2 + $0x184] ss:$24 sps:$4 sm:$0xff]   ;;  %v3706_v45 = vld [vmem:[%s5309_s2 + $0x390] ss:$24 sps:$4 sm:$0xff]  }
   0xf   : > { %v275_v5 = vld [vmem:[%s258_s8] sm:$0x1]  ;;  %2276 = vmatpush1.bf16.msra.mxu0 %v3697_v24  ;;  %v3714_v46 = vld [vmem:[%s5309_s2 + $0x3c4] ss:$24 sps:$4 sm:$0xff]   ;;  %v3734_v48 = vld [vmem:[%s5309_s2 + $0x1b4] ss:$24 sps:$4 sm:$0xff]   ;;  %s261_s26 = scalar_lea.vmem %s5313_s6, %s5315_s22 }
  0x10   : > { %s255_s15 = scalar_lea.vmem %s5307_s0, %s3673_s29  ;;  %v494_v7 = vsel %vm493_vm0, %v275_v5, 0.0  ;;  %2277 = vmatprep.subr.bf16.mxu0 %v3698_v26  ;;  %v3733_v47 = vld [vmem:[%s5309_s2 + $0x180] ss:$24 sps:$4 sm:$0xff]   ;;  %v3720_v50 = vld [vmem:[%s5309_s2 + $0x3f4] ss:$24 sps:$4 sm:$0xff]  }
  0x11   : > { %v264_v8 = vld [vmem:[%s255_s15 + $0x8] sm:$0xff]  ;;  %v270_v9 = vld [vmem:[%s255_s15 + $0x38] sm:$0xff]  ;;  %v263_v10 = vld [vmem:[%s255_s15] sm:$0xff]  ;;  %495 = vadd.xlane.f32.xlu0 %v494_v7  ;;  %vm3159_vm3 = vsmask.f32 256 }
  0x12   : > { %v3633_v11 = vpack.c.bf16 %v270_v9, %v264_v8  ;;  %v269_v12 = vld [vmem:[%s255_s15 + $0x30] sm:$0xff]  ;;  %v266_v13 = vld [vmem:[%s255_s15 + $0x18] sm:$0xff]  ;;  %v272_v14 = vld [vmem:[%s255_s15 + $0x48] sm:$0xff] }
  0x13   : > { %v3635_v15 = vpack.c.bf16 %v269_v12, %v263_v10  ;;  %v3637_v16 = vpack.c.bf16 %v272_v14, %v266_v13  ;;  %v265_v17 = vld [vmem:[%s255_s15 + $0x10] sm:$0xff]  ;;  %v271_v18 = vld [vmem:[%s255_s15 + $0x40] sm:$0xff]  ;;  %v268_v19 = vld [vmem:[%s255_s15 + $0x28] sm:$0xff]  ;;  %2278 = vmatpush1.bf16.msra.mxu0 %v3703_v27 }
  0x14   : > { %3634 = vmatprep.subr.bf16.mxu1 %v3633_v11  ;;  %v274_v20 = vld [vmem:[%s255_s15 + $0x58] sm:$0xff]  ;;  %v267_v21 = vld [vmem:[%s255_s15 + $0x20] sm:$0xff]  ;;  %v273_v22 = vld [vmem:[%s255_s15 + $0x50] sm:$0xff]  ;;  %v3639_v23 = vpack.c.bf16 %v271_v18, %v265_v17  ;;  %2279 = vmatprep.subr.bf16.mxu0 %v3704_v28 }
  0x15   : > { %3636 = vmatpush1.bf16.msra.mxu1 %v3635_v15  ;;  %v3641_v25 = vpack.c.bf16 %v274_v20, %v268_v19  ;;  %v3643_v29 = vpack.c.bf16 %v273_v22, %v267_v21  ;;  %v3712_v49 = vld [vmem:[%s5309_s2 + $0x3c0] ss:$24 sps:$4 sm:$0xff]   ;;  %v3739_v51 = vld [vmem:[%s5309_s2 + $0x1b0] ss:$24 sps:$4 sm:$0xff]   ;;  %v3740_v52 = vld [vmem:[%s5309_s2 + $0x1e4] ss:$24 sps:$4 sm:$0xff]  }
  0x16   : > { %3638 = vmatprep.subr.bf16.mxu1 %v3637_v16  ;;  %v3718_v53 = vld [vmem:[%s5309_s2 + $0x3f0] ss:$24 sps:$4 sm:$0xff]   ;;  %v3726_v54 = vld [vmem:[%s5309_s2 + $0x424] ss:$24 sps:$4 sm:$0xff]   ;;  %v3724_v55 = vld [vmem:[%s5309_s2 + $0x420] ss:$24 sps:$4 sm:$0xff]  }
  0x17   : > { %2280 = vmatpush1.bf16.msra.mxu0 %v3709_v31  ;;  %v3745_v56 = vld [vmem:[%s5309_s2 + $0x1e0] ss:$24 sps:$4 sm:$0xff]   ;;  %v3732_v57 = vld [vmem:[%s5309_s2 + $0x454] ss:$24 sps:$4 sm:$0xff]   ;;  %v3751_v59 = vld [vmem:[%s5309_s2 + $0x210] ss:$24 sps:$4 sm:$0xff]  }
  0x18   : > { %3226 = vmatmul.mubr.msk.f32.vlgmr.msra.gmra.mrb[0].mxu1 %vm276_vm1, %v275_v5  ;;  %2281 = vmatprep.subr.bf16.mxu0 %v3710_v32  ;;  %v3746_v58 = vld [vmem:[%s5309_s2 + $0x214] ss:$24 sps:$4 sm:$0xff]   ;;  %v3752_v60 = vld [vmem:[%s5309_s2 + $0x244] ss:$24 sps:$4 sm:$0xff]   ;;  %v3730_v61 = vld [vmem:[%s5309_s2 + $0x450] ss:$24 sps:$4 sm:$0xff]  }
  0x19   : > { %3640 = vmatpush1.bf16.msra.mxu1 %v3639_v23  ;;  %415 = vmatprep.mubr.f32.mxu1 %v4173_v0  ;;  %v3738_v62 = vld [vmem:[%s5309_s2 + $0x484] ss:$24 sps:$4 sm:$0xff]   ;;  %v3757_v63 = vld [vmem:[%s5309_s2 + $0x240] ss:$24 sps:$4 sm:$0xff]   ;;  %v3744_v2 = vld [vmem:[%s5309_s2 + $0x4b4] ss:$24 sps:$4 sm:$0xff]  }
  0x1a   : > { %3642 = vmatprep.subr.bf16.mxu1 %v3641_v25  ;;  %v3736_v1 = vld [vmem:[%s5309_s2 + $0x480] ss:$24 sps:$4 sm:$0xff]   ;;  %v3763_v3 = vld [vmem:[%s5309_s2 + $0x270] ss:$24 sps:$4 sm:$0xff]   ;;  %v3764_v4 = vld [vmem:[%s5309_s2 + $0x2a4] ss:$24 sps:$4 sm:$0xff]  }
  0x1b   : > { %2282 = vmatpush1.bf16.msra.mxu0 %v3715_v35  ;;  %v3750_v6 = vld [vmem:[%s5309_s2 + $0x4e4] ss:$24 sps:$4 sm:$0xff]   ;;  %v3769_v7 = vld [vmem:[%s5309_s2 + $0x2a0] ss:$24 sps:$4 sm:$0xff]   ;;  %v3756_v9 = vld [vmem:[%s5309_s2 + $0x514] ss:$24 sps:$4 sm:$0xff]  }
  0x1c   : > { %3227 = vmatmul.mubr.msk.f32.vlgmr.msra.gmra.mrb[2].mxu1 %vm276_vm1, %v275_v5  ;;  %2283 = vmatprep.subr.bf16.mxu0 %v3716_v36  ;;  %v3748_v8 = vld [vmem:[%s5309_s2 + $0x4e0] ss:$24 sps:$4 sm:$0xff]   ;;  %v3754_v10 = vld [vmem:[%s5309_s2 + $0x510] ss:$24 sps:$4 sm:$0xff]   ;;  %v3762_v11 = vld [vmem:[%s5309_s2 + $0x544] ss:$24 sps:$4 sm:$0xff]  }
  0x1d   : > { %3644 = vmatpush1.bf16.msra.mxu1 %v3643_v29  ;;  %486 = vmatprep.mubr.f32.mxu1 %v4173_v0  ;;  %v3758_v0 = vld [vmem:[%s5309_s2 + $0x274] ss:$24 sps:$4 sm:$0xff]   ;;  %v3760_v12 = vld [vmem:[%s5309_s2 + $0x540] ss:$24 sps:$4 sm:$0xff]   ;;  %v3766_v14 = vld [vmem:[%s5309_s2 + $0x570] ss:$24 sps:$4 sm:$0xff]  }
  0x1e   : > { %2312 = vmatprep.subr.bf16.mxu1 %v3690_v30  ;;  %v3768_v13 = vld [vmem:[%s5309_s2 + $0x574] ss:$24 sps:$4 sm:$0xff]   ;;  %v3774_v16 = vld [vmem:[%s5309_s2 + $0x5a4] ss:$24 sps:$4 sm:$0xff]   ;;  %v3772_v17 = vld [vmem:[%s5309_s2 + $0x5a0] ss:$24 sps:$4 sm:$0xff]  }
  0x1f   : > { %2284 = vmatpush1.bf16.msra.mxu0 %v3721_v39  ;;  %v3770_v15 = vld [vmem:[%s5309_s2 + $0x2d4] ss:$24 sps:$4 sm:$0xff]   ;;  %v3775_v18 = vld [vmem:[%s5309_s2 + $0x2d0] ss:$24 sps:$4 sm:$0xff]   ;;  %v3784_v22 = vld [vmem:[%s5309_s2 + $0x604] ss:$24 sps:$4 sm:$0xff]  }
  0x20   : > { %3228 = vmatmul.mubr.msk.f32.vlgmr.msra.gmra.mrb[4].mxu1 %vm276_vm1, %v275_v5  ;;  %2285 = vmatprep.subr.bf16.mxu0 %v3722_v40  ;;  %v3742_v5 = vld [vmem:[%s5309_s2 + $0x4b0] ss:$24 sps:$4 sm:$0xff]   ;;  %v3778_v19 = vld [vmem:[%s5309_s2 + $0x5d4] ss:$24 sps:$4 sm:$0xff]   ;;  %v3782_v40 = vld [vmem:[%s5309_s2 + $0x600] ss:$24 sps:$4 sm:$0xff]  }
  0x21   : > { %2313 = vmatpush1.bf16.msra.mxu1 %v3688_v33  ;;  %v3781_v20 = vld [vmem:[%s5309_s2 + $0xc] ss:$24 sps:$4 sm:$0xff]   ;;  %v3776_v21 = vld [vmem:[%s5309_s2 + $0x5d0] ss:$24 sps:$4 sm:$0xff]   ;;  %v3787_v36 = vld [vmem:[%s5309_s2 + $0x3c] ss:$24 sps:$4 sm:$0xff]  }
  0x22   : > { %2314 = vmatprep.subr.bf16.mxu1 %v3696_v34  ;;  %v3779_v32 = vld [vmem:[%s5309_s2 + $0x8] ss:$24 sps:$4 sm:$0xff]   ;;  %vm3160_vm4 = vmand %vm3158_vm2, %vm3159_vm3 }
  0x23   : > { %2286 = vmatpush1.bf16.msra.mxu0 %v3727_v43 }
  0x24   : > { %2287 = vmatprep.subr.bf16.mxu0 %v3728_v44 }
  0x25   : > { %2315 = vmatpush1.bf16.msra.mxu1 %v3694_v37 }
  0x26   : > { %2316 = vmatprep.subr.bf16.mxu1 %v3702_v38 }
  0x27   : > { %2288 = vmatpush1.bf16.msra.mxu0 %v3733_v47 }
  0x28   : > { %2289 = vmatprep.subr.bf16.mxu0 %v3734_v48 }
  0x29   : > { %2317 = vmatpush1.bf16.msra.mxu1 %v3700_v41  ;;  %v3785_v41 = vld [vmem:[%s5309_s2 + $0x38] ss:$24 sps:$4 sm:$0xff]  }
  0x2a   : > { %2318 = vmatprep.subr.bf16.mxu1 %v3708_v42 }
  0x2b   : > { %2290 = vmatpush1.bf16.msra.mxu0 %v3739_v51  ;;  %v3796_v51 = vld [vmem:[%s5309_s2 + $0x664] ss:$24 sps:$4 sm:$0xff]  }
  0x2c   : > { %2291 = vmatprep.subr.bf16.mxu0 %v3740_v52  ;;  %v3799_v52 = vld [vmem:[%s5309_s2 + $0x9c] ss:$24 sps:$4 sm:$0xff]  }
  0x2d   : > { %2319 = vmatpush1.bf16.msra.mxu1 %v3706_v45  ;;  %v3790_v45 = vld [vmem:[%s5309_s2 + $0x634] ss:$24 sps:$4 sm:$0xff]  }
  0x2e   : > { %2320 = vmatprep.subr.bf16.mxu1 %v3714_v46  ;;  %v3793_v46 = vld [vmem:[%s5309_s2 + $0x6c] ss:$24 sps:$4 sm:$0xff]  }
  0x2f   : > { %2292 = vmatpush1.bf16.msra.mxu0 %v3745_v56  ;;  %v3805_v56 = vld [vmem:[%s5309_s2 + $0xcc] ss:$24 sps:$4 sm:$0xff]  }
  0x30   : > { %2293 = vmatprep.subr.bf16.mxu0 %v3746_v58  ;;  %v3803_v58 = vld [vmem:[%s5309_s2 + $0xc8] ss:$24 sps:$4 sm:$0xff]  }
  0x31   : > { %2321 = vmatpush1.bf16.msra.mxu1 %v3712_v49  ;;  %v3788_v49 = vld [vmem:[%s5309_s2 + $0x630] ss:$24 sps:$4 sm:$0xff]  }
  0x32   : > { %2322 = vmatprep.subr.bf16.mxu1 %v3720_v50  ;;  %v3791_v50 = vld [vmem:[%s5309_s2 + $0x68] ss:$24 sps:$4 sm:$0xff]  }
  0x33   : > { %2294 = vmatpush1.bf16.msra.mxu0 %v3751_v59  ;;  %v3808_v59 = vld [vmem:[%s5309_s2 + $0x6c4] ss:$24 sps:$4 sm:$0xff]  }
  0x34   : > { %2295 = vmatprep.subr.bf16.mxu0 %v3752_v60  ;;  %v3811_v60 = vld [vmem:[%s5309_s2 + $0xfc] ss:$24 sps:$4 sm:$0xff]  }
  0x35   : > { %2323 = vmatpush1.bf16.msra.mxu1 %v3718_v53  ;;  %v3794_v53 = vld [vmem:[%s5309_s2 + $0x660] ss:$24 sps:$4 sm:$0xff]  }
  0x36   : > { %2324 = vmatprep.subr.bf16.mxu1 %v3726_v54  ;;  %v3797_v54 = vld [vmem:[%s5309_s2 + $0x98] ss:$24 sps:$4 sm:$0xff]  }
  0x37   : > { %2296 = vmatpush1.bf16.msra.mxu0 %v3757_v63  ;;  %v3814_v63 = vld [vmem:[%s5309_s2 + $0x6f4] ss:$24 sps:$4 sm:$0xff]  }
  0x38   : > { %2297 = vmatprep.subr.bf16.mxu0 %v3758_v0  ;;  %v3817_v0 = vld [vmem:[%s5309_s2 + $0x12c] ss:$24 sps:$4 sm:$0xff]  }
  0x39   : > { %2325 = vmatpush1.bf16.msra.mxu1 %v3724_v55  ;;  %v3802_v55 = vld [vmem:[%s5309_s2 + $0x694] ss:$24 sps:$4 sm:$0xff]  }
  0x3a   : > { %2326 = vmatprep.subr.bf16.mxu1 %v3732_v57  ;;  %v3800_v57 = vld [vmem:[%s5309_s2 + $0x690] ss:$24 sps:$4 sm:$0xff]  }
  0x3b   : > { %2298 = vmatpush1.bf16.msra.mxu0 %v3763_v3  ;;  %v3820_v3 = vld [vmem:[%s5309_s2 + $0x724] ss:$24 sps:$4 sm:$0xff]  }
  0x3c   : > { %2299 = vmatprep.subr.bf16.mxu0 %v3764_v4  ;;  %v3823_v4 = vld [vmem:[%s5309_s2 + $0x15c] ss:$24 sps:$4 sm:$0xff]  }
  0x3d   : > { %2327 = vmatpush1.bf16.msra.mxu1 %v3730_v61  ;;  %v3806_v61 = vld [vmem:[%s5309_s2 + $0x6c0] ss:$24 sps:$4 sm:$0xff]  }
  0x3e   : > { %2328 = vmatprep.subr.bf16.mxu1 %v3738_v62  ;;  %v3809_v62 = vld [vmem:[%s5309_s2 + $0xf8] ss:$24 sps:$4 sm:$0xff]  }
  0x3f   : > { %2300 = vmatpush1.bf16.msra.mxu0 %v3769_v7  ;;  %v3826_v7 = vld [vmem:[%s5309_s2 + $0x754] ss:$24 sps:$4 sm:$0xff]  }
  0x40   : > { %2301 = vmatprep.subr.bf16.mxu0 %v3770_v15  ;;  %v3838_v15 = vld [vmem:[%s5309_s2 + $0x7b4] ss:$24 sps:$4 sm:$0xff]  }
  0x41   : > { %2329 = vmatpush1.bf16.msra.mxu1 %v3736_v1  ;;  %v3812_v1 = vld [vmem:[%s5309_s2 + $0x6f0] ss:$24 sps:$4 sm:$0xff]  }
  0x42   : > { %2330 = vmatprep.subr.bf16.mxu1 %v3744_v2  ;;  %v3815_v2 = vld [vmem:[%s5309_s2 + $0x128] ss:$24 sps:$4 sm:$0xff]  }
  0x43   : > { %2302 = vmatpush1.bf16.msra.mxu0 %v3775_v18  ;;  %v3839_v18 = vld [vmem:[%s5309_s2 + $0x1e8] ss:$24 sps:$4 sm:$0xff]  }
  0x44   : > { %2394 = vmatprep.subr.bf16.mxu0 %v3781_v20  ;;  %v3847_v20 = vld [vmem:[%s5309_s2 + $0x21c] ss:$24 sps:$4 sm:$0xff]  }
  0x45   : > { %2331 = vmatpush1.bf16.msra.mxu1 %v3742_v5  ;;  %v3818_v5 = vld [vmem:[%s5309_s2 + $0x720] ss:$24 sps:$4 sm:$0xff]  }
  0x46   : > { %2332 = vmatprep.subr.bf16.mxu1 %v3750_v6  ;;  %v3821_v6 = vld [vmem:[%s5309_s2 + $0x158] ss:$24 sps:$4 sm:$0xff]  }
  0x49   : > { %2333 = vmatpush1.bf16.msra.mxu1 %v3748_v8  ;;  %v3829_v8 = vld [vmem:[%s5309_s2 + $0x18c] ss:$24 sps:$4 sm:$0xff]  }
  0x4a   : > { %2334 = vmatprep.subr.bf16.mxu1 %v3756_v9  ;;  %v3824_v9 = vld [vmem:[%s5309_s2 + $0x750] ss:$24 sps:$4 sm:$0xff]  }
  0x4d   : > { %2335 = vmatpush1.bf16.msra.mxu1 %v3754_v10  ;;  %v3827_v10 = vld [vmem:[%s5309_s2 + $0x188] ss:$24 sps:$4 sm:$0xff]  }
  0x4e   : > { %2336 = vmatprep.subr.bf16.mxu1 %v3762_v11  ;;  %v3832_v11 = vld [vmem:[%s5309_s2 + $0x784] ss:$24 sps:$4 sm:$0xff]  }
  0x51   : > { %2337 = vmatpush1.bf16.msra.mxu1 %v3760_v12  ;;  %v3835_v12 = vld [vmem:[%s5309_s2 + $0x1bc] ss:$24 sps:$4 sm:$0xff]  }
  0x52   : > { %2338 = vmatprep.subr.bf16.mxu1 %v3768_v13  ;;  %v3830_v13 = vld [vmem:[%s5309_s2 + $0x780] ss:$24 sps:$4 sm:$0xff]  }
  0x55   : > { %2339 = vmatpush1.bf16.msra.mxu1 %v3766_v14  ;;  %v3833_v14 = vld [vmem:[%s5309_s2 + $0x1b8] ss:$24 sps:$4 sm:$0xff]  }
  0x56   : > { %2340 = vmatprep.subr.bf16.mxu1 %v3774_v16  ;;  %v3841_v16 = vld [vmem:[%s5309_s2 + $0x1ec] ss:$24 sps:$4 sm:$0xff]  }
  0x59   : > { %2341 = vmatpush1.bf16.msra.mxu1 %v3772_v17  ;;  %v3836_v17 = vld [vmem:[%s5309_s2 + $0x7b0] ss:$24 sps:$4 sm:$0xff]  }
  0x5a   : > { %2342 = vmatprep.subr.bf16.mxu1 %v3778_v19  ;;  %v3844_v19 = vld [vmem:[%s5309_s2 + $0x7e4] ss:$24 sps:$4 sm:$0xff]  }
  0x5d   : > { %2343 = vmatpush1.bf16.msra.mxu1 %v3776_v21  ;;  %v3842_v21 = vld [vmem:[%s5309_s2 + $0x7e0] ss:$24 sps:$4 sm:$0xff]  }
  0x5e   : > { %2353 = vmatprep.subr.bf16.mxu1 %v3784_v22  ;;  %v3845_v22 = vld [vmem:[%s5309_s2 + $0x218] ss:$24 sps:$4 sm:$0xff]  }
  0x9e   : > { %v496_v23 = vpop.xlane.xlu0 %495 }
  0x9f   : > { %v497_v24 = vmax.f32 %v496_v23, 1e-09  ;;  %v3850_v23 = vld [vmem:[%s5309_s2 + $0x814] ss:$24 sps:$4 sm:$0xff]  }
  0xa1   : > { %4163 = vrcp.f32 %v497_v24  ;;  %v3853_v24 = vld [vmem:[%s5309_s2 + $0x24c] ss:$24 sps:$4 sm:$0xff]  }
  0xab   : > { %v4164_v25 = vpop.eup %4163 }
  0xeb   : > { %v346_v26 = vpop.f32.mrb[0].mxu1 }
  0xec   : > { %v499_v27 = vmul.f32 %v4164_v25, %v346_v26  ;;  %v348_v28 = vpop.f32.mrb[1].mxu1  ;;  %v3851_v26 = vld [vmem:[%s5309_s2 + $0x248] ss:$24 sps:$4 sm:$0xff]  }
  0xed   : > { %v500_v29 = vmul.f32 %v4164_v25, %v348_v28  ;;  %v3859_v28 = vld [vmem:[%s5309_s2 + $0x27c] ss:$24 sps:$4 sm:$0xff]  }
  0xee   : > { %v4433_v33 = vpack.c.bf16 %v499_v27, %v499_v27  ;;  %v3856_v27 = vld [vmem:[%s5309_s2 + $0x844] ss:$24 sps:$4 sm:$0xff]  }
  0xef   : > { %v4428_v30 = vpack.c.bf16 %v500_v29, %v500_v29  ;;  %v417_v31 = vpop.f32.mrb[2].mxu1  ;;  %v3854_v29 = vld [vmem:[%s5309_s2 + $0x840] ss:$24 sps:$4 sm:$0xff]  }
  0xf0   : > { %v501_v34 = vmul.f32 %v4164_v25, %v417_v31  ;;  %v419_v35 = vpop.f32.mrb[3].mxu1  ;;  %v3857_v31 = vld [vmem:[%s5309_s2 + $0x278] ss:$24 sps:$4 sm:$0xff]  }
  0xf1   : > { %v502_v37 = vmul.f32 %v4164_v25, %v419_v35  ;;  %2303 = vmatprep.mubr.bf16.mxu0 %v4428_v30  ;;  %v3860_v35 = vld [vmem:[%s5309_s2 + $0x870] ss:$24 sps:$4 sm:$0xff]  }
  0xf2   : > { %2304 = vmatmul.mubr.bf16.vlgmr.msra.gmra.mrb[0].mxu0 %v4433_v33  ;;  %v4449_v42 = vpack.c.bf16 %v501_v34, %v501_v34  ;;  %v3865_v34 = vld [vmem:[%s5309_s2 + $0x2ac] ss:$24 sps:$4 sm:$0xff]  }
  0xf3   : > { %v4440_v38 = vpack.c.bf16 %v502_v37, %v502_v37  ;;  %2395 = vmatpush1.bf16.msra.mxu0 %v3779_v32  ;;  %v488_v39 = vpop.f32.mrb[4].mxu1  ;;  %2426 = vmatprep.mubr.bf16.mxu0 %v4428_v30  ;;  %v3862_v32 = vld [vmem:[%s5309_s2 + $0x874] ss:$24 sps:$4 sm:$0xff]   ;;  %v3868_v37 = vld [vmem:[%s5309_s2 + $0x8a4] ss:$24 sps:$4 sm:$0xff]  }
  0xf4   : > { %v4451_v43 = vmul.f32 %v4164_v25, %v488_v39  ;;  %v490_v44 = vpop.f32.mrb[5].mxu1  ;;  %2396 = vmatprep.subr.bf16.mxu0 %v3787_v36  ;;  %v3863_v36 = vld [vmem:[%s5309_s2 + $0x2a8] ss:$24 sps:$4 sm:$0xff]   ;;  %v3871_v39 = vld [vmem:[%s5309_s2 + $0x2dc] ss:$24 sps:$4 sm:$0xff]  }
  0xf5   : > { %v504_v47 = vmul.f32 %v4164_v25, %v490_v44  ;;  %2344 = vmatprep.mubr.bf16.mxu1 %v4440_v38  ;;  %v3848_v25 = vld [vmem:[%s5309_s2 + $0x810] ss:$24 sps:$4 sm:$0xff]   ;;  %v3874_v44 = vld [vmem:[%s5309_s2 + $0x8d4] ss:$24 sps:$4 sm:$0xff]  }
  0xf6   : > { %2345 = vmatmul.mubr.bf16.vlgmr.msra.gmra.mrb[8].mxu1 %v4449_v42 }
  0xf7   : > { %v4461_v48 = vpack.c.bf16 %v504_v47, %v504_v47  ;;  %2354 = vmatpush1.bf16.msra.mxu1 %v3782_v40  ;;  %2397 = vmatpush1.bf16.msra.mxu0 %v3785_v41  ;;  %v3866_v40 = vld [vmem:[%s5309_s2 + $0x8a0] ss:$24 sps:$4 sm:$0xff]  }
  0xf8   : > { %2355 = vmatprep.subr.bf16.mxu1 %v3790_v45  ;;  %2398 = vmatprep.subr.bf16.mxu0 %v3793_v46  ;;  %v3869_v41 = vld [vmem:[%s5309_s2 + $0x2d8] ss:$24 sps:$4 sm:$0xff]   ;;  %v3877_v45 = vld [vmem:[%s5309_s2 + $0x30c] ss:$24 sps:$4 sm:$0xff]   ;;  %v3875_v47 = vld [vmem:[%s5309_s2 + $0x308] ss:$24 sps:$4 sm:$0xff]  }
  0xf9   : > { %2385 = vmatprep.mubr.bf16.mxu1 %v4461_v48  ;;  %v3872_v46 = vld [vmem:[%s5309_s2 + $0x8d0] ss:$24 sps:$4 sm:$0xff]  }
  0xfb   : > { %2356 = vmatpush1.bf16.msra.mxu1 %v3788_v49  ;;  %2399 = vmatpush1.bf16.msra.mxu0 %v3791_v50  ;;  %v3880_v49 = vld [vmem:[%s5309_s2 + $0x33c] ss:$24 sps:$4 sm:$0xff]  }
  0xfc   : > { %2357 = vmatprep.subr.bf16.mxu1 %v3796_v51  ;;  %2400 = vmatprep.subr.bf16.mxu0 %v3799_v52  ;;  %v3883_v50 = vld [vmem:[%s5309_s2 + $0x14] ss:$24 sps:$4 sm:$0xff]   ;;  %v3878_v51 = vld [vmem:[%s5309_s2 + $0x338] ss:$24 sps:$4 sm:$0xff]  }
  0xfd   : > { %v3881_v52 = vld [vmem:[%s5309_s2 + $0x10] ss:$24 sps:$4 sm:$0xff]  }
  0xff   : > { %2358 = vmatpush1.bf16.msra.mxu1 %v3794_v53  ;;  %2401 = vmatpush1.bf16.msra.mxu0 %v3797_v54  ;;  %v4653_v53 = vpack.c.bf16 %v4451_v43, %v4451_v43  ;;  %v3886_v54 = vld [vmem:[%s5309_s2 + $0x36c] ss:$24 sps:$4 sm:$0xff]   ;;  %v3884_v43 = vld [vmem:[%s5309_s2 + $0x368] ss:$24 sps:$4 sm:$0xff]  }
 0x100   : > { %2359 = vmatprep.subr.bf16.mxu1 %v3802_v55  ;;  %2402 = vmatprep.subr.bf16.mxu0 %v3805_v56  ;;  %v3889_v55 = vld [vmem:[%s5309_s2 + $0x44] ss:$24 sps:$4 sm:$0xff]   ;;  %v3887_v56 = vld [vmem:[%s5309_s2 + $0x40] ss:$24 sps:$4 sm:$0xff]  }
 0x103   : > { %2360 = vmatpush1.bf16.msra.mxu1 %v3800_v57  ;;  %2403 = vmatpush1.bf16.msra.mxu0 %v3803_v58  ;;  %v3892_v57 = vld [vmem:[%s5309_s2 + $0x39c] ss:$24 sps:$4 sm:$0xff]  }
 0x104   : > { %2361 = vmatprep.subr.bf16.mxu1 %v3808_v59  ;;  %2404 = vmatprep.subr.bf16.mxu0 %v3811_v60  ;;  %v3895_v58 = vld [vmem:[%s5309_s2 + $0x74] ss:$24 sps:$4 sm:$0xff]   ;;  %v3890_v59 = vld [vmem:[%s5309_s2 + $0x398] ss:$24 sps:$4 sm:$0xff]  }
 0x105   : > { %v3898_v60 = vld [vmem:[%s5309_s2 + $0x3cc] ss:$24 sps:$4 sm:$0xff]  }
 0x107   : > { %2362 = vmatpush1.bf16.msra.mxu1 %v3806_v61  ;;  %2405 = vmatpush1.bf16.msra.mxu0 %v3809_v62  ;;  %v3901_v61 = vld [vmem:[%s5309_s2 + $0xa4] ss:$24 sps:$4 sm:$0xff]   ;;  %v3896_v62 = vld [vmem:[%s5309_s2 + $0x3c8] ss:$24 sps:$4 sm:$0xff]  }
 0x108   : > { %2363 = vmatprep.subr.bf16.mxu1 %v3814_v63  ;;  %2406 = vmatprep.subr.bf16.mxu0 %v3817_v0  ;;  %v3899_v63 = vld [vmem:[%s5309_s2 + $0xa0] ss:$24 sps:$4 sm:$0xff]   ;;  %v3904_v0 = vld [vmem:[%s5309_s2 + $0x3fc] ss:$24 sps:$4 sm:$0xff]  }
 0x10b   : > { %2364 = vmatpush1.bf16.msra.mxu1 %v3812_v1  ;;  %2407 = vmatpush1.bf16.msra.mxu0 %v3815_v2  ;;  %v3907_v1 = vld [vmem:[%s5309_s2 + $0xd4] ss:$24 sps:$4 sm:$0xff]   ;;  %v3902_v2 = vld [vmem:[%s5309_s2 + $0x3f8] ss:$24 sps:$4 sm:$0xff]  }
 0x10c   : > { %2365 = vmatprep.subr.bf16.mxu1 %v3820_v3  ;;  %2408 = vmatprep.subr.bf16.mxu0 %v3823_v4  ;;  %v3905_v3 = vld [vmem:[%s5309_s2 + $0xd0] ss:$24 sps:$4 sm:$0xff]   ;;  %v3910_v4 = vld [vmem:[%s5309_s2 + $0x42c] ss:$24 sps:$4 sm:$0xff]  }
 0x10f   : > { %2366 = vmatpush1.bf16.msra.mxu1 %v3818_v5  ;;  %2409 = vmatpush1.bf16.msra.mxu0 %v3821_v6  ;;  %v3913_v5 = vld [vmem:[%s5309_s2 + $0x104] ss:$24 sps:$4 sm:$0xff]   ;;  %v3908_v6 = vld [vmem:[%s5309_s2 + $0x428] ss:$24 sps:$4 sm:$0xff]  }
 0x110   : > { %2367 = vmatprep.subr.bf16.mxu1 %v3826_v7  ;;  %2410 = vmatprep.subr.bf16.mxu0 %v3829_v8  ;;  %v3911_v7 = vld [vmem:[%s5309_s2 + $0x100] ss:$24 sps:$4 sm:$0xff]   ;;  %v3916_v8 = vld [vmem:[%s5309_s2 + $0x45c] ss:$24 sps:$4 sm:$0xff]  }
 0x113   : > { %2368 = vmatpush1.bf16.msra.mxu1 %v3824_v9  ;;  %2411 = vmatpush1.bf16.msra.mxu0 %v3827_v10  ;;  %v3919_v9 = vld [vmem:[%s5309_s2 + $0x134] ss:$24 sps:$4 sm:$0xff]   ;;  %v3914_v10 = vld [vmem:[%s5309_s2 + $0x458] ss:$24 sps:$4 sm:$0xff]  }
 0x114   : > { %2369 = vmatprep.subr.bf16.mxu1 %v3832_v11  ;;  %2412 = vmatprep.subr.bf16.mxu0 %v3835_v12  ;;  %v3917_v11 = vld [vmem:[%s5309_s2 + $0x130] ss:$24 sps:$4 sm:$0xff]   ;;  %v3922_v12 = vld [vmem:[%s5309_s2 + $0x48c] ss:$24 sps:$4 sm:$0xff]  }
 0x117   : > { %2370 = vmatpush1.bf16.msra.mxu1 %v3830_v13  ;;  %2413 = vmatpush1.bf16.msra.mxu0 %v3833_v14  ;;  %v3925_v13 = vld [vmem:[%s5309_s2 + $0x164] ss:$24 sps:$4 sm:$0xff]   ;;  %v3920_v14 = vld [vmem:[%s5309_s2 + $0x488] ss:$24 sps:$4 sm:$0xff]  }
 0x118   : > { %2371 = vmatprep.subr.bf16.mxu1 %v3838_v15  ;;  %2414 = vmatprep.subr.bf16.mxu0 %v3841_v16  ;;  %v3923_v15 = vld [vmem:[%s5309_s2 + $0x160] ss:$24 sps:$4 sm:$0xff]   ;;  %v3928_v16 = vld [vmem:[%s5309_s2 + $0x4bc] ss:$24 sps:$4 sm:$0xff]  }
 0x11b   : > { %2372 = vmatpush1.bf16.msra.mxu1 %v3836_v17  ;;  %2415 = vmatpush1.bf16.msra.mxu0 %v3839_v18  ;;  %v3931_v17 = vld [vmem:[%s5309_s2 + $0x194] ss:$24 sps:$4 sm:$0xff]   ;;  %v3926_v18 = vld [vmem:[%s5309_s2 + $0x4b8] ss:$24 sps:$4 sm:$0xff]  }
 0x11c   : > { %2373 = vmatprep.subr.bf16.mxu1 %v3844_v19  ;;  %2416 = vmatprep.subr.bf16.mxu0 %v3847_v20  ;;  %v3929_v19 = vld [vmem:[%s5309_s2 + $0x190] ss:$24 sps:$4 sm:$0xff]   ;;  %v3934_v20 = vld [vmem:[%s5309_s2 + $0x4ec] ss:$24 sps:$4 sm:$0xff]  }
 0x11f   : > { %2374 = vmatpush1.bf16.msra.mxu1 %v3842_v21  ;;  %2417 = vmatpush1.bf16.msra.mxu0 %v3845_v22  ;;  %v3937_v21 = vld [vmem:[%s5309_s2 + $0x1c4] ss:$24 sps:$4 sm:$0xff]   ;;  %v3932_v22 = vld [vmem:[%s5309_s2 + $0x4e8] ss:$24 sps:$4 sm:$0xff]  }
 0x120   : > { %2375 = vmatprep.subr.bf16.mxu1 %v3850_v23  ;;  %2418 = vmatprep.subr.bf16.mxu0 %v3853_v24  ;;  %v3935_v23 = vld [vmem:[%s5309_s2 + $0x1c0] ss:$24 sps:$4 sm:$0xff]   ;;  %v3940_v24 = vld [vmem:[%s5309_s2 + $0x51c] ss:$24 sps:$4 sm:$0xff]  }
 0x123   : > { %2376 = vmatpush1.bf16.msra.mxu1 %v3848_v25  ;;  %2419 = vmatpush1.bf16.msra.mxu0 %v3851_v26  ;;  %v3943_v25 = vld [vmem:[%s5309_s2 + $0x1f4] ss:$24 sps:$4 sm:$0xff]   ;;  %v3938_v26 = vld [vmem:[%s5309_s2 + $0x518] ss:$24 sps:$4 sm:$0xff]  }
 0x124   : > { %2377 = vmatprep.subr.bf16.mxu1 %v3856_v27  ;;  %2420 = vmatprep.subr.bf16.mxu0 %v3859_v28  ;;  %v3941_v27 = vld [vmem:[%s5309_s2 + $0x1f0] ss:$24 sps:$4 sm:$0xff]   ;;  %v3946_v28 = vld [vmem:[%s5309_s2 + $0x54c] ss:$24 sps:$4 sm:$0xff]  }
 0x127   : > { %2378 = vmatpush1.bf16.msra.mxu1 %v3854_v29  ;;  %2421 = vmatpush1.bf16.msra.mxu0 %v3857_v31  ;;  %v3949_v29 = vld [vmem:[%s5309_s2 + $0x224] ss:$24 sps:$4 sm:$0xff]   ;;  %v3944_v31 = vld [vmem:[%s5309_s2 + $0x548] ss:$24 sps:$4 sm:$0xff]  }
 0x128   : > { %2379 = vmatprep.subr.bf16.mxu1 %v3862_v32  ;;  %2422 = vmatprep.subr.bf16.mxu0 %v3865_v34  ;;  %v3947_v32 = vld [vmem:[%s5309_s2 + $0x220] ss:$24 sps:$4 sm:$0xff]   ;;  %v3952_v34 = vld [vmem:[%s5309_s2 + $0x57c] ss:$24 sps:$4 sm:$0xff]  }
 0x12b   : > { %2380 = vmatpush1.bf16.msra.mxu1 %v3860_v35  ;;  %2423 = vmatpush1.bf16.msra.mxu0 %v3863_v36  ;;  %v3955_v35 = vld [vmem:[%s5309_s2 + $0x254] ss:$24 sps:$4 sm:$0xff]   ;;  %v3950_v36 = vld [vmem:[%s5309_s2 + $0x578] ss:$24 sps:$4 sm:$0xff]  }
 0x12c   : > { %2381 = vmatprep.subr.bf16.mxu1 %v3868_v37  ;;  %2424 = vmatprep.subr.bf16.mxu0 %v3871_v39  ;;  %v3953_v37 = vld [vmem:[%s5309_s2 + $0x250] ss:$24 sps:$4 sm:$0xff]   ;;  %v3958_v39 = vld [vmem:[%s5309_s2 + $0x5ac] ss:$24 sps:$4 sm:$0xff]  }
 0x12f   : > { %2382 = vmatpush1.bf16.msra.mxu1 %v3866_v40  ;;  %2425 = vmatpush1.bf16.msra.mxu0 %v3869_v41  ;;  %v3961_v40 = vld [vmem:[%s5309_s2 + $0x284] ss:$24 sps:$4 sm:$0xff]   ;;  %v3956_v41 = vld [vmem:[%s5309_s2 + $0x5a8] ss:$24 sps:$4 sm:$0xff]  }
 0x130   : > { %2383 = vmatprep.subr.bf16.mxu1 %v3874_v44  ;;  %2435 = vmatprep.subr.bf16.mxu0 %v3877_v45  ;;  %v3959_v44 = vld [vmem:[%s5309_s2 + $0x280] ss:$24 sps:$4 sm:$0xff]   ;;  %v3964_v45 = vld [vmem:[%s5309_s2 + $0x5dc] ss:$24 sps:$4 sm:$0xff]  }
 0x132   : > { %2427 = vmatmul.mubr.bf16.vlgmr.msra.gmra.mrb[4].mxu0 %v4433_v33 }
 0x133   : > { %2384 = vmatpush1.bf16.msra.mxu1 %v3872_v46  ;;  %2436 = vmatpush1.bf16.msra.mxu0 %v3875_v47  ;;  %v3967_v46 = vld [vmem:[%s5309_s2 + $0x2b4] ss:$24 sps:$4 sm:$0xff]   ;;  %v3962_v47 = vld [vmem:[%s5309_s2 + $0x5d8] ss:$24 sps:$4 sm:$0xff]  }
 0x134   : > { %2467 = vmatprep.mubr.bf16.mxu0 %v4440_v38  ;;  %2437 = vmatprep.subr.bf16.mxu0 %v3880_v49  ;;  %v3965_v49 = vld [vmem:[%s5309_s2 + $0x2b0] ss:$24 sps:$4 sm:$0xff]  }
 0x135   : > { %2517 = vmatprep.subr.bf16.mxu1 %v3883_v50  ;;  %v3970_v50 = vld [vmem:[%s5309_s2 + $0x60c] ss:$24 sps:$4 sm:$0xff]  }
 0x136   : > { %2386 = vmatmul.mubr.bf16.vlgmr.msra.gmra.mrb[8].mxu1 %v4653_v53 }
 0x137   : > { %2438 = vmatpush1.bf16.msra.mxu0 %v3878_v51  ;;  %2518 = vmatpush1.bf16.msra.mxu1 %v3881_v52  ;;  %v3973_v51 = vld [vmem:[%s5309_s2 + $0x2e4] ss:$24 sps:$4 sm:$0xff]   ;;  %v3968_v52 = vld [vmem:[%s5309_s2 + $0x608] ss:$24 sps:$4 sm:$0xff]  }
 0x138   : > { %2549 = vmatprep.mubr.bf16.mxu1 %v4428_v30  ;;  %2439 = vmatprep.subr.bf16.mxu0 %v3886_v54  ;;  %v3893_v30 = vld [vmem:[%s5309_s2 + $0x70] ss:$24 sps:$4 sm:$0xff]   ;;  %v3971_v54 = vld [vmem:[%s5309_s2 + $0x2e0] ss:$24 sps:$4 sm:$0xff]  }
 0x139   : > { %2519 = vmatprep.subr.bf16.mxu1 %v3889_v55  ;;  %v3976_v55 = vld [vmem:[%s5309_s2 + $0x63c] ss:$24 sps:$4 sm:$0xff]  }
 0x13b   : > { %2440 = vmatpush1.bf16.msra.mxu0 %v3884_v43  ;;  %2520 = vmatpush1.bf16.msra.mxu1 %v3887_v56  ;;  %v3979_v43 = vld [vmem:[%s5309_s2 + $0x314] ss:$24 sps:$4 sm:$0xff]   ;;  %v3974_v56 = vld [vmem:[%s5309_s2 + $0x638] ss:$24 sps:$4 sm:$0xff]  }
 0x13c   : > { %2441 = vmatprep.subr.bf16.mxu0 %v3892_v57  ;;  %2521 = vmatprep.subr.bf16.mxu1 %v3895_v58  ;;  %v3977_v57 = vld [vmem:[%s5309_s2 + $0x310] ss:$24 sps:$4 sm:$0xff]   ;;  %v3982_v58 = vld [vmem:[%s5309_s2 + $0x66c] ss:$24 sps:$4 sm:$0xff]  }
 0x13f   : > { %2442 = vmatpush1.bf16.msra.mxu0 %v3890_v59  ;;  %2522 = vmatpush1.bf16.msra.mxu1 %v3893_v30  ;;  %v3985_v59 = vld [vmem:[%s5309_s2 + $0x344] ss:$24 sps:$4 sm:$0xff]   ;;  %v3980_v30 = vld [vmem:[%s5309_s2 + $0x668] ss:$24 sps:$4 sm:$0xff]  }
 0x140   : > { %2443 = vmatprep.subr.bf16.mxu0 %v3898_v60  ;;  %2523 = vmatprep.subr.bf16.mxu1 %v3901_v61  ;;  %v3983_v60 = vld [vmem:[%s5309_s2 + $0x340] ss:$24 sps:$4 sm:$0xff]   ;;  %v3988_v61 = vld [vmem:[%s5309_s2 + $0x69c] ss:$24 sps:$4 sm:$0xff]  }
 0x143   : > { %2444 = vmatpush1.bf16.msra.mxu0 %v3896_v62  ;;  %2524 = vmatpush1.bf16.msra.mxu1 %v3899_v63  ;;  %v3986_v62 = vld [vmem:[%s5309_s2 + $0x698] ss:$24 sps:$4 sm:$0xff]   ;;  %v3994_v63 = vld [vmem:[%s5309_s2 + $0x6cc] ss:$24 sps:$4 sm:$0xff]  }
 0x144   : > { %2445 = vmatprep.subr.bf16.mxu0 %v3904_v0  ;;  %2525 = vmatprep.subr.bf16.mxu1 %v3907_v1  ;;  %v3997_v0 = vld [vmem:[%s5309_s2 + $0x3a4] ss:$24 sps:$4 sm:$0xff]   ;;  %v3992_v1 = vld [vmem:[%s5309_s2 + $0x6c8] ss:$24 sps:$4 sm:$0xff]  }
 0x147   : > { %2446 = vmatpush1.bf16.msra.mxu0 %v3902_v2  ;;  %2526 = vmatpush1.bf16.msra.mxu1 %v3905_v3  ;;  %v3995_v2 = vld [vmem:[%s5309_s2 + $0x3a0] ss:$24 sps:$4 sm:$0xff]   ;;  %v4000_v3 = vld [vmem:[%s5309_s2 + $0x6fc] ss:$24 sps:$4 sm:$0xff]  }
 0x148   : > { %2447 = vmatprep.subr.bf16.mxu0 %v3910_v4  ;;  %2527 = vmatprep.subr.bf16.mxu1 %v3913_v5  ;;  %v4003_v4 = vld [vmem:[%s5309_s2 + $0x3d4] ss:$24 sps:$4 sm:$0xff]   ;;  %v3998_v5 = vld [vmem:[%s5309_s2 + $0x6f8] ss:$24 sps:$4 sm:$0xff]  }
 0x14b   : > { %2448 = vmatpush1.bf16.msra.mxu0 %v3908_v6  ;;  %2528 = vmatpush1.bf16.msra.mxu1 %v3911_v7  ;;  %v4001_v6 = vld [vmem:[%s5309_s2 + $0x3d0] ss:$24 sps:$4 sm:$0xff]   ;;  %v4006_v7 = vld [vmem:[%s5309_s2 + $0x72c] ss:$24 sps:$4 sm:$0xff]  }
 0x14c   : > { %2449 = vmatprep.subr.bf16.mxu0 %v3916_v8  ;;  %2529 = vmatprep.subr.bf16.mxu1 %v3919_v9  ;;  %v4009_v8 = vld [vmem:[%s5309_s2 + $0x404] ss:$24 sps:$4 sm:$0xff]   ;;  %v4004_v9 = vld [vmem:[%s5309_s2 + $0x728] ss:$24 sps:$4 sm:$0xff]  }
 0x14f   : > { %2450 = vmatpush1.bf16.msra.mxu0 %v3914_v10  ;;  %2530 = vmatpush1.bf16.msra.mxu1 %v3917_v11  ;;  %v4007_v10 = vld [vmem:[%s5309_s2 + $0x400] ss:$24 sps:$4 sm:$0xff]   ;;  %v4012_v11 = vld [vmem:[%s5309_s2 + $0x75c] ss:$24 sps:$4 sm:$0xff]  }
 0x150   : > { %2451 = vmatprep.subr.bf16.mxu0 %v3922_v12  ;;  %2531 = vmatprep.subr.bf16.mxu1 %v3925_v13  ;;  %v4015_v12 = vld [vmem:[%s5309_s2 + $0x434] ss:$24 sps:$4 sm:$0xff]   ;;  %v4010_v13 = vld [vmem:[%s5309_s2 + $0x758] ss:$24 sps:$4 sm:$0xff]  }
 0x153   : > { %2452 = vmatpush1.bf16.msra.mxu0 %v3920_v14  ;;  %2532 = vmatpush1.bf16.msra.mxu1 %v3923_v15  ;;  %v4013_v14 = vld [vmem:[%s5309_s2 + $0x430] ss:$24 sps:$4 sm:$0xff]   ;;  %v4018_v15 = vld [vmem:[%s5309_s2 + $0x78c] ss:$24 sps:$4 sm:$0xff]  }
 0x154   : > { %2453 = vmatprep.subr.bf16.mxu0 %v3928_v16  ;;  %2533 = vmatprep.subr.bf16.mxu1 %v3931_v17  ;;  %v4021_v16 = vld [vmem:[%s5309_s2 + $0x464] ss:$24 sps:$4 sm:$0xff]   ;;  %v4016_v17 = vld [vmem:[%s5309_s2 + $0x788] ss:$24 sps:$4 sm:$0xff]  }
 0x157   : > { %2454 = vmatpush1.bf16.msra.mxu0 %v3926_v18  ;;  %2534 = vmatpush1.bf16.msra.mxu1 %v3929_v19  ;;  %v4019_v18 = vld [vmem:[%s5309_s2 + $0x460] ss:$24 sps:$4 sm:$0xff]   ;;  %v4024_v19 = vld [vmem:[%s5309_s2 + $0x7bc] ss:$24 sps:$4 sm:$0xff]  }
 0x158   : > { %2455 = vmatprep.subr.bf16.mxu0 %v3934_v20  ;;  %2535 = vmatprep.subr.bf16.mxu1 %v3937_v21  ;;  %v4027_v20 = vld [vmem:[%s5309_s2 + $0x494] ss:$24 sps:$4 sm:$0xff]   ;;  %v4022_v21 = vld [vmem:[%s5309_s2 + $0x7b8] ss:$24 sps:$4 sm:$0xff]  }
 0x15b   : > { %2456 = vmatpush1.bf16.msra.mxu0 %v3932_v22  ;;  %2536 = vmatpush1.bf16.msra.mxu1 %v3935_v23  ;;  %v4025_v22 = vld [vmem:[%s5309_s2 + $0x490] ss:$24 sps:$4 sm:$0xff]   ;;  %v4030_v23 = vld [vmem:[%s5309_s2 + $0x7ec] ss:$24 sps:$4 sm:$0xff]  }
 0x15c   : > { %2457 = vmatprep.subr.bf16.mxu0 %v3940_v24  ;;  %2537 = vmatprep.subr.bf16.mxu1 %v3943_v25  ;;  %v4033_v24 = vld [vmem:[%s5309_s2 + $0x4c4] ss:$24 sps:$4 sm:$0xff]   ;;  %v4028_v25 = vld [vmem:[%s5309_s2 + $0x7e8] ss:$24 sps:$4 sm:$0xff]  }
 0x15f   : > { %2458 = vmatpush1.bf16.msra.mxu0 %v3938_v26  ;;  %2538 = vmatpush1.bf16.msra.mxu1 %v3941_v27  ;;  %v4031_v26 = vld [vmem:[%s5309_s2 + $0x4c0] ss:$24 sps:$4 sm:$0xff]   ;;  %v4036_v27 = vld [vmem:[%s5309_s2 + $0x81c] ss:$24 sps:$4 sm:$0xff]  }
 0x160   : > { %2459 = vmatprep.subr.bf16.mxu0 %v3946_v28  ;;  %2539 = vmatprep.subr.bf16.mxu1 %v3949_v29  ;;  %v4039_v28 = vld [vmem:[%s5309_s2 + $0x4f4] ss:$24 sps:$4 sm:$0xff]   ;;  %v4034_v29 = vld [vmem:[%s5309_s2 + $0x818] ss:$24 sps:$4 sm:$0xff]  }
 0x163   : > { %2460 = vmatpush1.bf16.msra.mxu0 %v3944_v31  ;;  %2540 = vmatpush1.bf16.msra.mxu1 %v3947_v32  ;;  %v4037_v31 = vld [vmem:[%s5309_s2 + $0x4f0] ss:$24 sps:$4 sm:$0xff]   ;;  %v4042_v32 = vld [vmem:[%s5309_s2 + $0x84c] ss:$24 sps:$4 sm:$0xff]  }
 0x164   : > { %2461 = vmatprep.subr.bf16.mxu0 %v3952_v34  ;;  %2541 = vmatprep.subr.bf16.mxu1 %v3955_v35  ;;  %v4045_v34 = vld [vmem:[%s5309_s2 + $0x524] ss:$24 sps:$4 sm:$0xff]   ;;  %v4040_v35 = vld [vmem:[%s5309_s2 + $0x848] ss:$24 sps:$4 sm:$0xff]  }
 0x167   : > { %2462 = vmatpush1.bf16.msra.mxu0 %v3950_v36  ;;  %2542 = vmatpush1.bf16.msra.mxu1 %v3953_v37  ;;  %v4043_v36 = vld [vmem:[%s5309_s2 + $0x520] ss:$24 sps:$4 sm:$0xff]   ;;  %v4048_v37 = vld [vmem:[%s5309_s2 + $0x87c] ss:$24 sps:$4 sm:$0xff]  }
 0x168   : > { %2463 = vmatprep.subr.bf16.mxu0 %v3958_v39  ;;  %2543 = vmatprep.subr.bf16.mxu1 %v3961_v40  ;;  %v4051_v39 = vld [vmem:[%s5309_s2 + $0x554] ss:$24 sps:$4 sm:$0xff]   ;;  %v4046_v40 = vld [vmem:[%s5309_s2 + $0x878] ss:$24 sps:$4 sm:$0xff]  }
 0x16b   : > { %2464 = vmatpush1.bf16.msra.mxu0 %v3956_v41  ;;  %2544 = vmatpush1.bf16.msra.mxu1 %v3959_v44  ;;  %v4049_v41 = vld [vmem:[%s5309_s2 + $0x550] ss:$24 sps:$4 sm:$0xff]   ;;  %v4054_v44 = vld [vmem:[%s5309_s2 + $0x8ac] ss:$24 sps:$4 sm:$0xff]  }
 0x16c   : > { %2465 = vmatprep.subr.bf16.mxu0 %v3964_v45  ;;  %2545 = vmatprep.subr.bf16.mxu1 %v3967_v46  ;;  %v4057_v45 = vld [vmem:[%s5309_s2 + $0x584] ss:$24 sps:$4 sm:$0xff]   ;;  %v4052_v46 = vld [vmem:[%s5309_s2 + $0x8a8] ss:$24 sps:$4 sm:$0xff]  }
 0x16f   : > { %2466 = vmatpush1.bf16.msra.mxu0 %v3962_v47  ;;  %2546 = vmatpush1.bf16.msra.mxu1 %v3965_v49  ;;  %v4055_v47 = vld [vmem:[%s5309_s2 + $0x580] ss:$24 sps:$4 sm:$0xff]   ;;  %v4060_v49 = vld [vmem:[%s5309_s2 + $0x8dc] ss:$24 sps:$4 sm:$0xff]  }
 0x170   : > { %2476 = vmatprep.subr.bf16.mxu0 %v3970_v50  ;;  %2547 = vmatprep.subr.bf16.mxu1 %v3973_v51  ;;  %v4063_v50 = vld [vmem:[%s5309_s2 + $0x5b4] ss:$24 sps:$4 sm:$0xff]   ;;  %v4058_v51 = vld [vmem:[%s5309_s2 + $0x8d8] ss:$24 sps:$4 sm:$0xff]  }
 0x172   : > { %2468 = vmatmul.mubr.bf16.vlgmr.msra.gmra.mrb[4].mxu0 %v4449_v42 }
 0x173   : > { %2477 = vmatpush1.bf16.msra.mxu0 %v3968_v52  ;;  %2508 = vmatprep.mubr.bf16.mxu0 %v4461_v48  ;;  %v4061_v52 = vld [vmem:[%s5309_s2 + $0x5b0] ss:$24 sps:$4 sm:$0xff]  }
 0x174   : > { %2548 = vmatpush1.bf16.msra.mxu1 %v3971_v54  ;;  %2478 = vmatprep.subr.bf16.mxu0 %v3976_v55  ;;  %v4115_v54 = vld [vmem:[%s5311_s4 + $0x40] sm:$0xff]  }
 0x175   : > { %2558 = vmatprep.subr.bf16.mxu1 %v3979_v43  ;;  %v4066_v55 = vld [vmem:[%s5309_s2 + $0x5e4] ss:$24 sps:$4 sm:$0xff]  }
 0x176   : > { %v4116_v43 = vld [vmem:[%s5311_s4] sm:$0xff]  }
 0x177   : > { %2550 = vmatmul.mubr.bf16.vlgmr.msra.gmra.mrb[12].mxu1 %v4433_v33  ;;  %2479 = vmatpush1.bf16.msra.mxu0 %v3974_v56  ;;  %v3991_v33 = vld [vmem:[%s5309_s2 + $0x374] ss:$24 sps:$4 sm:$0xff]   ;;  %v4064_v56 = vld [vmem:[%s5309_s2 + $0x5e0] ss:$24 sps:$4 sm:$0xff]  }
 0x178   : > { %2559 = vmatpush1.bf16.msra.mxu1 %v3977_v57  ;;  %2590 = vmatprep.mubr.bf16.mxu1 %v4440_v38  ;;  %v3989_v38 = vld [vmem:[%s5309_s2 + $0x370] ss:$24 sps:$4 sm:$0xff]  }
 0x179   : > { %2480 = vmatprep.subr.bf16.mxu0 %v3982_v58  ;;  %2560 = vmatprep.subr.bf16.mxu1 %v3985_v59  ;;  %v4117_v57 = vld [vmem:[%s5311_s4 + $0x48] sm:$0xff]  }
 0x17a   : > { %v4069_v58 = vld [vmem:[%s5309_s2 + $0x614] ss:$24 sps:$4 sm:$0xff]  }
 0x17b   : > { %2481 = vmatpush1.bf16.msra.mxu0 %v3980_v30  ;;  %v4118_v59 = vld [vmem:[%s5311_s4 + $0x8] sm:$0xff]  }
 0x17c   : > { %2561 = vmatpush1.bf16.msra.mxu1 %v3983_v60  ;;  %2482 = vmatprep.subr.bf16.mxu0 %v3988_v61  ;;  %v4067_v30 = vld [vmem:[%s5309_s2 + $0x610] ss:$24 sps:$4 sm:$0xff]   ;;  %v4072_v60 = vld [vmem:[%s5309_s2 + $0x644] ss:$24 sps:$4 sm:$0xff]  }
 0x17d   : > { %2562 = vmatprep.subr.bf16.mxu1 %v3991_v33  ;;  %v4119_v61 = vld [vmem:[%s5311_s4 + $0x50] sm:$0xff]  }
 0x17e   : > { %v4120_v33 = vld [vmem:[%s5311_s4 + $0x10] sm:$0xff]  }
 0x17f   : > { %2483 = vmatpush1.bf16.msra.mxu0 %v3986_v62  ;;  %v4070_v62 = vld [vmem:[%s5309_s2 + $0x640] ss:$24 sps:$4 sm:$0xff]  }
 0x180   : > { %2563 = vmatpush1.bf16.msra.mxu1 %v3989_v38  ;;  %2484 = vmatprep.subr.bf16.mxu0 %v3994_v63  ;;  %v4121_v38 = vld [vmem:[%s5311_s4 + $0x58] sm:$0xff]  }
 0x181   : > { %2564 = vmatprep.subr.bf16.mxu1 %v3997_v0  ;;  %v4122_v63 = vld [vmem:[%s5311_s4 + $0x18] sm:$0xff]   ;;  %v4123_v0 = vld [vmem:[%s5311_s4 + $0x60] sm:$0xff]  }
 0x183   : > { %2485 = vmatpush1.bf16.msra.mxu0 %v3992_v1  ;;  %v4078_v1 = vld [vmem:[%s5309_s2 + $0x6a4] ss:$24 sps:$4 sm:$0xff]  }
 0x184   : > { %2565 = vmatpush1.bf16.msra.mxu1 %v3995_v2  ;;  %2486 = vmatprep.subr.bf16.mxu0 %v4000_v3  ;;  %v4124_v2 = vld [vmem:[%s5311_s4 + $0x20] sm:$0xff]  }
 0x185   : > { %2566 = vmatprep.subr.bf16.mxu1 %v4003_v4  ;;  %v4076_v3 = vld [vmem:[%s5309_s2 + $0x6a0] ss:$24 sps:$4 sm:$0xff]   ;;  %v4125_v4 = vld [vmem:[%s5311_s4 + $0x68] sm:$0xff]  }
 0x187   : > { %2487 = vmatpush1.bf16.msra.mxu0 %v3998_v5  ;;  %v4081_v5 = vld [vmem:[%s5309_s2 + $0x6d4] ss:$24 sps:$4 sm:$0xff]  }
 0x188   : > { %2567 = vmatpush1.bf16.msra.mxu1 %v4001_v6  ;;  %2488 = vmatprep.subr.bf16.mxu0 %v4006_v7  ;;  %v4126_v6 = vld [vmem:[%s5311_s4 + $0x28] sm:$0xff]  }
 0x189   : > { %2568 = vmatprep.subr.bf16.mxu1 %v4009_v8  ;;  %v4079_v7 = vld [vmem:[%s5309_s2 + $0x6d0] ss:$24 sps:$4 sm:$0xff]  }
 0x18a   : > { %v4127_v8 = vld [vmem:[%s5311_s4 + $0x70] sm:$0xff]  }
 0x18b   : > { %2489 = vmatpush1.bf16.msra.mxu0 %v4004_v9 }
 0x18c   : > { %2569 = vmatpush1.bf16.msra.mxu1 %v4007_v10  ;;  %2490 = vmatprep.subr.bf16.mxu0 %v4012_v11  ;;  %v4084_v10 = vld [vmem:[%s5309_s2 + $0x704] ss:$24 sps:$4 sm:$0xff]  }
 0x18d   : > { %2570 = vmatprep.subr.bf16.mxu1 %v4015_v12 }
 0x18f   : > { %2491 = vmatpush1.bf16.msra.mxu0 %v4010_v13  ;;  %v4128_v13 = vld [vmem:[%s5311_s4 + $0x30] sm:$0xff]  }
 0x190   : > { %2571 = vmatpush1.bf16.msra.mxu1 %v4013_v14  ;;  %2492 = vmatprep.subr.bf16.mxu0 %v4018_v15  ;;  %v4082_v15 = vld [vmem:[%s5309_s2 + $0x700] ss:$24 sps:$4 sm:$0xff]  }
 0x191   : > { %2572 = vmatprep.subr.bf16.mxu1 %v4021_v16  ;;  %v4129_v16 = vld [vmem:[%s5311_s4 + $0x78] sm:$0xff]  }
 0x193   : > { %2493 = vmatpush1.bf16.msra.mxu0 %v4016_v17  ;;  %v4087_v17 = vld [vmem:[%s5309_s2 + $0x734] ss:$24 sps:$4 sm:$0xff]  }
 0x194   : > { %2573 = vmatpush1.bf16.msra.mxu1 %v4019_v18  ;;  %2494 = vmatprep.subr.bf16.mxu0 %v4024_v19  ;;  %v4130_v18 = vld [vmem:[%s5311_s4 + $0x38] sm:$0xff]   ;;  %v4085_v19 = vld [vmem:[%s5309_s2 + $0x730] ss:$24 sps:$4 sm:$0xff]  }
 0x195   : > { %2574 = vmatprep.subr.bf16.mxu1 %v4027_v20  ;;  %v4131_v20 = vld [vmem:[%s5311_s4 + $0xc0] sm:$0xff]  }
 0x197   : > { %2495 = vmatpush1.bf16.msra.mxu0 %v4022_v21  ;;  %v4090_v21 = vld [vmem:[%s5309_s2 + $0x764] ss:$24 sps:$4 sm:$0xff]  }
 0x198   : > { %2575 = vmatpush1.bf16.msra.mxu1 %v4025_v22  ;;  %2496 = vmatprep.subr.bf16.mxu0 %v4030_v23  ;;  %v4088_v22 = vld [vmem:[%s5309_s2 + $0x760] ss:$24 sps:$4 sm:$0xff]   ;;  %v4093_v23 = vld [vmem:[%s5309_s2 + $0x794] ss:$24 sps:$4 sm:$0xff]  }
 0x199   : > { %2576 = vmatprep.subr.bf16.mxu1 %v4033_v24  ;;  %v4091_v24 = vld [vmem:[%s5309_s2 + $0x790] ss:$24 sps:$4 sm:$0xff]  }
 0x19b   : > { %2497 = vmatpush1.bf16.msra.mxu0 %v4028_v25  ;;  %v4096_v25 = vld [vmem:[%s5309_s2 + $0x7c4] ss:$24 sps:$4 sm:$0xff]  }
 0x19c   : > { %2577 = vmatpush1.bf16.msra.mxu1 %v4031_v26  ;;  %2498 = vmatprep.subr.bf16.mxu0 %v4036_v27  ;;  %v4094_v26 = vld [vmem:[%s5309_s2 + $0x7c0] ss:$24 sps:$4 sm:$0xff]   ;;  %v4099_v27 = vld [vmem:[%s5309_s2 + $0x7f4] ss:$24 sps:$4 sm:$0xff]  }
 0x19d   : > { %2578 = vmatprep.subr.bf16.mxu1 %v4039_v28  ;;  %v4097_v28 = vld [vmem:[%s5309_s2 + $0x7f0] ss:$24 sps:$4 sm:$0xff]  }
 0x19f   : > { %2499 = vmatpush1.bf16.msra.mxu0 %v4034_v29  ;;  %v4102_v29 = vld [vmem:[%s5309_s2 + $0x824] ss:$24 sps:$4 sm:$0xff]  }
 0x1a0   : > { %2579 = vmatpush1.bf16.msra.mxu1 %v4037_v31  ;;  %2500 = vmatprep.subr.bf16.mxu0 %v4042_v32  ;;  %v4100_v31 = vld [vmem:[%s5309_s2 + $0x820] ss:$24 sps:$4 sm:$0xff]   ;;  %v4105_v32 = vld [vmem:[%s5309_s2 + $0x854] ss:$24 sps:$4 sm:$0xff]  }
 0x1a1   : > { %2580 = vmatprep.subr.bf16.mxu1 %v4045_v34  ;;  %v4103_v34 = vld [vmem:[%s5309_s2 + $0x850] ss:$24 sps:$4 sm:$0xff]  }
 0x1a3   : > { %2501 = vmatpush1.bf16.msra.mxu0 %v4040_v35  ;;  %v4108_v35 = vld [vmem:[%s5309_s2 + $0x884] ss:$24 sps:$4 sm:$0xff]  }
 0x1a4   : > { %2581 = vmatpush1.bf16.msra.mxu1 %v4043_v36  ;;  %2502 = vmatprep.subr.bf16.mxu0 %v4048_v37  ;;  %v4106_v36 = vld [vmem:[%s5309_s2 + $0x880] ss:$24 sps:$4 sm:$0xff]   ;;  %v4111_v37 = vld [vmem:[%s5309_s2 + $0x8b4] ss:$24 sps:$4 sm:$0xff]  }
 0x1a5   : > { %2582 = vmatprep.subr.bf16.mxu1 %v4051_v39  ;;  %v4109_v39 = vld [vmem:[%s5309_s2 + $0x8b0] ss:$24 sps:$4 sm:$0xff]  }
 0x1a7   : > { %2503 = vmatpush1.bf16.msra.mxu0 %v4046_v40  ;;  %v4114_v40 = vld [vmem:[%s5309_s2 + $0x8e4] ss:$24 sps:$4 sm:$0xff]  }
 0x1a8   : > { %2583 = vmatpush1.bf16.msra.mxu1 %v4049_v41  ;;  %2504 = vmatprep.subr.bf16.mxu0 %v4054_v44  ;;  %v4112_v41 = vld [vmem:[%s5309_s2 + $0x8e0] ss:$24 sps:$4 sm:$0xff]   ;;  %v2241_v44 = vlaneseq }
 0x1a9   : > { %2584 = vmatprep.subr.bf16.mxu1 %v4057_v45 }
 0x1aa   : > { %v5183_v45 = vshrl.u32 %v2241_v44, 7 }
 0x1ab   : > { %2505 = vmatpush1.bf16.msra.mxu0 %v4052_v46 }
 0x1ac   : > { %2585 = vmatpush1.bf16.msra.mxu1 %v4055_v47  ;;  %2506 = vmatprep.subr.bf16.mxu0 %v4060_v49  ;;  %v2243_v46 = vsub.s32 0, %v5183_v45  ;;  %v5189_v47 = vld [vmem:[%s5310_s3] sm:$0x3f]  ;;  %v2247_v49 = vsub.s32 1, %v5183_v45  ;;  %v2259_v44 = vsub.s32 4, %v5183_v45 }
 0x1ad   : > { %2586 = vmatprep.subr.bf16.mxu1 %v4063_v50 }
 0x1ae   : > { %v2244_v50 = vrot.slane %v5189_v47, %v2243_v46  ;;  %v2263_v46 = vsub.s32 5, %v5183_v45 }
 0x1af   : > { %2507 = vmatpush1.bf16.msra.mxu0 %v4058_v51  ;;  %v2248_v51 = vrot.slane %v5189_v47, %v2247_v49  ;;  %v2260_v49 = vrot.slane %v5189_v47, %v2259_v44 }
 0x1b0   : > { %2587 = vmatpush1.bf16.msra.mxu1 %v4061_v52  ;;  %3567 = vmatprep.subr.bf16.mxu0 %v4115_v54 }
 0x1b1   : > { %2588 = vmatprep.subr.bf16.mxu1 %v4066_v55 }
 0x1b2   : > { %2509 = vmatmul.mubr.bf16.vlgmr.msra.gmra.mrb[4].mxu0 %v4653_v53 }
 0x1b3   : > { %3568 = vmatpush3.bf16.msra.mxu0 %v4116_v43 }
 0x1b4   : > { %2589 = vmatpush1.bf16.msra.mxu1 %v4064_v56  ;;  %3569 = vmatprep.subr.bf16.mxu0 %v4117_v57 }
 0x1b5   : > { %2599 = vmatprep.subr.bf16.mxu1 %v4069_v58 }
 0x1b7   : > { %2591 = vmatmul.mubr.bf16.vlgmr.msra.gmra.mrb[12].mxu1 %v4449_v42  ;;  %3570 = vmatpush3.bf16.msra.mxu0 %v4118_v59  ;;  %v4075_v42 = vld [vmem:[%s5309_s2 + $0x674] ss:$24 sps:$4 sm:$0xff]  }
 0x1b8   : > { %2600 = vmatpush1.bf16.msra.mxu1 %v4067_v30  ;;  %2631 = vmatprep.mubr.bf16.mxu1 %v4461_v48  ;;  %v4073_v48 = vld [vmem:[%s5309_s2 + $0x670] ss:$24 sps:$4 sm:$0xff]  }
 0x1b9   : > { %2601 = vmatprep.subr.bf16.mxu1 %v4072_v60  ;;  %3571 = vmatprep.subr.bf16.mxu0 %v4119_v61  ;;  %v4132_v61 = vld [vmem:[%s5311_s4 + $0x80] sm:$0xff]  }
 0x1bb   : > { %3572 = vmatpush3.bf16.msra.mxu0 %v4120_v33 }
 0x1bc   : > { %2602 = vmatpush1.bf16.msra.mxu1 %v4070_v62  ;;  %3573 = vmatprep.subr.bf16.mxu0 %v4121_v38  ;;  %v4133_v62 = vld [vmem:[%s5311_s4 + $0xc8] sm:$0xff]  }
 0x1bd   : > { %2603 = vmatprep.subr.bf16.mxu1 %v4075_v42  ;;  %v4134_v38 = vld [vmem:[%s5311_s4 + $0x88] sm:$0xff]   ;;  %v4135_v42 = vld [vmem:[%s5311_s4 + $0xd0] sm:$0xff]  }
 0x1bf   : > { %3574 = vmatpush3.bf16.msra.mxu0 %v4122_v63  ;;  %v4136_v63 = vld [vmem:[%s5311_s4 + $0x90] sm:$0xff]  }
 0x1c0   : > { %2604 = vmatpush1.bf16.msra.mxu1 %v4073_v48  ;;  %3575 = vmatprep.subr.bf16.mxu0 %v4123_v0  ;;  %v4137_v48 = vld [vmem:[%s5311_s4 + $0xd8] sm:$0xff]  }
 0x1c1   : > { %2605 = vmatprep.subr.bf16.mxu1 %v4078_v1  ;;  %v4138_v0 = vld [vmem:[%s5311_s4 + $0x98] sm:$0xff]   ;;  %v4139_v1 = vld [vmem:[%s5311_s4 + $0xe0] sm:$0xff]  }
 0x1c3   : > { %3576 = vmatpush3.bf16.msra.mxu0 %v4124_v2  ;;  %v4140_v2 = vld [vmem:[%s5311_s4 + $0xa0] sm:$0xff]  }
 0x1c4   : > { %2606 = vmatpush1.bf16.msra.mxu1 %v4076_v3  ;;  %3577 = vmatprep.subr.bf16.mxu0 %v4125_v4  ;;  %v4141_v3 = vld [vmem:[%s5311_s4 + $0xe8] sm:$0xff]  }
 0x1c5   : > { %v5100_v9 = vpop.f32.mrb[0].mxu0  ;;  %2607 = vmatprep.subr.bf16.mxu1 %v4081_v5  ;;  %v4142_v4 = vld [vmem:[%s5311_s4 + $0xa8] sm:$0xff]   ;;  %v4143_v5 = vld [vmem:[%s5311_s4 + $0xf0] sm:$0xff]  }
 0x1c6   : > { %v5105_v11 = vpop.f32.mrb[1].mxu0  ;;  %v2306_v52 = vadd.f32 %v5100_v9, %v2244_v50  ;;  %v4147_v9 = vld [vmem:[%s5311_s4 + $0x140] sm:$0xff]   ;;  %v2264_v50 = vrot.slane %v5189_v47, %v2263_v46 }
 0x1c7   : > { %v2309_v12 = vpop.f32.mrb[2].mxu0  ;;  %3578 = vmatpush3.bf16.msra.mxu0 %v4126_v6  ;;  %v4144_v6 = vld [vmem:[%s5311_s4 + $0xb0] sm:$0xff]  }
 0x1c8   : > { %2608 = vmatpush1.bf16.msra.mxu1 %v4079_v7  ;;  %v2310_v14 = vpop.f32.mrb[3].mxu0  ;;  %3579 = vmatprep.subr.bf16.mxu0 %v4127_v8  ;;  %v4145_v7 = vld [vmem:[%s5311_s4 + $0xf8] sm:$0xff]  }
 0x1c9   : > { %2609 = vmatprep.subr.bf16.mxu1 %v4084_v10  ;;  %v4146_v8 = vld [vmem:[%s5311_s4 + $0xb8] sm:$0xff]   ;;  %v2251_v10 = vsub.s32 2, %v5183_v45 }
 0x1cb   : > { %3580 = vmatpush3.bf16.msra.mxu0 %v4128_v13  ;;  %v2252_v12 = vrot.slane %v5189_v47, %v2251_v10 }
 0x1cc   : > { %2610 = vmatpush1.bf16.msra.mxu1 %v4082_v15  ;;  %3581 = vmatprep.subr.bf16.mxu0 %v4129_v16 }
 0x1cd   : > { %2611 = vmatprep.subr.bf16.mxu1 %v4087_v17 }
 0x1cf   : > { %3582 = vmatpush3.bf16.msra.mxu0 %v4130_v18 }
 0x1d0   : > { %2612 = vmatpush1.bf16.msra.mxu1 %v4085_v19  ;;  %3589 = vmatprep.subr.bf16.mxu0 %v4131_v20 }
 0x1d1   : > { %2613 = vmatprep.subr.bf16.mxu1 %v4090_v21 }
 0x1d4   : > { %2614 = vmatpush1.bf16.msra.mxu1 %v4088_v22 }
 0x1d5   : > { %2615 = vmatprep.subr.bf16.mxu1 %v4093_v23  ;;  %v4148_v23 = vld [vmem:[%s5311_s4 + $0x100] sm:$0xff]  }
 0x1d8   : > { %2616 = vmatpush1.bf16.msra.mxu1 %v4091_v24 }
 0x1d9   : > { %2617 = vmatprep.subr.bf16.mxu1 %v4096_v25  ;;  %v4149_v25 = vld [vmem:[%s5311_s4 + $0x148] sm:$0xff]  }
 0x1dc   : > { %2618 = vmatpush1.bf16.msra.mxu1 %v4094_v26  ;;  %v4150_v26 = vld [vmem:[%s5311_s4 + $0x108] sm:$0xff]  }
 0x1dd   : > { %2619 = vmatprep.subr.bf16.mxu1 %v4099_v27  ;;  %v4151_v27 = vld [vmem:[%s5311_s4 + $0x150] sm:$0xff]  }
 0x1e0   : > { %2620 = vmatpush1.bf16.msra.mxu1 %v4097_v28  ;;  %v4152_v28 = vld [vmem:[%s5311_s4 + $0x110] sm:$0xff]  }
 0x1e1   : > { %2621 = vmatprep.subr.bf16.mxu1 %v4102_v29  ;;  %v4153_v29 = vld [vmem:[%s5311_s4 + $0x158] sm:$0xff]  }
 0x1e4   : > { %2622 = vmatpush1.bf16.msra.mxu1 %v4100_v31  ;;  %v4154_v31 = vld [vmem:[%s5311_s4 + $0x118] sm:$0xff]  }
 0x1e5   : > { %2623 = vmatprep.subr.bf16.mxu1 %v4105_v32  ;;  %v4155_v32 = vld [vmem:[%s5311_s4 + $0x160] sm:$0xff]  }
 0x1e8   : > { %2624 = vmatpush1.bf16.msra.mxu1 %v4103_v34  ;;  %v4156_v34 = vld [vmem:[%s5311_s4 + $0x120] sm:$0xff]  }
 0x1e9   : > { %2625 = vmatprep.subr.bf16.mxu1 %v4108_v35  ;;  %v4157_v35 = vld [vmem:[%s5311_s4 + $0x168] sm:$0xff]  }
 0x1ec   : > { %2626 = vmatpush1.bf16.msra.mxu1 %v4106_v36  ;;  %v4158_v36 = vld [vmem:[%s5311_s4 + $0x128] sm:$0xff]  }
 0x1ed   : > { %2627 = vmatprep.subr.bf16.mxu1 %v4111_v37  ;;  %v4159_v37 = vld [vmem:[%s5311_s4 + $0x170] sm:$0xff]  }
 0x1f0   : > { %2628 = vmatpush1.bf16.msra.mxu1 %v4109_v39  ;;  %v4160_v39 = vld [vmem:[%s5311_s4 + $0x130] sm:$0xff]  }
 0x1f1   : > { %2629 = vmatprep.subr.bf16.mxu1 %v4114_v40  ;;  %v4161_v40 = vld [vmem:[%s5311_s4 + $0x178] sm:$0xff]  }
 0x1f4   : > { %2630 = vmatpush1.bf16.msra.mxu1 %v4112_v41  ;;  %v4162_v41 = vld [vmem:[%s5311_s4 + $0x138] sm:$0xff]  }
 0x1f7   : > { %2632 = vmatmul.mubr.bf16.vlgmr.msra.gmra.mrb[12].mxu1 %v4653_v53  ;;  %v2308_v53 = vadd.f32 %v5105_v11, %v2248_v51  ;;  %v2255_v11 = vsub.s32 3, %v5183_v45 }
 0x1f9   : > { %v2256_v13 = vrot.slane %v5189_v47, %v2255_v11  ;;  %v2748_v47 = vld [vmem:[%s5312_s5] sm:$0x1] }
 0x209   : > { %v2387_v54 = vpop.f32.mrb[8].mxu1 }
 0x20a   : > { %v3646_v55 = vadd.f32 %v2387_v54, %v2306_v52  ;;  %v2389_v43 = vpop.f32.mrb[9].mxu1 }
 0x20b   : > { %v3648_v56 = vadd.f32 %v2389_v43, %v2308_v53  ;;  %v2391_v57 = vpop.f32.mrb[10].mxu1 }
 0x20c   : > { %v2640_v58 = vmax.f32 %v3646_v55, 0.0  ;;  %v2392_v59 = vpop.f32.mrb[11].mxu1 }
 0x20d   : > { %v2641_v30 = vmax.f32 %v3648_v56, 0.0 }
 0x20e   : > { %v2646_v33 = vpack.c.bf16 %v2640_v58, %v2640_v58 }
 0x20f   : > { %v2647_v60 = vpack.c.bf16 %v2641_v30, %v2641_v30 }
 0x211   : > { %3069 = vmatprep.mubr.bf16.mxu0 %v2647_v60 }
 0x212   : > { %3070 = vmatmul.mubr.bf16.vlgmr.msra.gmra.mrb[8].mxu0 %v2646_v33 }
 0x213   : > { %3590 = vmatpush3.bf16.msra.mxu0 %v4132_v61 }
 0x214   : > { %3591 = vmatprep.subr.bf16.mxu0 %v4133_v62 }
 0x217   : > { %3592 = vmatpush3.bf16.msra.mxu0 %v4134_v38 }
 0x218   : > { %3593 = vmatprep.subr.bf16.mxu0 %v4135_v42 }
 0x21b   : > { %3594 = vmatpush3.bf16.msra.mxu0 %v4136_v63 }
 0x21c   : > { %3595 = vmatprep.subr.bf16.mxu0 %v4137_v48 }
 0x21f   : > { %3596 = vmatpush3.bf16.msra.mxu0 %v4138_v0 }
 0x220   : > { %3597 = vmatprep.subr.bf16.mxu0 %v4139_v1 }
 0x223   : > { %3598 = vmatpush3.bf16.msra.mxu0 %v4140_v2 }
 0x224   : > { %3599 = vmatprep.subr.bf16.mxu0 %v4141_v3 }
 0x227   : > { %3600 = vmatpush3.bf16.msra.mxu0 %v4142_v4 }
 0x228   : > { %3601 = vmatprep.subr.bf16.mxu0 %v4143_v5 }
 0x22b   : > { %3602 = vmatpush3.bf16.msra.mxu0 %v4144_v6 }
 0x22c   : > { %3603 = vmatprep.subr.bf16.mxu0 %v4145_v7 }
 0x22f   : > { %3604 = vmatpush3.bf16.msra.mxu0 %v4146_v8  ;;  %v3161_v8 = vld [vmem:[%s261_s26] sm:$0x1] }
 0x230   : > { %3611 = vmatprep.subr.bf16.mxu0 %v4147_v9 }
 0x285   : > { %v2510_v14 = vpop.f32.mrb[4].mxu0 }
 0x286   : > { %v3649_v15 = vadd.f32 %v2510_v14, %v2252_v12  ;;  %v2512_v16 = vpop.f32.mrb[5].mxu0 }
 0x287   : > { %v3650_v17 = vadd.f32 %v2512_v16, %v2256_v13  ;;  %v2514_v18 = vpop.f32.mrb[6].mxu0 }
 0x288   : > { %v2642_v19 = vmax.f32 %v3649_v15, 0.0  ;;  %v2515_v20 = vpop.f32.mrb[7].mxu0 }
 0x289   : > { %v2643_v21 = vmax.f32 %v3650_v17, 0.0 }
 0x28a   : > { %v2648_v24 = vpack.c.bf16 %v2642_v19, %v2642_v19 }
 0x28b   : > { %v2649_v22 = vpack.c.bf16 %v2643_v21, %v2643_v21 }
 0x28d   : > { %3109 = vmatprep.mubr.bf16.mxu0 %v2649_v22 }
 0x28e   : > { %3110 = vmatmul.mubr.bf16.vlgmr.msra.gmra.mrb[12].mxu0 %v2648_v24 }
 0x28f   : > { %3612 = vmatpush3.bf16.msra.mxu0 %v4148_v23 }
 0x290   : > { %3613 = vmatprep.subr.bf16.mxu0 %v4149_v25 }
 0x293   : > { %3614 = vmatpush3.bf16.msra.mxu0 %v4150_v26 }
 0x294   : > { %3615 = vmatprep.subr.bf16.mxu0 %v4151_v27 }
 0x297   : > { %3616 = vmatpush3.bf16.msra.mxu0 %v4152_v28 }
 0x298   : > { %3617 = vmatprep.subr.bf16.mxu0 %v4153_v29 }
 0x29b   : > { %3618 = vmatpush3.bf16.msra.mxu0 %v4154_v31 }
 0x29c   : > { %3619 = vmatprep.subr.bf16.mxu0 %v4155_v32 }
 0x29f   : > { %3620 = vmatpush3.bf16.msra.mxu0 %v4156_v34 }
 0x2a0   : > { %3621 = vmatprep.subr.bf16.mxu0 %v4157_v35 }
 0x2a3   : > { %3622 = vmatpush3.bf16.msra.mxu0 %v4158_v36 }
 0x2a4   : > { %3623 = vmatprep.subr.bf16.mxu0 %v4159_v37 }
 0x2a7   : > { %3624 = vmatpush3.bf16.msra.mxu0 %v4160_v39 }
 0x2a8   : > { %3625 = vmatprep.subr.bf16.mxu0 %v4161_v40 }
 0x2ab   : > { %3626 = vmatpush3.bf16.msra.mxu0 %v4162_v41 }
 0x2ca   : > { %v2633_v51 = vpop.f32.mrb[12].mxu1 }
 0x2cb   : > { %v3651_v52 = vadd.f32 %v2633_v51, %v2260_v49  ;;  %v2635_v53 = vpop.f32.mrb[13].mxu1 }
 0x2cc   : > { %v3652_v54 = vadd.f32 %v2635_v53, %v2264_v50  ;;  %v2637_v55 = vpop.f32.mrb[14].mxu1 }
 0x2cd   : > { %v2644_v43 = vmax.f32 %v3651_v52, 0.0  ;;  %v2638_v56 = vpop.f32.mrb[15].mxu1 }
 0x2ce   : > { %v2645_v57 = vmax.f32 %v3652_v54, 0.0 }
 0x2cf   : > { %v2650_v59 = vpack.c.bf16 %v2644_v43, %v2644_v43 }
 0x2d0   : > { %v2651_v58 = vpack.c.bf16 %v2645_v57, %v2645_v57 }
 0x2d2   : > { %3149 = vmatprep.mubr.bf16.mxu0 %v2651_v58 }
 0x2d3   : > { %3150 = vmatmul.mubr.bf16.vlgmr.msra.gmra.mrb[16].mxu0 %v2650_v59 }
 0x2e5   : > { %v3583_v30 = vpop.f32.mrb[8].mxu0 }
 0x2e6   : > { %v3584_v60 = vpop.f32.mrb[9].mxu0 }
 0x2e7   : > { %v3585_v45 = vadd.f32 %v3584_v60, %v3583_v30  ;;  %v3586_v61 = vpop.f32.mrb[10].mxu0 }
 0x2e8   : > { %v3587_v33 = vpop.f32.mrb[11].mxu0 }
 0x2e9   : > { %v3072_v42 = vadd.f32 %v3585_v45, %v2748_v47 }
 0x361   : > { %v3605_v62 = vpop.f32.mrb[12].mxu0 }
 0x362   : > { %v3606_v38 = vpop.f32.mrb[13].mxu0 }
 0x363   : > { %v3607_v63 = vadd.f32 %v3606_v38, %v3605_v62  ;;  %v3608_v48 = vpop.f32.mrb[14].mxu0 }
 0x364   : > { %v3609_v0 = vpop.f32.mrb[15].mxu0 }
 0x365   : > { %v3112_v1 = vadd.f32 %v3607_v63, %v3072_v42 }
 0x3a6   : > { %v3627_v2 = vpop.f32.mrb[16].mxu0 }
 0x3a7   : > { %v3628_v3 = vpop.f32.mrb[17].mxu0 }
 0x3a8   : > { %v3629_v4 = vadd.f32 %v3628_v3, %v3627_v2  ;;  %v3630_v5 = vpop.f32.mrb[18].mxu0 }
 0x3a9   : > { %v3631_v6 = vpop.f32.mrb[19].mxu0 }
 0x3aa   : > { %v3152_v7 = vadd.f32 %v3629_v4, %v3112_v1 }
 0x3ac   : > { %v3157_v9 = vpack.c.bf16 %v3152_v7, %v3152_v7 }
 0x3ae   : > { %v3162_v10 = vsel %vm3160_vm4, %v3157_v9, %v3161_v8 }
 0x3af   : > { %3163 = vst [vmem:[%s261_s26] sm:$0x1] %v3162_v10 }
 0x3b0 PF: > { %s16_s21 = sadd.s32 1, %s4171_s21  }
 0x3b1   : > { %p13_p4 = scmp.ge.s32.totalorder %s16_s21, 10  }
 0x3b3   :  { %15 = sbr.rel (!%p13_p4) target bundleno = 1 (0x1), region = 77 }

</bundles_post_ra>
